<compile_context>
chip_gen: v6e
topology: v6e:2x2x1
jax: 0.10.0
libtpu: 0.0.40
codegen_flags: <defaults>
</compile_context>

<pallas_src>
import numpy as np
import jax
import jax.numpy as jnp
from jax.experimental import pallas as pl
from jax.experimental.pallas import tpu as pltpu

EPS = 1e-5  # nn.BatchNorm2d default eps (training-mode batch statistics)


def _banded_weights(w_oihw, Wsp):
    """OIHW 3x3 weight -> (3, (Wsp+2)*Cin, Wsp*Cout) per-kh block-banded matrices.

    band[kh][(w+kw)*Cin + ci, w*Cout + co] = w[co, ci, kh, kw], so a conv with
    pad=1/stride=1 becomes: out[h] = sum_kh padded_rows[h+kh] @ band[kh].
    """
    Cout, Cin, K, _ = w_oihw.shape
    wt = jnp.transpose(w_oihw, (2, 3, 1, 0)).astype(jnp.float32)  # (K, K, Cin, Cout)
    bands = []
    for kh in range(K):
        acc = jnp.zeros(((Wsp + 2) * Cin, Wsp * Cout), jnp.float32)
        for kw in range(K):
            sel = jnp.eye(Wsp + 2, Wsp, k=-kw, dtype=jnp.float32)  # sel[p, w] = (p == w + kw)
            acc = acc + jnp.einsum("pw,io->piwo", sel, wt[kh, kw]).reshape(
                (Wsp + 2) * Cin, Wsp * Cout)
        bands.append(acc)
    return jnp.stack(bands, axis=0)


def residual_block_forward(x_nchw, params):
    w1, w2 = params["w1"], params["w2"]
    a1, a2 = params["a1"], params["a2"]
    g1, b1, g2, b2 = params["g1"], params["b1"], params["g2"], params["b2"]

    N, Cin, H, W = x_nchw.shape
    Cout = w1.shape[0]
    K = w1.shape[2]
    assert K == 3, "only kernel_size=3 implemented"
    assert Cin == Cout, "identity residual (dim_red=False) requires Cin == Cout"
    C = Cout

    x_nhwc = jnp.transpose(x_nchw, (0, 2, 3, 1)).astype(jnp.float32)
    x2d = x_nhwc.reshape(N, H, W * Cin)                      # lane-dense rows (w*C + c)

    band1 = _banded_weights(w1, W)                           # (3, (W+2)*Cin,  W*Cout)
    band2 = _banded_weights(w2, W)                           # (3, (W+2)*Cout, W*Cout)

    tile_w = lambda v: jnp.tile(v.reshape(1, C).astype(jnp.float32), (1, W))  # (1, W*C)
    a1t = tile_w(a1)

    # ---- images per grid step: whole batch in one step when small ----------
    img_bytes = H * W * C * 4
    Nb = max(1, min(N, (512 * 1024) // max(img_bytes, 1)))
    while N % Nb:
        Nb -= 1
    G = N // Nb
    ROWS = Nb * (H + 2)                   # padded scratch rows per step
    R = ROWS - 2                          # rows fed to the banded matmuls
    PIN, POUT = (W + 2) * Cin, (W + 2) * Cout
    LIN, LOUT = W * Cin, W * Cout

    cparams = pltpu.CompilerParams(
        dimension_semantics=("parallel",),
        vmem_limit_bytes=64 * 1024 * 1024,
    )

    # ---- shared kernel helpers (traced inline) ------------------------------
    def _zero_halo(pad_scr, pin, cin):
        # Clear only the halo strips (interior is fully overwritten below).
        # Done every step so it is correct even when grid steps are spread
        # across TensorCores (each core has its own scratch).
        for n in range(Nb):
            r0 = n * (H + 2)
            pad_scr[pl.ds(r0, 1), :] = jnp.zeros((1, pin), jnp.float32)
            pad_scr[pl.ds(r0 + H + 1, 1), :] = jnp.zeros((1, pin), jnp.float32)
        pad_scr[:, pl.ds(0, cin)] = jnp.zeros((ROWS, cin), jnp.float32)
        pad_scr[:, pl.ds((W + 1) * cin, cin)] = jnp.zeros((ROWS, cin), jnp.float32)

    def _banded_conv(pad_scr, band_ref):
        # 3x3 conv == 3 MXU matmuls over all padded rows; the 2 junk rows
        # between consecutive images are discarded by _store_and_stats.
        acc = jnp.dot(pad_scr[pl.ds(0, R), :], band_ref[0],
                      preferred_element_type=jnp.float32,
                      precision=jax.lax.Precision.HIGHEST)
        for kh in (1, 2):
            acc = acc + jnp.dot(pad_scr[pl.ds(kh, R), :], band_ref[kh],
                                preferred_element_type=jnp.float32,
                                precision=jax.lax.Precision.HIGHEST)
        return acc                                            # (R, W*Cout)

    def _store_and_stats(h, h_ref, st_ref):
        s = jnp.zeros((1, LOUT), jnp.float32)
        ss = jnp.zeros((1, LOUT), jnp.float32)
        for n in range(Nb):
            hn = h[n * (H + 2):n * (H + 2) + H, :]            # drop inter-image junk rows
            h_ref[n] = hn
            s = s + jnp.sum(hn, axis=0, keepdims=True)
            ss = ss + jnp.sum(hn * hn, axis=0, keepdims=True)
        st_ref[0:1, :] = s                                    # per-step sum
        st_ref[1:2, :] = ss                                   # per-step sum of squares

    # ----------------- stage 1: conv1 -> prelu1 (+ bn1 partial stats) --------
    def stage1_kernel(x_ref, band_ref, a_ref, h_ref, st_ref, pad_scr):
        _zero_halo(pad_scr, PIN, Cin)
        for n in range(Nb):
            pad_scr[pl.ds(n * (H + 2) + 1, H), pl.ds(Cin, LIN)] = x_ref[n]
        acc = _banded_conv(pad_scr, band_ref)
        slope = a_ref[...]
        h = jnp.where(acc >= 0, acc, slope * acc)             # PReLU1
        _store_and_stats(h, h_ref, st_ref)

    hpre1, stats1 = pl.pallas_call(
        stage1_kernel,
        grid=(G,),
        in_specs=[
            pl.BlockSpec((Nb, H, LIN), lambda g: (g, 0, 0)),
            pl.BlockSpec((3, PIN, LOUT), lambda g: (0, 0, 0)),   # resident banded weights
            pl.BlockSpec((1, LOUT), lambda g: (0, 0)),           # resident PReLU1 slope
        ],
        out_specs=(
            pl.BlockSpec((Nb, H, LOUT), lambda g: (g, 0, 0)),
            pl.BlockSpec((None, 2, LOUT), lambda g: (g, 0, 0)),
        ),
        out_shape=(
            jax.ShapeDtypeStruct((N, H, LOUT), jnp.float32),
            jax.ShapeDtypeStruct((G, 2, LOUT), jnp.float32),
        ),
        scratch_shapes=[pltpu.VMEM((ROWS, PIN), jnp.float32)],
        compiler_params=cparams,
    )(x2d, band1, a1t)

    # tiny finalize: fold batch stats + gamma/beta into per-channel scale/shift
    cnt = float(N * H * W)

    def bn_affine(stats, gamma, beta):
        # stats: (G, 2, W*C), lane layout w*C + c.
        # NOTE: single-pass E[x^2]-E[x]^2 in f32 (clamped); fine for post-conv
        # activations near zero mean (matches the tolerance check below).
        st = jnp.sum(stats, axis=0).reshape(2, W, C).sum(axis=1)   # (2, C)
        mean = st[0] / cnt
        var = jnp.maximum(st[1] / cnt - mean * mean, 0.0)
        scale = gamma.astype(jnp.float32) / jnp.sqrt(var + EPS)
        shift = beta.astype(jnp.float32) - mean * scale
        return scale, shift

    scale1, shift1 = bn_affine(stats1, g1, b1)
    sc1t = jnp.tile(scale1.reshape(1, C), (1, W))
    sh1t = jnp.tile(shift1.reshape(1, C), (1, W))

    # ----------- stage 2: bn1 affine -> conv2 (+ bn2 partial stats) ----------
    def stage2_kernel(h_ref, band_ref, sc_ref, sh_ref, o_ref, st_ref, pad_scr):
        _zero_halo(pad_scr, POUT, Cout)
        sc, sh = sc_ref[...], sh_ref[...]
        # BN1 affine applied to the interior only; halo stays zero so conv2's
        # zero padding on bn1(prelu1(conv1(x))) is preserved.
        for n in range(Nb):
            pad_scr[pl.ds(n * (H + 2) + 1, H), pl.ds(Cout, LOUT)] = h_ref[n] * sc + sh
        acc = _banded_conv(pad_scr, band_ref)                  # conv2 output, pre-BN2
        _store_and_stats(acc, o_ref, st_ref)

    hpre2, stats2 = pl.pallas_call(
        stage2_kernel,
        grid=(G,),
        in_specs=[
            pl.BlockSpec((Nb, H, LOUT), lambda g: (g, 0, 0)),
            pl.BlockSpec((3, POUT, LOUT), lambda g: (0, 0, 0)),
            pl.BlockSpec((1, LOUT), lambda g: (0, 0)),
            pl.BlockSpec((1, LOUT), lambda g: (0, 0)),
        ],
        out_specs=(
            pl.BlockSpec((Nb, H, LOUT), lambda g: (g, 0, 0)),
            pl.BlockSpec((None, 2, LOUT), lambda g: (g, 0, 0)),
        ),
        out_shape=(
            jax.ShapeDtypeStruct((N, H, LOUT), jnp.float32),
            jax.ShapeDtypeStruct((G, 2, LOUT), jnp.float32),
        ),
        scratch_shapes=[pltpu.VMEM((ROWS, POUT), jnp.float32)],
        compiler_params=cparams,
    )(hpre1, band2, sc1t, sh1t)

    scale2, shift2 = bn_affine(stats2, g2, b2)

    # -------- stage 3: bn2 affine + residual add + prelu2 (>=128 lanes) ------
    T = N * H * W * C
    Lw = None
    for k in range(16, 0, -1):            # prefer lane width % 128 == 0 with >= 8 rows
        if T % (128 * k) == 0 and (128 * k) % C == 0 and T // (128 * k) >= 8:
            Lw = 128 * k
            break
    if Lw is None:
        for k in range(16, 0, -1):
            if T % (128 * k) == 0 and (128 * k) % C == 0:
                Lw = 128 * k
                break
    if Lw is None:
        Lw = LOUT                         # fallback: masked-store layout
    rows = T // Lw

    tm = rows
    for cand in (512, 256, 128, 64, 32, 16, 8):
        if rows % cand == 0:
            tm = cand
            break

    h2d = hpre2.reshape(rows, Lw)
    x2d_res = x_nhwc.reshape(rows, Lw)    # x.clone() identity residual (Cin == Cout)
    tile_l = lambda v: jnp.tile(v.reshape(1, C).astype(jnp.float32), (1, Lw // C))
    sc2t, sh2t, a2t = tile_l(scale2), tile_l(shift2), tile_l(a2)

    def epilogue_kernel(h_ref, x_ref, sc_ref, sh_ref, a_ref, y_ref):
        v = h_ref[...] * sc_ref[...] + sh_ref[...] + x_ref[...]
        y_ref[...] = jnp.where(v >= 0, v, a_ref[...] * v)     # PReLU2

    y2d = pl.pallas_call(
        epilogue_kernel,
        grid=(rows // tm,),
        in_specs=[
            pl.BlockSpec((tm, Lw), lambda i: (i, 0)),
            pl.BlockSpec((tm, Lw), lambda i: (i, 0)),
            pl.BlockSpec((1, Lw), lambda i: (0, 0)),
            pl.BlockSpec((1, Lw), lambda i: (0, 0)),
            pl.BlockSpec((1, Lw), lambda i: (0, 0)),
        ],
        out_specs=pl.BlockSpec((tm, Lw), lambda i: (i, 0)),
        out_shape=jax.ShapeDtypeStruct((rows, Lw), jnp.float32),
        compiler_params=cparams,
    )(h2d, x2d_res, sc2t, sh2t, a2t)

    return jnp.transpose(y2d.reshape(N, H, W, C), (0, 3, 1, 2))


# ----------------------------------------------------- pure-JAX reference ---
def reference_forward(x_nchw, params):
    w1, w2 = params["w1"], params["w2"]
    a1, a2 = params["a1"], params["a2"]
    g1, b1, g2, b2 = params["g1"], params["b1"], params["g2"], params["b2"]

    conv = lambda x, w: jax.lax.conv_general_dilated(
        x, w, window_strides=(1, 1), padding=((1, 1), (1, 1)),
        dimension_numbers=("NCHW", "OIHW", "NCHW"),
        precision=jax.lax.Precision.HIGHEST)
    prelu = lambda x, a: jnp.where(x >= 0, x, a.reshape(1, -1, 1, 1) * x)

    def bn(x, g, b):
        mean = jnp.mean(x, axis=(0, 2, 3), keepdims=True)
        var = jnp.mean((x - mean) ** 2, axis=(0, 2, 3), keepdims=True)
        return (x - mean) / jnp.sqrt(var + EPS) * g.reshape(1, -1, 1, 1) \
            + b.reshape(1, -1, 1, 1)

    x_res = x_nchw
    h1 = bn(prelu(conv(x_nchw, w1), a1), g1, b1)
    h = bn(conv(h1, w2), g2, b2)
    return prelu(h + x_res, a2)


# ------------------------------------------------------------------- main ---
if __name__ == "__main__":
    key = jax.random.PRNGKey(0)
    kx, k1, k2, k3, k4, k5, k6 = jax.random.split(key, 7)

    N, Cin, Cout, H, W, K = 2, 4, 4, 16, 16, 3
    x = jax.random.normal(kx, (N, Cin, H, W), jnp.float32)

    # kaiming_normal_(mode='fan_out', nonlinearity='leaky_relu'): std = sqrt(2/(Cout*K*K)).
    # init_weights() would set bn gammas to 1 (bn2.weight to 0) and betas to 0;
    # here the BN params are made non-trivial so the full conv2 path is
    # exercised numerically. PReLU slopes use the PyTorch default 0.25.
    std = float(np.sqrt(2.0 / (Cout * K * K)))
    params = dict(
        w1=jax.random.normal(k1, (Cout, Cin, K, K), jnp.float32) * std,
        w2=jax.random.normal(k2, (Cout, Cout, K, K), jnp.float32) * std,
        a1=jnp.full((Cout,), 0.25, jnp.float32),
        a2=jnp.full((Cout,), 0.25, jnp.float32),
        g1=1.0 + 0.1 * jax.random.normal(k3, (Cout,), jnp.float32),
        b1=0.1 * jax.random.normal(k4, (Cout,), jnp.float32),
        g2=1.0 + 0.1 * jax.random.normal(k5, (Cout,), jnp.float32),
        b2=0.1 * jax.random.normal(k6, (Cout,), jnp.float32),
    )

    y = jax.jit(residual_block_forward)(x, params)
    y = jax.block_until_ready(y)

    y_ref = reference_forward(x, params)
    err = float(np.max(np.abs(np.asarray(y) - np.asarray(y_ref))))
    assert np.allclose(np.asarray(y), np.asarray(y_ref), rtol=1e-3, atol=1e-4), err

    print("KERNEL_OK")
</pallas_src>

<mosaic_0001>
module attributes {stable_mosaic.version = 11 : i64} {
  func.func @stage1_kernel(%arg0: i32, %arg1: memref<2x16x64xf32, #tpu.memory_space<vmem>>, %arg2: memref<3x72x64xf32, #tpu.memory_space<vmem>>, %arg3: memref<1x64xf32, #tpu.memory_space<vmem>>, %arg4: memref<2x16x64xf32, #tpu.memory_space<vmem>>, %arg5: memref<1x2x64xf32, #tpu.memory_space<vmem>>, %arg6: memref<36x72xf32, #tpu.memory_space<vmem>>) attributes {dimension_semantics = [#tpu.dimension_semantics<parallel>], iteration_bounds = array<i64: 1>, scalar_prefetch = 0 : i64, scratch_operands = 1 : i64, tpu.core_type = #tpu.core_type<tc>, window_params = [{transform_indices = @transform_0, window_bounds = array<i64: 2, 16, 64>}, {pipeline_mode = #tpu.pipeline_mode<synchronous>, transform_indices = @transform_1, window_bounds = array<i64: 3, 72, 64>}, {pipeline_mode = #tpu.pipeline_mode<synchronous>, transform_indices = @transform_2, window_bounds = array<i64: 1, 64>}, {transform_indices = @transform_3, window_bounds = array<i64: 2, 16, 64>}, {transform_indices = @transform_4, window_bounds = array<i64: 1, 2, 64>}]} {
    %cst = arith.constant 0.000000e+00 : f32
    %0 = vector.broadcast %cst : f32 to vector<1x72xf32>
    %c0 = arith.constant 0 : index
    %c0_0 = arith.constant 0 : index
    %1 = vector.load %arg6[%c0, %c0_0] : memref<36x72xf32, #tpu.memory_space<vmem>>, vector<1x72xf32>
    tpu.vector_store %arg6[%c0, %c0_0], %0 {strides = array<i32>} : memref<36x72xf32, #tpu.memory_space<vmem>>, vector<1x72xf32>,
    %cst_1 = arith.constant 0.000000e+00 : f32
    %2 = vector.broadcast %cst_1 : f32 to vector<1x72xf32>
    %c17 = arith.constant 17 : index
    %c0_2 = arith.constant 0 : index
    %3 = vector.load %arg6[%c17, %c0_2] : memref<36x72xf32, #tpu.memory_space<vmem>>, vector<1x72xf32>
    tpu.vector_store %arg6[%c17, %c0_2], %2 {strides = array<i32>} : memref<36x72xf32, #tpu.memory_space<vmem>>, vector<1x72xf32>,
    %cst_3 = arith.constant 0.000000e+00 : f32
    %4 = vector.broadcast %cst_3 : f32 to vector<1x72xf32>
    %c18 = arith.constant 18 : index
    %c0_4 = arith.constant 0 : index
    %5 = vector.load %arg6[%c18, %c0_4] : memref<36x72xf32, #tpu.memory_space<vmem>>, vector<1x72xf32>
    tpu.vector_store %arg6[%c18, %c0_4], %4 {strides = array<i32>} : memref<36x72xf32, #tpu.memory_space<vmem>>, vector<1x72xf32>,
    %cst_5 = arith.constant 0.000000e+00 : f32
    %6 = vector.broadcast %cst_5 : f32 to vector<1x72xf32>
    %c35 = arith.constant 35 : index
    %c0_6 = arith.constant 0 : index
    %7 = vector.load %arg6[%c35, %c0_6] : memref<36x72xf32, #tpu.memory_space<vmem>>, vector<1x72xf32>
    tpu.vector_store %arg6[%c35, %c0_6], %6 {strides = array<i32>} : memref<36x72xf32, #tpu.memory_space<vmem>>, vector<1x72xf32>,
    %cst_7 = arith.constant 0.000000e+00 : f32
    %8 = vector.broadcast %cst_7 : f32 to vector<36x4xf32>
    %c0_8 = arith.constant 0 : index
    %c0_9 = arith.constant 0 : index
    %9 = vector.load %arg6[%c0_8, %c0_9] : memref<36x72xf32, #tpu.memory_space<vmem>>, vector<36x4xf32>
    tpu.vector_store %arg6[%c0_8, %c0_9], %8 {strides = array<i32>} : memref<36x72xf32, #tpu.memory_space<vmem>>, vector<36x4xf32>,
    %cst_10 = arith.constant 0.000000e+00 : f32
    %10 = vector.broadcast %cst_10 : f32 to vector<36x4xf32>
    %c0_11 = arith.constant 0 : index
    %c68 = arith.constant 68 : index
    %11 = vector.load %arg6[%c0_11, %c68] : memref<36x72xf32, #tpu.memory_space<vmem>>, vector<36x4xf32>
    tpu.vector_store %arg6[%c0_11, %c68], %10 {strides = array<i32>} : memref<36x72xf32, #tpu.memory_space<vmem>>, vector<36x4xf32>,
    %c0_12 = arith.constant 0 : index
    %c0_13 = arith.constant 0 : index
    %c0_14 = arith.constant 0 : index
    %12 = vector.load %arg1[%c0_12, %c0_13, %c0_14] : memref<2x16x64xf32, #tpu.memory_space<vmem>>, vector<1x16x64xf32>
    %13 = vector.shape_cast %12 : vector<1x16x64xf32> to vector<16x64xf32>
    %c1 = arith.constant 1 : index
    %c4 = arith.constant 4 : index
    %14 = vector.load %arg6[%c1, %c4] : memref<36x72xf32, #tpu.memory_space<vmem>>, vector<16x64xf32>
    tpu.vector_store %arg6[%c1, %c4], %13 {strides = array<i32>} : memref<36x72xf32, #tpu.memory_space<vmem>>, vector<16x64xf32>,
    %c1_15 = arith.constant 1 : index
    %c0_16 = arith.constant 0 : index
    %c0_17 = arith.constant 0 : index
    %15 = vector.load %arg1[%c1_15, %c0_16, %c0_17] : memref<2x16x64xf32, #tpu.memory_space<vmem>>, vector<1x16x64xf32>
    %16 = vector.shape_cast %15 : vector<1x16x64xf32> to vector<16x64xf32>
    %c19 = arith.constant 19 : index
    %c4_18 = arith.constant 4 : index
    %17 = vector.load %arg6[%c19, %c4_18] : memref<36x72xf32, #tpu.memory_space<vmem>>, vector<16x64xf32>
    tpu.vector_store %arg6[%c19, %c4_18], %16 {strides = array<i32>} : memref<36x72xf32, #tpu.memory_space<vmem>>, vector<16x64xf32>,
    %c0_19 = arith.constant 0 : index
    %c0_20 = arith.constant 0 : index
    %18 = vector.load %arg6[%c0_19, %c0_20] : memref<36x72xf32, #tpu.memory_space<vmem>>, vector<34x72xf32>
    %c0_21 = arith.constant 0 : index
    %c0_22 = arith.constant 0 : index
    %c0_23 = arith.constant 0 : index
    %19 = vector.load %arg2[%c0_21, %c0_22, %c0_23] : memref<3x72x64xf32, #tpu.memory_space<vmem>>, vector<1x72x64xf32>
    %20 = vector.shape_cast %19 : vector<1x72x64xf32> to vector<72x64xf32>
    %cst_24 = arith.constant dense<0.000000e+00> : vector<34x64xf32>
    %21 = tpu.matmul %18, %20, %cst_24 {dimension_numbers = #tpu.dot_dimension_numbers<[1], [0], [0], [1], [0, 0, 1, 1], [], []>, precision = #tpu.contract_precision<fp32>} : vector<34x72xf32>, vector<72x64xf32>, vector<34x64xf32> -> vector<34x64xf32>
    %c1_25 = arith.constant 1 : index
    %c0_26 = arith.constant 0 : index
    %22 = vector.load %arg6[%c1_25, %c0_26] : memref<36x72xf32, #tpu.memory_space<vmem>>, vector<34x72xf32>
    %c1_27 = arith.constant 1 : index
    %c0_28 = arith.constant 0 : index
    %c0_29 = arith.constant 0 : index
    %23 = vector.load %arg2[%c1_27, %c0_28, %c0_29] : memref<3x72x64xf32, #tpu.memory_space<vmem>>, vector<1x72x64xf32>
    %24 = vector.shape_cast %23 : vector<1x72x64xf32> to vector<72x64xf32>
    %cst_30 = arith.constant dense<0.000000e+00> : vector<34x64xf32>
    %25 = tpu.matmul %22, %24, %cst_30 {dimension_numbers = #tpu.dot_dimension_numbers<[1], [0], [0], [1], [0, 0, 1, 1], [], []>, precision = #tpu.contract_precision<fp32>} : vector<34x72xf32>, vector<72x64xf32>, vector<34x64xf32> -> vector<34x64xf32>
    %26 = arith.addf %21, %25 : vector<34x64xf32>
    %c2 = arith.constant 2 : index
    %c0_31 = arith.constant 0 : index
    %27 = vector.load %arg6[%c2, %c0_31] : memref<36x72xf32, #tpu.memory_space<vmem>>, vector<34x72xf32>
    %c2_32 = arith.constant 2 : index
    %c0_33 = arith.constant 0 : index
    %c0_34 = arith.constant 0 : index
    %28 = vector.load %arg2[%c2_32, %c0_33, %c0_34] : memref<3x72x64xf32, #tpu.memory_space<vmem>>, vector<1x72x64xf32>
    %29 = vector.shape_cast %28 : vector<1x72x64xf32> to vector<72x64xf32>
    %cst_35 = arith.constant dense<0.000000e+00> : vector<34x64xf32>
    %30 = tpu.matmul %27, %29, %cst_35 {dimension_numbers = #tpu.dot_dimension_numbers<[1], [0], [0], [1], [0, 0, 1, 1], [], []>, precision = #tpu.contract_precision<fp32>} : vector<34x72xf32>, vector<72x64xf32>, vector<34x64xf32> -> vector<34x64xf32>
    %31 = arith.addf %26, %30 : vector<34x64xf32>
    %c0_36 = arith.constant 0 : index
    %c0_37 = arith.constant 0 : index
    %32 = vector.load %arg3[%c0_36, %c0_37] : memref<1x64xf32, #tpu.memory_space<vmem>>, vector<1x64xf32>
    %cst_38 = arith.constant 0.000000e+00 : f32
    %33 = vector.broadcast %cst_38 : f32 to vector<34x64xf32>
    %34 = arith.cmpf oge, %31, %33 : vector<34x64xf32>
    %35 = vector.broadcast %32 : vector<1x64xf32> to vector<34x64xf32>
    %36 = arith.mulf %35, %31 : vector<34x64xf32>
    %37 = arith.select %34, %31, %36 : vector<34x64xi1>, vector<34x64xf32>
    %cst_39 = arith.constant 0.000000e+00 : f32
    %38 = vector.broadcast %cst_39 : f32 to vector<1x64xf32>
    %cst_40 = arith.constant 0.000000e+00 : f32
    %39 = vector.broadcast %cst_40 : f32 to vector<1x64xf32>
    %40 = vector.extract_strided_slice %37 {offsets = [0, 0], sizes = [16, 64], strides = [1, 1]} : vector<34x64xf32> to vector<16x64xf32>
    %c0_41 = arith.constant 0 : index
    %c0_42 = arith.constant 0 : index
    %c0_43 = arith.constant 0 : index
    %41 = vector.load %arg4[%c0_41, %c0_42, %c0_43] : memref<2x16x64xf32, #tpu.memory_space<vmem>>, vector<1x16x64xf32>
    %42 = vector.shape_cast %41 : vector<1x16x64xf32> to vector<16x64xf32>
    %43 = vector.shape_cast %40 : vector<16x64xf32> to vector<1x16x64xf32>
    tpu.vector_store %arg4[%c0_41, %c0_42, %c0_43], %43 {strides = array<i32>} : memref<2x16x64xf32, #tpu.memory_space<vmem>>, vector<1x16x64xf32>,
    %cst_44 = arith.constant dense<0.000000e+00> : vector<64xf32>
    %44 = vector.multi_reduction <add>, %40, %cst_44 [0] : vector<16x64xf32> to vector<64xf32>
    %45 = vector.shape_cast %44 : vector<64xf32> to vector<1x64xf32>
    %46 = arith.addf %38, %45 : vector<1x64xf32>
    %47 = arith.mulf %40, %40 : vector<16x64xf32>
    %cst_45 = arith.constant dense<0.000000e+00> : vector<64xf32>
    %48 = vector.multi_reduction <add>, %47, %cst_45 [0] : vector<16x64xf32> to vector<64xf32>
    %49 = vector.shape_cast %48 : vector<64xf32> to vector<1x64xf32>
    %50 = arith.addf %39, %49 : vector<1x64xf32>
    %51 = vector.extract_strided_slice %37 {offsets = [18, 0], sizes = [16, 64], strides = [1, 1]} : vector<34x64xf32> to vector<16x64xf32>
    %c1_46 = arith.constant 1 : index
    %c0_47 = arith.constant 0 : index
    %c0_48 = arith.constant 0 : index
    %52 = vector.load %arg4[%c1_46, %c0_47, %c0_48] : memref<2x16x64xf32, #tpu.memory_space<vmem>>, vector<1x16x64xf32>
    %53 = vector.shape_cast %52 : vector<1x16x64xf32> to vector<16x64xf32>
    %54 = vector.shape_cast %51 : vector<16x64xf32> to vector<1x16x64xf32>
    tpu.vector_store %arg4[%c1_46, %c0_47, %c0_48], %54 {strides = array<i32>} : memref<2x16x64xf32, #tpu.memory_space<vmem>>, vector<1x16x64xf32>,
    %cst_49 = arith.constant dense<0.000000e+00> : vector<64xf32>
    %55 = vector.multi_reduction <add>, %51, %cst_49 [0] : vector<16x64xf32> to vector<64xf32>
    %56 = vector.shape_cast %55 : vector<64xf32> to vector<1x64xf32>
    %57 = arith.addf %46, %56 : vector<1x64xf32>
    %58 = arith.mulf %51, %51 : vector<16x64xf32>
    %cst_50 = arith.constant dense<0.000000e+00> : vector<64xf32>
    %59 = vector.multi_reduction <add>, %58, %cst_50 [0] : vector<16x64xf32> to vector<64xf32>
    %60 = vector.shape_cast %59 : vector<64xf32> to vector<1x64xf32>
    %61 = arith.addf %50, %60 : vector<1x64xf32>
    %c0_51 = arith.constant 0 : index
    %c0_52 = arith.constant 0 : index
    %c0_53 = arith.constant 0 : index
    %62 = vector.load %arg5[%c0_51, %c0_52, %c0_53] : memref<1x2x64xf32, #tpu.memory_space<vmem>>, vector<1x1x64xf32>
    %63 = vector.shape_cast %62 : vector<1x1x64xf32> to vector<1x64xf32>
    %64 = vector.shape_cast %57 : vector<1x64xf32> to vector<1x1x64xf32>
    tpu.vector_store %arg5[%c0_51, %c0_52, %c0_53], %64 {strides = array<i32>} : memref<1x2x64xf32, #tpu.memory_space<vmem>>, vector<1x1x64xf32>,
    %c0_54 = arith.constant 0 : index
    %c1_55 = arith.constant 1 : index
    %c0_56 = arith.constant 0 : index
    %65 = vector.load %arg5[%c0_54, %c1_55, %c0_56] : memref<1x2x64xf32, #tpu.memory_space<vmem>>, vector<1x1x64xf32>
    %66 = vector.shape_cast %65 : vector<1x1x64xf32> to vector<1x64xf32>
    %67 = vector.shape_cast %61 : vector<1x64xf32> to vector<1x1x64xf32>
    tpu.vector_store %arg5[%c0_54, %c1_55, %c0_56], %67 {strides = array<i32>} : memref<1x2x64xf32, #tpu.memory_space<vmem>>, vector<1x1x64xf32>,
    return
  }
  func.func @transform_0(%arg0: i32) -> (i32, i32, i32) {
    %c0_i32 = arith.constant 0 : i32
    %c0_i32_0 = arith.constant 0 : i32
    %c0_i32_1 = arith.constant 0 : i32
    return %arg0, %c0_i32, %c0_i32_0 : i32, i32, i32
  }
  func.func @transform_1(%arg0: i32) -> (i32, i32, i32) {
    %c0_i32 = arith.constant 0 : i32
    %c0_i32_0 = arith.constant 0 : i32
    %c0_i32_1 = arith.constant 0 : i32
    %c0_i32_2 = arith.constant 0 : i32
    return %c0_i32, %c0_i32_0, %c0_i32_1 : i32, i32, i32
  }
  func.func @transform_2(%arg0: i32) -> (i32, i32) {
    %c0_i32 = arith.constant 0 : i32
    %c0_i32_0 = arith.constant 0 : i32
    %c0_i32_1 = arith.constant 0 : i32
    return %c0_i32, %c0_i32_0 : i32, i32
  }
  func.func @transform_3(%arg0: i32) -> (i32, i32, i32) {
    %c0_i32 = arith.constant 0 : i32
    %c0_i32_0 = arith.constant 0 : i32
    %c0_i32_1 = arith.constant 0 : i32
    return %arg0, %c0_i32, %c0_i32_0 : i32, i32, i32
  }
  func.func @transform_4(%arg0: i32) -> (i32, i32, i32) {
    %c0_i32 = arith.constant 0 : i32
    %c0_i32_0 = arith.constant 0 : i32
    %c0_i32_1 = arith.constant 0 : i32
    return %arg0, %c0_i32, %c0_i32_0 : i32, i32, i32
  }
}

module attributes {stable_mosaic.version = 11 : i64} {
  func.func @stage2_kernel(%arg0: i32, %arg1: memref<2x16x64xf32, #tpu.memory_space<vmem>>, %arg2: memref<3x72x64xf32, #tpu.memory_space<vmem>>, %arg3: memref<1x64xf32, #tpu.memory_space<vmem>>, %arg4: memref<1x64xf32, #tpu.memory_space<vmem>>, %arg5: memref<2x16x64xf32, #tpu.memory_space<vmem>>, %arg6: memref<1x2x64xf32, #tpu.memory_space<vmem>>, %arg7: memref<36x72xf32, #tpu.memory_space<vmem>>) attributes {dimension_semantics = [#tpu.dimension_semantics<parallel>], iteration_bounds = array<i64: 1>, scalar_prefetch = 0 : i64, scratch_operands = 1 : i64, tpu.core_type = #tpu.core_type<tc>, window_params = [{transform_indices = @transform_0, window_bounds = array<i64: 2, 16, 64>}, {pipeline_mode = #tpu.pipeline_mode<synchronous>, transform_indices = @transform_1, window_bounds = array<i64: 3, 72, 64>}, {pipeline_mode = #tpu.pipeline_mode<synchronous>, transform_indices = @transform_2, window_bounds = array<i64: 1, 64>}, {pipeline_mode = #tpu.pipeline_mode<synchronous>, transform_indices = @transform_3, window_bounds = array<i64: 1, 64>}, {transform_indices = @transform_4, window_bounds = array<i64: 2, 16, 64>}, {transform_indices = @transform_5, window_bounds = array<i64: 1, 2, 64>}]} {
    %cst = arith.constant 0.000000e+00 : f32
    %0 = vector.broadcast %cst : f32 to vector<1x72xf32>
    %c0 = arith.constant 0 : index
    %c0_0 = arith.constant 0 : index
    %1 = vector.load %arg7[%c0, %c0_0] : memref<36x72xf32, #tpu.memory_space<vmem>>, vector<1x72xf32>
    tpu.vector_store %arg7[%c0, %c0_0], %0 {strides = array<i32>} : memref<36x72xf32, #tpu.memory_space<vmem>>, vector<1x72xf32>,
    %cst_1 = arith.constant 0.000000e+00 : f32
    %2 = vector.broadcast %cst_1 : f32 to vector<1x72xf32>
    %c17 = arith.constant 17 : index
    %c0_2 = arith.constant 0 : index
    %3 = vector.load %arg7[%c17, %c0_2] : memref<36x72xf32, #tpu.memory_space<vmem>>, vector<1x72xf32>
    tpu.vector_store %arg7[%c17, %c0_2], %2 {strides = array<i32>} : memref<36x72xf32, #tpu.memory_space<vmem>>, vector<1x72xf32>,
    %cst_3 = arith.constant 0.000000e+00 : f32
    %4 = vector.broadcast %cst_3 : f32 to vector<1x72xf32>
    %c18 = arith.constant 18 : index
    %c0_4 = arith.constant 0 : index
    %5 = vector.load %arg7[%c18, %c0_4] : memref<36x72xf32, #tpu.memory_space<vmem>>, vector<1x72xf32>
    tpu.vector_store %arg7[%c18, %c0_4], %4 {strides = array<i32>} : memref<36x72xf32, #tpu.memory_space<vmem>>, vector<1x72xf32>,
    %cst_5 = arith.constant 0.000000e+00 : f32
    %6 = vector.broadcast %cst_5 : f32 to vector<1x72xf32>
    %c35 = arith.constant 35 : index
    %c0_6 = arith.constant 0 : index
    %7 = vector.load %arg7[%c35, %c0_6] : memref<36x72xf32, #tpu.memory_space<vmem>>, vector<1x72xf32>
    tpu.vector_store %arg7[%c35, %c0_6], %6 {strides = array<i32>} : memref<36x72xf32, #tpu.memory_space<vmem>>, vector<1x72xf32>,
    %cst_7 = arith.constant 0.000000e+00 : f32
    %8 = vector.broadcast %cst_7 : f32 to vector<36x4xf32>
    %c0_8 = arith.constant 0 : index
    %c0_9 = arith.constant 0 : index
    %9 = vector.load %arg7[%c0_8, %c0_9] : memref<36x72xf32, #tpu.memory_space<vmem>>, vector<36x4xf32>
    tpu.vector_store %arg7[%c0_8, %c0_9], %8 {strides = array<i32>} : memref<36x72xf32, #tpu.memory_space<vmem>>, vector<36x4xf32>,
    %cst_10 = arith.constant 0.000000e+00 : f32
    %10 = vector.broadcast %cst_10 : f32 to vector<36x4xf32>
    %c0_11 = arith.constant 0 : index
    %c68 = arith.constant 68 : index
    %11 = vector.load %arg7[%c0_11, %c68] : memref<36x72xf32, #tpu.memory_space<vmem>>, vector<36x4xf32>
    tpu.vector_store %arg7[%c0_11, %c68], %10 {strides = array<i32>} : memref<36x72xf32, #tpu.memory_space<vmem>>, vector<36x4xf32>,
    %c0_12 = arith.constant 0 : index
    %c0_13 = arith.constant 0 : index
    %12 = vector.load %arg3[%c0_12, %c0_13] : memref<1x64xf32, #tpu.memory_space<vmem>>, vector<1x64xf32>
    %c0_14 = arith.constant 0 : index
    %c0_15 = arith.constant 0 : index
    %13 = vector.load %arg4[%c0_14, %c0_15] : memref<1x64xf32, #tpu.memory_space<vmem>>, vector<1x64xf32>
    %c0_16 = arith.constant 0 : index
    %c0_17 = arith.constant 0 : index
    %c0_18 = arith.constant 0 : index
    %14 = vector.load %arg1[%c0_16, %c0_17, %c0_18] : memref<2x16x64xf32, #tpu.memory_space<vmem>>, vector<1x16x64xf32>
    %15 = vector.shape_cast %14 : vector<1x16x64xf32> to vector<16x64xf32>
    %16 = vector.broadcast %12 : vector<1x64xf32> to vector<16x64xf32>
    %17 = arith.mulf %15, %16 : vector<16x64xf32>
    %18 = vector.broadcast %13 : vector<1x64xf32> to vector<16x64xf32>
    %19 = arith.addf %17, %18 : vector<16x64xf32>
    %c1 = arith.constant 1 : index
    %c4 = arith.constant 4 : index
    %20 = vector.load %arg7[%c1, %c4] : memref<36x72xf32, #tpu.memory_space<vmem>>, vector<16x64xf32>
    tpu.vector_store %arg7[%c1, %c4], %19 {strides = array<i32>} : memref<36x72xf32, #tpu.memory_space<vmem>>, vector<16x64xf32>,
    %c1_19 = arith.constant 1 : index
    %c0_20 = arith.constant 0 : index
    %c0_21 = arith.constant 0 : index
    %21 = vector.load %arg1[%c1_19, %c0_20, %c0_21] : memref<2x16x64xf32, #tpu.memory_space<vmem>>, vector<1x16x64xf32>
    %22 = vector.shape_cast %21 : vector<1x16x64xf32> to vector<16x64xf32>
    %23 = vector.broadcast %12 : vector<1x64xf32> to vector<16x64xf32>
    %24 = arith.mulf %22, %23 : vector<16x64xf32>
    %25 = vector.broadcast %13 : vector<1x64xf32> to vector<16x64xf32>
    %26 = arith.addf %24, %25 : vector<16x64xf32>
    %c19 = arith.constant 19 : index
    %c4_22 = arith.constant 4 : index
    %27 = vector.load %arg7[%c19, %c4_22] : memref<36x72xf32, #tpu.memory_space<vmem>>, vector<16x64xf32>
    tpu.vector_store %arg7[%c19, %c4_22], %26 {strides = array<i32>} : memref<36x72xf32, #tpu.memory_space<vmem>>, vector<16x64xf32>,
    %c0_23 = arith.constant 0 : index
    %c0_24 = arith.constant 0 : index
    %28 = vector.load %arg7[%c0_23, %c0_24] : memref<36x72xf32, #tpu.memory_space<vmem>>, vector<34x72xf32>
    %c0_25 = arith.constant 0 : index
    %c0_26 = arith.constant 0 : index
    %c0_27 = arith.constant 0 : index
    %29 = vector.load %arg2[%c0_25, %c0_26, %c0_27] : memref<3x72x64xf32, #tpu.memory_space<vmem>>, vector<1x72x64xf32>
    %30 = vector.shape_cast %29 : vector<1x72x64xf32> to vector<72x64xf32>
    %cst_28 = arith.constant dense<0.000000e+00> : vector<34x64xf32>
    %31 = tpu.matmul %28, %30, %cst_28 {dimension_numbers = #tpu.dot_dimension_numbers<[1], [0], [0], [1], [0, 0, 1, 1], [], []>, precision = #tpu.contract_precision<fp32>} : vector<34x72xf32>, vector<72x64xf32>, vector<34x64xf32> -> vector<34x64xf32>
    %c1_29 = arith.constant 1 : index
    %c0_30 = arith.constant 0 : index
    %32 = vector.load %arg7[%c1_29, %c0_30] : memref<36x72xf32, #tpu.memory_space<vmem>>, vector<34x72xf32>
    %c1_31 = arith.constant 1 : index
    %c0_32 = arith.constant 0 : index
    %c0_33 = arith.constant 0 : index
    %33 = vector.load %arg2[%c1_31, %c0_32, %c0_33] : memref<3x72x64xf32, #tpu.memory_space<vmem>>, vector<1x72x64xf32>
    %34 = vector.shape_cast %33 : vector<1x72x64xf32> to vector<72x64xf32>
    %cst_34 = arith.constant dense<0.000000e+00> : vector<34x64xf32>
    %35 = tpu.matmul %32, %34, %cst_34 {dimension_numbers = #tpu.dot_dimension_numbers<[1], [0], [0], [1], [0, 0, 1, 1], [], []>, precision = #tpu.contract_precision<fp32>} : vector<34x72xf32>, vector<72x64xf32>, vector<34x64xf32> -> vector<34x64xf32>
    %36 = arith.addf %31, %35 : vector<34x64xf32>
    %c2 = arith.constant 2 : index
    %c0_35 = arith.constant 0 : index
    %37 = vector.load %arg7[%c2, %c0_35] : memref<36x72xf32, #tpu.memory_space<vmem>>, vector<34x72xf32>
    %c2_36 = arith.constant 2 : index
    %c0_37 = arith.constant 0 : index
    %c0_38 = arith.constant 0 : index
    %38 = vector.load %arg2[%c2_36, %c0_37, %c0_38] : memref<3x72x64xf32, #tpu.memory_space<vmem>>, vector<1x72x64xf32>
    %39 = vector.shape_cast %38 : vector<1x72x64xf32> to vector<72x64xf32>
    %cst_39 = arith.constant dense<0.000000e+00> : vector<34x64xf32>
    %40 = tpu.matmul %37, %39, %cst_39 {dimension_numbers = #tpu.dot_dimension_numbers<[1], [0], [0], [1], [0, 0, 1, 1], [], []>, precision = #tpu.contract_precision<fp32>} : vector<34x72xf32>, vector<72x64xf32>, vector<34x64xf32> -> vector<34x64xf32>
    %41 = arith.addf %36, %40 : vector<34x64xf32>
    %cst_40 = arith.constant 0.000000e+00 : f32
    %42 = vector.broadcast %cst_40 : f32 to vector<1x64xf32>
    %cst_41 = arith.constant 0.000000e+00 : f32
    %43 = vector.broadcast %cst_41 : f32 to vector<1x64xf32>
    %44 = vector.extract_strided_slice %41 {offsets = [0, 0], sizes = [16, 64], strides = [1, 1]} : vector<34x64xf32> to vector<16x64xf32>
    %c0_42 = arith.constant 0 : index
    %c0_43 = arith.constant 0 : index
    %c0_44 = arith.constant 0 : index
    %45 = vector.load %arg5[%c0_42, %c0_43, %c0_44] : memref<2x16x64xf32, #tpu.memory_space<vmem>>, vector<1x16x64xf32>
    %46 = vector.shape_cast %45 : vector<1x16x64xf32> to vector<16x64xf32>
    %47 = vector.shape_cast %44 : vector<16x64xf32> to vector<1x16x64xf32>
    tpu.vector_store %arg5[%c0_42, %c0_43, %c0_44], %47 {strides = array<i32>} : memref<2x16x64xf32, #tpu.memory_space<vmem>>, vector<1x16x64xf32>,
    %cst_45 = arith.constant dense<0.000000e+00> : vector<64xf32>
    %48 = vector.multi_reduction <add>, %44, %cst_45 [0] : vector<16x64xf32> to vector<64xf32>
    %49 = vector.shape_cast %48 : vector<64xf32> to vector<1x64xf32>
    %50 = arith.addf %42, %49 : vector<1x64xf32>
    %51 = arith.mulf %44, %44 : vector<16x64xf32>
    %cst_46 = arith.constant dense<0.000000e+00> : vector<64xf32>
    %52 = vector.multi_reduction <add>, %51, %cst_46 [0] : vector<16x64xf32> to vector<64xf32>
    %53 = vector.shape_cast %52 : vector<64xf32> to vector<1x64xf32>
    %54 = arith.addf %43, %53 : vector<1x64xf32>
    %55 = vector.extract_strided_slice %41 {offsets = [18, 0], sizes = [16, 64], strides = [1, 1]} : vector<34x64xf32> to vector<16x64xf32>
    %c1_47 = arith.constant 1 : index
    %c0_48 = arith.constant 0 : index
    %c0_49 = arith.constant 0 : index
    %56 = vector.load %arg5[%c1_47, %c0_48, %c0_49] : memref<2x16x64xf32, #tpu.memory_space<vmem>>, vector<1x16x64xf32>
    %57 = vector.shape_cast %56 : vector<1x16x64xf32> to vector<16x64xf32>
    %58 = vector.shape_cast %55 : vector<16x64xf32> to vector<1x16x64xf32>
    tpu.vector_store %arg5[%c1_47, %c0_48, %c0_49], %58 {strides = array<i32>} : memref<2x16x64xf32, #tpu.memory_space<vmem>>, vector<1x16x64xf32>,
    %cst_50 = arith.constant dense<0.000000e+00> : vector<64xf32>
    %59 = vector.multi_reduction <add>, %55, %cst_50 [0] : vector<16x64xf32> to vector<64xf32>
    %60 = vector.shape_cast %59 : vector<64xf32> to vector<1x64xf32>
    %61 = arith.addf %50, %60 : vector<1x64xf32>
    %62 = arith.mulf %55, %55 : vector<16x64xf32>
    %cst_51 = arith.constant dense<0.000000e+00> : vector<64xf32>
    %63 = vector.multi_reduction <add>, %62, %cst_51 [0] : vector<16x64xf32> to vector<64xf32>
    %64 = vector.shape_cast %63 : vector<64xf32> to vector<1x64xf32>
    %65 = arith.addf %54, %64 : vector<1x64xf32>
    %c0_52 = arith.constant 0 : index
    %c0_53 = arith.constant 0 : index
    %c0_54 = arith.constant 0 : index
    %66 = vector.load %arg6[%c0_52, %c0_53, %c0_54] : memref<1x2x64xf32, #tpu.memory_space<vmem>>, vector<1x1x64xf32>
    %67 = vector.shape_cast %66 : vector<1x1x64xf32> to vector<1x64xf32>
    %68 = vector.shape_cast %61 : vector<1x64xf32> to vector<1x1x64xf32>
    tpu.vector_store %arg6[%c0_52, %c0_53, %c0_54], %68 {strides = array<i32>} : memref<1x2x64xf32, #tpu.memory_space<vmem>>, vector<1x1x64xf32>,
    %c0_55 = arith.constant 0 : index
    %c1_56 = arith.constant 1 : index
    %c0_57 = arith.constant 0 : index
    %69 = vector.load %arg6[%c0_55, %c1_56, %c0_57] : memref<1x2x64xf32, #tpu.memory_space<vmem>>, vector<1x1x64xf32>
    %70 = vector.shape_cast %69 : vector<1x1x64xf32> to vector<1x64xf32>
    %71 = vector.shape_cast %65 : vector<1x64xf32> to vector<1x1x64xf32>
    tpu.vector_store %arg6[%c0_55, %c1_56, %c0_57], %71 {strides = array<i32>} : memref<1x2x64xf32, #tpu.memory_space<vmem>>, vector<1x1x64xf32>,
    return
  }
  func.func @transform_0(%arg0: i32) -> (i32, i32, i32) {
    %c0_i32 = arith.constant 0 : i32
    %c0_i32_0 = arith.constant 0 : i32
    %c0_i32_1 = arith.constant 0 : i32
    return %arg0, %c0_i32, %c0_i32_0 : i32, i32, i32
  }
  func.func @transform_1(%arg0: i32) -> (i32, i32, i32) {
    %c0_i32 = arith.constant 0 : i32
    %c0_i32_0 = arith.constant 0 : i32
    %c0_i32_1 = arith.constant 0 : i32
    %c0_i32_2 = arith.constant 0 : i32
    return %c0_i32, %c0_i32_0, %c0_i32_1 : i32, i32, i32
  }
  func.func @transform_2(%arg0: i32) -> (i32, i32) {
    %c0_i32 = arith.constant 0 : i32
    %c0_i32_0 = arith.constant 0 : i32
    %c0_i32_1 = arith.constant 0 : i32
    return %c0_i32, %c0_i32_0 : i32, i32
  }
  func.func @transform_3(%arg0: i32) -> (i32, i32) {
    %c0_i32 = arith.constant 0 : i32
    %c0_i32_0 = arith.constant 0 : i32
    %c0_i32_1 = arith.constant 0 : i32
    return %c0_i32, %c0_i32_0 : i32, i32
  }
  func.func @transform_4(%arg0: i32) -> (i32, i32, i32) {
    %c0_i32 = arith.constant 0 : i32
    %c0_i32_0 = arith.constant 0 : i32
    %c0_i32_1 = arith.constant 0 : i32
    return %arg0, %c0_i32, %c0_i32_0 : i32, i32, i32
  }
  func.func @transform_5(%arg0: i32) -> (i32, i32, i32) {
    %c0_i32 = arith.constant 0 : i32
    %c0_i32_0 = arith.constant 0 : i32
    %c0_i32_1 = arith.constant 0 : i32
    return %arg0, %c0_i32, %c0_i32_0 : i32, i32, i32
  }
}

module attributes {stable_mosaic.version = 11 : i64} {
  func.func @epilogue_kernel(%arg0: i32, %arg1: memref<8x256xf32, #tpu.memory_space<vmem>>, %arg2: memref<8x256xf32, #tpu.memory_space<vmem>>, %arg3: memref<1x256xf32, #tpu.memory_space<vmem>>, %arg4: memref<1x256xf32, #tpu.memory_space<vmem>>, %arg5: memref<1x256xf32, #tpu.memory_space<vmem>>, %arg6: memref<8x256xf32, #tpu.memory_space<vmem>>) attributes {dimension_semantics = [#tpu.dimension_semantics<parallel>], iteration_bounds = array<i64: 1>, scalar_prefetch = 0 : i64, scratch_operands = 0 : i64, tpu.core_type = #tpu.core_type<tc>, window_params = [{transform_indices = @transform_0, window_bounds = array<i64: 8, 256>}, {transform_indices = @transform_1, window_bounds = array<i64: 8, 256>}, {pipeline_mode = #tpu.pipeline_mode<synchronous>, transform_indices = @transform_2, window_bounds = array<i64: 1, 256>}, {pipeline_mode = #tpu.pipeline_mode<synchronous>, transform_indices = @transform_3, window_bounds = array<i64: 1, 256>}, {pipeline_mode = #tpu.pipeline_mode<synchronous>, transform_indices = @transform_4, window_bounds = array<i64: 1, 256>}, {transform_indices = @transform_5, window_bounds = array<i64: 8, 256>}]} {
    %c0 = arith.constant 0 : index
    %c0_0 = arith.constant 0 : index
    %0 = vector.load %arg1[%c0, %c0_0] : memref<8x256xf32, #tpu.memory_space<vmem>>, vector<8x256xf32>
    %c0_1 = arith.constant 0 : index
    %c0_2 = arith.constant 0 : index
    %1 = vector.load %arg3[%c0_1, %c0_2] : memref<1x256xf32, #tpu.memory_space<vmem>>, vector<1x256xf32>
    %2 = vector.broadcast %1 : vector<1x256xf32> to vector<8x256xf32>
    %3 = arith.mulf %0, %2 : vector<8x256xf32>
    %c0_3 = arith.constant 0 : index
    %c0_4 = arith.constant 0 : index
    %4 = vector.load %arg4[%c0_3, %c0_4] : memref<1x256xf32, #tpu.memory_space<vmem>>, vector<1x256xf32>
    %5 = vector.broadcast %4 : vector<1x256xf32> to vector<8x256xf32>
    %6 = arith.addf %3, %5 : vector<8x256xf32>
    %c0_5 = arith.constant 0 : index
    %c0_6 = arith.constant 0 : index
    %7 = vector.load %arg2[%c0_5, %c0_6] : memref<8x256xf32, #tpu.memory_space<vmem>>, vector<8x256xf32>
    %8 = arith.addf %6, %7 : vector<8x256xf32>
    %cst = arith.constant 0.000000e+00 : f32
    %9 = vector.broadcast %cst : f32 to vector<8x256xf32>
    %10 = arith.cmpf oge, %8, %9 : vector<8x256xf32>
    %c0_7 = arith.constant 0 : index
    %c0_8 = arith.constant 0 : index
    %11 = vector.load %arg5[%c0_7, %c0_8] : memref<1x256xf32, #tpu.memory_space<vmem>>, vector<1x256xf32>
    %12 = vector.broadcast %11 : vector<1x256xf32> to vector<8x256xf32>
    %13 = arith.mulf %12, %8 : vector<8x256xf32>
    %14 = arith.select %10, %8, %13 : vector<8x256xi1>, vector<8x256xf32>
    %c0_9 = arith.constant 0 : index
    %c0_10 = arith.constant 0 : index
    %15 = vector.load %arg6[%c0_9, %c0_10] : memref<8x256xf32, #tpu.memory_space<vmem>>, vector<8x256xf32>
    tpu.vector_store %arg6[%c0_9, %c0_10], %14 {strides = array<i32>} : memref<8x256xf32, #tpu.memory_space<vmem>>, vector<8x256xf32>,
    return
  }
  func.func @transform_0(%arg0: i32) -> (i32, i32) {
    %c0_i32 = arith.constant 0 : i32
    %c0_i32_0 = arith.constant 0 : i32
    return %arg0, %c0_i32 : i32, i32
  }
  func.func @transform_1(%arg0: i32) -> (i32, i32) {
    %c0_i32 = arith.constant 0 : i32
    %c0_i32_0 = arith.constant 0 : i32
    return %arg0, %c0_i32 : i32, i32
  }
  func.func @transform_2(%arg0: i32) -> (i32, i32) {
    %c0_i32 = arith.constant 0 : i32
    %c0_i32_0 = arith.constant 0 : i32
    %c0_i32_1 = arith.constant 0 : i32
    return %c0_i32, %c0_i32_0 : i32, i32
  }
  func.func @transform_3(%arg0: i32) -> (i32, i32) {
    %c0_i32 = arith.constant 0 : i32
    %c0_i32_0 = arith.constant 0 : i32
    %c0_i32_1 = arith.constant 0 : i32
    return %c0_i32, %c0_i32_0 : i32, i32
  }
  func.func @transform_4(%arg0: i32) -> (i32, i32) {
    %c0_i32 = arith.constant 0 : i32
    %c0_i32_0 = arith.constant 0 : i32
    %c0_i32_1 = arith.constant 0 : i32
    return %c0_i32, %c0_i32_0 : i32, i32
  }
  func.func @transform_5(%arg0: i32) -> (i32, i32) {
    %c0_i32 = arith.constant 0 : i32
    %c0_i32_0 = arith.constant 0 : i32
    return %arg0, %c0_i32 : i32, i32
  }
}

</mosaic_0001>

<bundles_post_ra>
// kernel: residual_block_forward.4
= control target key start
LH: loop header
LB: loop body
LE: loop exit
PB: predicated region body
PF: predicated region fallthrough
CT: control target
= control target key end

     0   :  { %vm19_vm0 = vcmask 581632   ;;  %vm24_vm1 = vcmask 31744   ;;  %vm31_vm2 = vcmask 589344   ;;  %v3307_v3 = vmov 0.0   ;;  %s3309_s18 = smov 4   ;;  %s4504_s0 = inlined_call_operand.vmem [shape: f32[2,16,64], index: 0, kind: input, shape index: {}]   ;;  %s4505_s2 = inlined_call_operand.vmem [shape: f32[1,64], index: 2, kind: input, shape index: {}]   ;;  %s4506_s3 = inlined_call_operand.vmem [shape: f32[1,64], index: 3, kind: input, shape index: {}]   ;;  %s4507_s1 = inlined_call_operand.vmem [shape: f32[3,72,64], index: 1, kind: input, shape index: {}]   ;;  %s4508_s4 = inlined_call_operand.vmem [shape: f32[2,16,64], index: 4, kind: output, shape index: {0}]   ;;  %s4509_s5 = inlined_call_operand.vmem [shape: f32[1,2,64], index: 5, kind: output, shape index: {1}]  }
   0x1   :  { %v2433_v0 = vld [vmem:[%s4505_s2] ss:$0 sm:$0xff]  ;;  %v2435_v2 = vld [vmem:[%s4504_s0 + $0x10] sm:$0xff]  ;;  %2743 = vmatprep.subr.mxu1 %v3307_v3  ;;  %21 = vst.msk [vmem:[#allocation2 + $0x11] sm:$0x1] %vm19_vm0, %v3307_v3  ;;  %2710 = vmatprep.subr.mxu0 %v3307_v3  ;;  %v2436_v6 = vld [vmem:[%s4504_s0 + $0x18] sm:$0xff] }
   0x2   :  { %v2434_v1 = vld [vmem:[%s4506_s3] ss:$0 sm:$0xff]  ;;  %22 = vst.msk [vmem:[#allocation2 + $0x12] sm:$0x1] %vm19_vm0, %v3307_v3  ;;  %20 = vst.msk [vmem:[#allocation2] sm:$0x1] %vm19_vm0, %v3307_v3  ;;  %v72_v4 = vmul.f32 %v2435_v2, %v2433_v0  ;;  %v73_v9 = vmul.f32 %v2436_v6, %v2433_v0 }
   0x3   :  { %28 = vst.msk [vmem:[#allocation2 + $0x18] sm:$0xff] %vm24_vm1, %v3307_v3  ;;  %26 = vst.msk [vmem:[#allocation2 + $0x8] sm:$0xff] %vm24_vm1, %v3307_v3  ;;  %v40_v5 = vld [vmem:[%s4504_s0] sm:$0xff]  ;;  %v41_v7 = vld [vmem:[%s4504_s0 + $0x8] sm:$0xff]  ;;  %vm29_vm3 = vcmask 27648   ;;  %vm36_vm4 = vcmask 585248  }
   0x4   :  { %23 = vst.msk [vmem:[#allocation2 + $0x23] sm:$0x1] %vm19_vm0, %v3307_v3  ;;  %v48_v8 = vmul.f32 %v2433_v0, %v40_v5  ;;  %v49_v10 = vmul.f32 %v2433_v0, %v41_v7  ;;  %v2445_v11 = vld [vmem:[%s4507_s1 + $0x88] sm:$0xff]  ;;  %v2444_v12 = vld [vmem:[%s4507_s1 + $0x80] sm:$0xff]  ;;  %v2443_v13 = vld [vmem:[%s4507_s1 + $0x78] sm:$0xff]  ;;  %vm3308_vm5 = vmmov 0   ;;  %v74_v14 = vadd.f32 %v2434_v1, %v72_v4 }
   0x5   :  { %27 = vst.msk [vmem:[#allocation2 + $0x10] sm:$0xff] %vm24_vm1, %v3307_v3  ;;  %25 = vst.msk [vmem:[#allocation2] sm:$0xff] %vm24_vm1, %v3307_v3  ;;  %2761 = vmatprep.mubr.msk.f32.mxu1 %vm3308_vm5, %v3307_v3  ;;  %2728 = vmatprep.mubr.msk.f32.mxu0 %vm3308_vm5, %v3307_v3  ;;  %v3394_v15 = vand.u32 4294901760, %v2445_v11  ;;  %v3396_v16 = vand.u32 4294901760, %v2444_v12  ;;  %v3398_v17 = vand.u32 4294901760, %v2443_v13  ;;  %v2442_v18 = vld [vmem:[%s4507_s1 + $0x70] sm:$0xff]  ;;  %v75_v22 = vadd.f32 %v2434_v1, %v73_v9 }
   0x6   :  { %35 = vst.msk [vmem:[#allocation2 + $0x18] sm:$0xff] %vm31_vm2, %v3307_v3  ;;  %33 = vst.msk [vmem:[#allocation2 + $0x8] sm:$0xff] %vm31_vm2, %v3307_v3  ;;  %v2441_v19 = vld [vmem:[%s4507_s1 + $0x68] sm:$0xff]  ;;  %v2440_v20 = vld [vmem:[%s4507_s1 + $0x60] sm:$0xff]  ;;  %v56_v21 = vadd.f32 %v2434_v1, %v48_v8  ;;  %v57_v23 = vadd.f32 %v2434_v1, %v49_v10  ;;  %v3411_v24 = vand.u32 4294901760, %v2442_v18  ;;  %78 = vrot.lane.b32.xlu1 %v74_v14, %s3309_s18  ;;  %vm66_vm6 = vcmask 556064  }
   0x7   :  { %34 = vst.msk [vmem:[#allocation2 + $0x10] sm:$0xff] %vm31_vm2, %v3307_v3  ;;  %32 = vst.msk [vmem:[#allocation2] sm:$0xff] %vm31_vm2, %v3307_v3  ;;  %v2439_v25 = vld [vmem:[%s4507_s1 + $0x58] sm:$0xff]  ;;  %v2438_v26 = vld [vmem:[%s4507_s1 + $0x50] sm:$0xff]  ;;  %v3420_v27 = vsub.f32 %v2445_v11, %v3394_v15  ;;  %v3423_v28 = vsub.f32 %v2444_v12, %v3396_v16  ;;  %v3426_v29 = vsub.f32 %v2443_v13, %v3398_v17  ;;  %2711 = vmatpush3.msra.mxu0 %v3394_v15  ;;  %vm115_vm7 = vcmask 588800  }
   0x8   :  { %30 = vst.msk [vmem:[#allocation2 + $0x20] sm:$0xf] %vm29_vm3, %v3307_v3  ;;  %v3429_v30 = vand.u32 4294901760, %v2441_v19  ;;  %60 = vrot.lane.b32.xlu0 %v56_v21, %s3309_s18  ;;  %v3432_v31 = vsub.f32 %v2442_v18, %v3411_v24  ;;  %2712 = vmatprep.subr.mxu0 %v3307_v3  ;;  %v3435_v32 = vand.u32 4294901760, %v2440_v20  ;;  %v3437_v33 = vand.u32 4294901760, %v2439_v25  ;;  %v2437_v47 = vld [vmem:[%s4507_s1 + $0x48] sm:$0xff] }
   0x9   :  { %37 = vst.msk [vmem:[#allocation2 + $0x20] sm:$0xf] %vm36_vm4, %v3307_v3  ;;  %v3439_v34 = vand.u32 4294901760, %v2438_v26  ;;  %v272_v35 = vand.u32 4294901760, %v3420_v27  ;;  %v279_v36 = vand.u32 4294901760, %v3423_v28  ;;  %v286_v37 = vand.u32 4294901760, %v3426_v29  ;;  %2713 = vmatpush3.msra.mxu0 %v3396_v16 }
   0xa   :  { %v3445_v38 = vsub.f32 %v2441_v19, %v3429_v30  ;;  %v293_v39 = vand.u32 4294901760, %v3432_v31  ;;  %2714 = vmatprep.subr.mxu0 %v3307_v3  ;;  %v3451_v40 = vsub.f32 %v2440_v20, %v3435_v32  ;;  %v3454_v41 = vsub.f32 %v2439_v25, %v3437_v33  ;;  %80 = vrot.lane.b32.xlu1 %v75_v22, %s3309_s18 }
   0xb   :  { %v273_v42 = vsub.f32 %v3420_v27, %v272_v35  ;;  %v280_v43 = vsub.f32 %v3423_v28, %v279_v36  ;;  %v287_v44 = vsub.f32 %v3426_v29, %v286_v37  ;;  %2715 = vmatpush3.msra.mxu0 %v3398_v17  ;;  %v3469_v46 = vsub.f32 %v2438_v26, %v3439_v34 }
   0xc   :  { %v300_v45 = vand.u32 4294901760, %v3445_v38  ;;  %62 = vrot.lane.b32.xlu0 %v57_v23, %s3309_s18  ;;  %2716 = vmatprep.subr.mxu0 %v3307_v3  ;;  %v294_v50 = vsub.f32 %v3432_v31, %v293_v39  ;;  %v307_v51 = vand.u32 4294901760, %v3451_v40  ;;  %v314_v54 = vand.u32 4294901760, %v3454_v41 }
   0xd   :  { %v274_v48 = vand.u32 4294901760, %v273_v42  ;;  %v281_v49 = vand.u32 4294901760, %v280_v43  ;;  %2717 = vmatpush3.msra.mxu0 %v3411_v24  ;;  %v288_v52 = vand.u32 4294901760, %v287_v44  ;;  %v3485_v55 = vand.u32 4294901760, %v2437_v47 }
   0xe   :  { %2718 = vmatprep.subr.mxu0 %v3307_v3  ;;  %v301_v53 = vsub.f32 %v3445_v38, %v300_v45  ;;  %v295_v56 = vand.u32 4294901760, %v294_v50  ;;  %v308_v57 = vsub.f32 %v3451_v40, %v307_v51  ;;  %v321_v58 = vand.u32 4294901760, %v3469_v46 }
   0xf   :  { %2744 = vmatpush3.msra.mxu1 %v274_v48  ;;  %2719 = vmatpush3.msra.mxu0 %v3429_v30  ;;  %v3494_v59 = vsub.f32 %v2437_v47, %v3485_v55  ;;  %v315_v61 = vsub.f32 %v3454_v41, %v314_v54  ;;  %vm2347_vm8 = vcmask 523264   ;;  %vm2373_vm9 = vcmask 523266  }
  0x10   :  { %2745 = vmatprep.subr.mxu1 %v3307_v3  ;;  %2720 = vmatprep.subr.mxu0 %v3307_v3  ;;  %v302_v60 = vand.u32 4294901760, %v301_v53  ;;  %v309_v63 = vand.u32 4294901760, %v308_v57  ;;  %v322_v0 = vsub.f32 %v3469_v46, %v321_v58  ;;  %vm2381_vm10 = vcmask 1045504  }
  0x11   :  { %2746 = vmatpush3.msra.mxu1 %v281_v49  ;;  %2721 = vmatpush3.msra.mxu0 %v3435_v32  ;;  %v328_v62 = vand.u32 4294901760, %v3494_v59  ;;  %v316_v1 = vand.u32 4294901760, %v315_v61  ;;  %vm2376_vm11 = vcmask 517120   ;;  %vm2422_vm12 = vcmask 516096  }
  0x12   :  { %2747 = vmatprep.subr.mxu1 %v3307_v3  ;;  %2722 = vmatprep.subr.mxu0 %v3307_v3  ;;  %v323_v4 = vand.u32 4294901760, %v322_v0 }
  0x13   :  { %2748 = vmatpush3.msra.mxu1 %v288_v52  ;;  %2723 = vmatpush3.msra.mxu0 %v3437_v33  ;;  %v329_v2 = vsub.f32 %v3494_v59, %v328_v62 }
  0x14   :  { %2749 = vmatprep.subr.mxu1 %v3307_v3  ;;  %2724 = vmatprep.subr.mxu0 %v3307_v3 }
  0x15   :  { %2750 = vmatpush3.msra.mxu1 %v295_v56  ;;  %2725 = vmatpush3.msra.mxu0 %v3439_v34  ;;  %v330_v5 = vand.u32 4294901760, %v329_v2 }
  0x16   :  { %2751 = vmatprep.subr.mxu1 %v3307_v3  ;;  %2726 = vmatprep.subr.mxu0 %v3307_v3 }
  0x17   :  { %2752 = vmatpush3.msra.mxu1 %v302_v60  ;;  %2727 = vmatpush3.msra.mxu0 %v3485_v55 }
  0x18   :  { %2753 = vmatprep.subr.mxu1 %v3307_v3  ;;  %2776 = vmatprep.subr.mxu0 %v3307_v3 }
  0x19   :  { %2754 = vmatpush3.msra.mxu1 %v309_v63 }
  0x1a   :  { %2755 = vmatprep.subr.mxu1 %v3307_v3 }
  0x1b   :  { %2756 = vmatpush3.msra.mxu1 %v316_v1 }
  0x1c   :  { %2757 = vmatprep.subr.mxu1 %v3307_v3 }
  0x1d   :  { %2758 = vmatpush3.msra.mxu1 %v323_v4 }
  0x1e   :  { %2759 = vmatprep.subr.mxu1 %v3307_v3 }
  0x1f   :  { %2760 = vmatpush3.msra.mxu1 %v330_v5 }
  0x20   :  { %2809 = vmatprep.subr.mxu1 %v3307_v3 }
  0x78   :  { %v79_v6 = vpop.permute.xlu1 %78 }
  0x79   :  { %84 = vst.msk [vmem:[#allocation2 + $0x13] sm:$0xff] %vm66_vm6, %v79_v6 }
  0x7a   :  { %v61_v7 = vpop.permute.xlu0 %60 }
  0x7b   :  { %67 = vst.msk [vmem:[#allocation2 + $0x1] sm:$0xff] %vm66_vm6, %v61_v7 }
  0x7c   :  { %v81_v8 = vpop.permute.xlu1 %80 }
  0x7d   :  { %85 = vst.msk [vmem:[#allocation2 + $0x1b] sm:$0xff] %vm66_vm6, %v81_v8 }
  0x7e   :  { %v63_v9 = vpop.permute.xlu0 %62 }
  0x7f   :  { %68 = vst.msk [vmem:[#allocation2 + $0x9] sm:$0xff] %vm66_vm6, %v63_v9  ;;  %v98_v9 = vld [vmem:[%s4507_s1 + $0x38] sm:$0xff] }
  0x80   :  { %v102_v10 = vld [vmem:[#allocation2 + $0x11] sm:$0xff] }
  0x81   :  { %v123_v13 = vsel %vm115_vm7, %v102_v10, 0  ;;  %v94_v10 = vld [vmem:[%s4507_s1 + $0x18] sm:$0xff] }
  0x82   :  { %v100_v11 = vld [vmem:[#allocation2 + $0x1] sm:$0xff]  ;;  %v3530_v20 = vand.u32 4294901760, %v123_v13 }
  0x83   :  { %v117_v12 = vsel %vm115_vm7, %v100_v11, 0 }
  0x84   :  { %v3524_v14 = vand.u32 4294901760, %v117_v12  ;;  %v103_v21 = vld [vmem:[#allocation2 + $0x19] sm:$0xff]  ;;  %v3549_v44 = vsub.f32 %v123_v13, %v3530_v20  ;;  %v104_v47 = vld [vmem:[#allocation2 + $0x21] sm:$0x3] }
  0x85   :  { %v126_v26 = vsel %vm115_vm7, %v103_v21, 0  ;;  %v129_v56 = vsel %vm115_vm7, %v104_v47, 0 }
  0x86   :  { %2762 = vmatmul.mubr.f32.vlgmr.msra.gmra.mxu1 %v3524_v14  ;;  %v101_v18 = vld [vmem:[#allocation2 + $0x9] sm:$0xff]  ;;  %v3528_v19 = vsub.f32 %v117_v12, %v3524_v14  ;;  %v3556_v50 = vand.u32 4294901760, %v126_v26  ;;  %v227_v53 = vand.u32 4294901760, %v3549_v44  ;;  %v3574_v61 = vand.u32 4294901760, %v129_v56 }
  0x87   :  { %2764 = vmatprep.mubr.msk.f32.mxu1 %vm3308_vm5, %v3307_v3  ;;  %2810 = vmatpush3.msra.mxu1 %v3394_v15  ;;  %v120_v22 = vsel %vm115_vm7, %v101_v18, 0  ;;  %v93_v12 = vld [vmem:[%s4507_s1 + $0x10] sm:$0xff] }
  0x88   :  { %v3536_v23 = vand.u32 4294901760, %v120_v22  ;;  %2811 = vmatprep.subr.mxu1 %v3307_v3  ;;  %v207_v25 = vand.u32 4294901760, %v3528_v19  ;;  %v3569_v60 = vsub.f32 %v126_v26, %v3556_v50  ;;  %v228_v63 = vsub.f32 %v3549_v44, %v227_v53  ;;  %v91_v26 = vld [vmem:[%s4507_s1] sm:$0xff] }
  0x89   :  { %2812 = vmatpush3.msra.mxu1 %v3396_v16  ;;  %v3588_v1 = vsub.f32 %v129_v56, %v3574_v61  ;;  %v3755_v21 = vand.u32 4294901760, %v93_v12  ;;  %v3787_v47 = vand.u32 4294901760, %v91_v26 }
  0x8a   :  { %2765 = vmatmul.mubr.f32.gmra.mxu1 %v3536_v23  ;;  %2813 = vmatprep.subr.mxu1 %v3307_v3  ;;  %v208_v42 = vsub.f32 %v3528_v19, %v207_v25  ;;  %v3546_v43 = vsub.f32 %v120_v22, %v3536_v23  ;;  %v237_v0 = vand.u32 4294901760, %v3569_v60  ;;  %v229_v2 = vand.u32 4294901760, %v228_v63 }
  0x8b   :  { %2767 = vmatprep.mubr.msk.f32.mxu1 %vm3308_vm5, %v3307_v3  ;;  %2814 = vmatpush3.msra.mxu1 %v3398_v17  ;;  %v247_v5 = vand.u32 4294901760, %v3588_v1 }
  0x8c   :  { %v209_v48 = vand.u32 4294901760, %v208_v42  ;;  %2815 = vmatprep.subr.mxu1 %v3307_v3  ;;  %v217_v49 = vand.u32 4294901760, %v3546_v43  ;;  %v238_v4 = vsub.f32 %v3569_v60, %v237_v0 }
  0x8d   :  { %2816 = vmatpush3.msra.mxu1 %v3411_v24  ;;  %v248_v7 = vsub.f32 %v3588_v1, %v247_v5 }
  0x8e   :  { %2729 = vmatmul.mubr.f32.vlgmr.msra.gmra.mxu0 %v209_v48  ;;  %2768 = vmatmul.mubr.f32.gmra.mxu1 %v3530_v20  ;;  %v218_v52 = vsub.f32 %v3546_v43, %v217_v49  ;;  %v239_v6 = vand.u32 4294901760, %v238_v4 }
  0x8f   :  { %2777 = vmatpush3.msra.mxu0 %v3420_v27  ;;  %2817 = vmatprep.subr.mxu1 %v3307_v3  ;;  %v249_v8 = vand.u32 4294901760, %v248_v7  ;;  %v97_v27 = vld [vmem:[%s4507_s1 + $0x30] sm:$0xff] }
  0x90   :  { %2778 = vmatprep.subr.mxu0 %v3307_v3  ;;  %2731 = vmatprep.mubr.msk.f32.mxu0 %vm3308_vm5, %v3307_v3  ;;  %v219_v57 = vand.u32 4294901760, %v218_v52 }
  0x91   :  { %2770 = vmatprep.mubr.msk.f32.mxu1 %vm3308_vm5, %v3307_v3  ;;  %2779 = vmatpush3.msra.mxu0 %v3423_v28  ;;  %v3677_v28 = vand.u32 4294901760, %v97_v27 }
  0x92   :  { %2818 = vmatpush3.msra.mxu1 %v3429_v30  ;;  %2732 = vmatmul.mubr.f32.gmra.mxu0 %v219_v57 }
  0x93   :  { %2771 = vmatmul.mubr.f32.gmra.mxu1 %v3556_v50  ;;  %2780 = vmatprep.subr.mxu0 %v3307_v3 }
  0x94   :  { %2819 = vmatprep.subr.mxu1 %v3307_v3  ;;  %2781 = vmatpush3.msra.mxu0 %v3426_v29 }
  0x95   :  { %2820 = vmatpush3.msra.mxu1 %v3435_v32  ;;  %2782 = vmatprep.subr.mxu0 %v3307_v3 }
  0x96   :  { %2821 = vmatprep.subr.mxu1 %v3307_v3  ;;  %2734 = vmatprep.mubr.msk.f32.mxu0 %vm3308_vm5, %v3307_v3 }
  0x97   :  { %2773 = vmatprep.mubr.msk.f32.mxu1 %vm3308_vm5, %v3307_v3  ;;  %2783 = vmatpush3.msra.mxu0 %v3432_v31 }
  0x98   :  { %2822 = vmatpush3.msra.mxu1 %v3437_v33  ;;  %2735 = vmatmul.mubr.f32.gmra.mxu0 %v229_v2  ;;  %v87_v2 = vld [vmem:[#allocation2 + $0x8] sm:$0xff] }
  0x99   :  { %2774 = vmatmul.mubr.f32.gmra.mxu1 %v3574_v61  ;;  %2784 = vmatprep.subr.mxu0 %v3307_v3  ;;  %v857_v7 = vsel %vm115_vm7, %v87_v2, 0  ;;  %v2449_v2 = vld [vmem:[%s4507_s1 + $0xa8] sm:$0xff] }
  0x9a   :  { %2823 = vmatprep.subr.mxu1 %v3307_v3  ;;  %2785 = vmatpush3.msra.mxu0 %v3445_v38 }
  0x9b   :  { %2824 = vmatpush3.msra.mxu1 %v3439_v34  ;;  %2737 = vmatprep.mubr.msk.f32.mxu0 %vm3308_vm5, %v3307_v3 }
  0x9c   :  { %2825 = vmatprep.subr.mxu1 %v3307_v3  ;;  %2786 = vmatprep.subr.mxu0 %v3307_v3 }
  0x9d   :  { %2826 = vmatpush3.msra.mxu1 %v3485_v55  ;;  %2827 = vmatprep.mubr.msk.f32.mxu1 %vm3308_vm5, %v3307_v3 }
  0x9e   :  { %2738 = vmatmul.mubr.f32.gmra.mxu0 %v239_v6  ;;  %2828 = vmatmul.mubr.f32.vlgmr.msra.gmra.mxu1 %v207_v25 }
  0x9f   :  { %2787 = vmatpush3.msra.mxu0 %v3451_v40  ;;  %2875 = vmatprep.subr.mxu1 %v3307_v3  ;;  %v92_v40 = vld [vmem:[%s4507_s1 + $0x8] sm:$0xff] }
  0xa0   :  { %2788 = vmatprep.subr.mxu0 %v3307_v3  ;;  %2740 = vmatprep.mubr.msk.f32.mxu0 %vm3308_vm5, %v3307_v3 }
  0xa1   :  { %2789 = vmatpush3.msra.mxu0 %v3454_v41  ;;  %2830 = vmatprep.mubr.msk.f32.mxu1 %vm3308_vm5, %v3307_v3 }
  0xa2   :  { %2790 = vmatprep.subr.mxu0 %v3307_v3  ;;  %2876 = vmatpush3.msra.mxu1 %v3394_v15  ;;  %v99_v15 = vld [vmem:[%s4507_s1 + $0x40] sm:$0xff] }
  0xa3   :  { %2741 = vmatmul.mubr.f32.gmra.mxu0 %v249_v8  ;;  %2831 = vmatmul.mubr.f32.gmra.mxu1 %v217_v49  ;;  %v3810_v49 = vsub.f32 %v91_v26, %v3787_v47 }
  0xa4   :  { %2791 = vmatpush3.msra.mxu0 %v3469_v46  ;;  %2877 = vmatprep.subr.mxu1 %v3307_v3 }
  0xa5   :  { %2792 = vmatprep.subr.mxu0 %v3307_v3  ;;  %2878 = vmatpush3.msra.mxu1 %v3396_v16  ;;  %v3647_v16 = vand.u32 4294901760, %v99_v15  ;;  %v1065_v57 = vand.u32 4294901760, %v3810_v49 }
  0xa6   :  { %2793 = vmatpush3.msra.mxu0 %v3494_v59  ;;  %2879 = vmatprep.subr.mxu1 %v3307_v3 }
  0xa7   :  { %2794 = vmatprep.mubr.msk.f32.mxu0 %vm3308_vm5, %v3307_v3  ;;  %2833 = vmatprep.mubr.msk.f32.mxu1 %vm3308_vm5, %v3307_v3 }
  0xa8   :  { %2842 = vmatprep.subr.mxu0 %v3307_v3  ;;  %2880 = vmatpush3.msra.mxu1 %v3398_v17  ;;  %v3661_v17 = vand.u32 4294901760, %v98_v9 }
  0xa9   :  { %2795 = vmatmul.mubr.f32.vlgmr.msra.gmra.mxu0 %v3528_v19  ;;  %2834 = vmatmul.mubr.f32.gmra.mxu1 %v227_v53 }
  0xaa   :  { %2843 = vmatpush3.msra.mxu0 %v272_v35  ;;  %2881 = vmatprep.subr.mxu1 %v3307_v3  ;;  %v3685_v35 = vsub.f32 %v98_v9, %v3661_v17 }
  0xab   :  { %2882 = vmatpush3.msra.mxu1 %v3411_v24  ;;  %2844 = vmatprep.subr.mxu0 %v3307_v3  ;;  %v3669_v24 = vsub.f32 %v99_v15, %v3647_v16  ;;  %v88_v15 = vld [vmem:[#allocation2 + $0x10] sm:$0xff] }
  0xac   :  { %2883 = vmatprep.subr.mxu1 %v3307_v3  ;;  %2797 = vmatprep.mubr.msk.f32.mxu0 %vm3308_vm5, %v3307_v3  ;;  %v1016_v31 = vand.u32 4294901760, %v3685_v35 }
  0xad   :  { %2836 = vmatprep.mubr.msk.f32.mxu1 %vm3308_vm5, %v3307_v3  ;;  %2845 = vmatpush3.msra.mxu0 %v279_v36  ;;  %v1009_v29 = vand.u32 4294901760, %v3669_v24 }
  0xae   :  { %2884 = vmatpush3.msra.mxu1 %v3429_v30  ;;  %2798 = vmatmul.mubr.f32.gmra.mxu0 %v3546_v43  ;;  %v96_v30 = vld [vmem:[%s4507_s1 + $0x28] sm:$0xff]  ;;  %v3783_v43 = vsub.f32 %v93_v12, %v3755_v21 }
  0xaf   :  { %2837 = vmatmul.mubr.f32.gmra.mxu1 %v237_v0  ;;  %2846 = vmatprep.subr.mxu0 %v3307_v3  ;;  %v3695_v36 = vand.u32 4294901760, %v96_v30 }
  0xb0   :  { %2885 = vmatprep.subr.mxu1 %v3307_v3  ;;  %2847 = vmatpush3.msra.mxu0 %v286_v37  ;;  %v3703_v37 = vsub.f32 %v97_v27, %v3677_v28  ;;  %v1051_v59 = vand.u32 4294901760, %v3783_v43  ;;  %v860_v27 = vsel %vm115_vm7, %v88_v15, 0 }
  0xb1   :  { %2886 = vmatpush3.msra.mxu1 %v3435_v32  ;;  %2848 = vmatprep.subr.mxu0 %v3307_v3  ;;  %v95_v32 = vld [vmem:[%s4507_s1 + $0x20] sm:$0xff]  ;;  %v3724_v11 = vsub.f32 %v96_v30, %v3695_v36 }
  0xb2   :  { %2887 = vmatprep.subr.mxu1 %v3307_v3  ;;  %2800 = vmatprep.mubr.msk.f32.mxu0 %vm3308_vm5, %v3307_v3  ;;  %v1023_v38 = vand.u32 4294901760, %v3703_v37 }
  0xb3   :  { %2839 = vmatprep.mubr.msk.f32.mxu1 %vm3308_vm5, %v3307_v3  ;;  %2849 = vmatpush3.msra.mxu0 %v293_v39  ;;  %v3715_v39 = vand.u32 4294901760, %v95_v32  ;;  %v1030_v18 = vand.u32 4294901760, %v3724_v11 }
  0xb4   :  { %2888 = vmatpush3.msra.mxu1 %v3437_v33  ;;  %2801 = vmatmul.mubr.f32.gmra.mxu0 %v3549_v44  ;;  %v1010_v33 = vsub.f32 %v3669_v24, %v1009_v29  ;;  %v1024_v19 = vsub.f32 %v3703_v37, %v1023_v38 }
  0xb5   :  { %2840 = vmatmul.mubr.f32.gmra.mxu1 %v247_v5  ;;  %2850 = vmatprep.subr.mxu0 %v3307_v3  ;;  %v1031_v41 = vsub.f32 %v3724_v11, %v1030_v18 }
  0xb6   :  { %2889 = vmatprep.subr.mxu1 %v3307_v3  ;;  %2851 = vmatpush3.msra.mxu0 %v300_v45  ;;  %v3735_v45 = vand.u32 4294901760, %v94_v10  ;;  %v1011_v13 = vand.u32 4294901760, %v1010_v33  ;;  %v1025_v42 = vand.u32 4294901760, %v1024_v19 }
  0xb7   :  { %2890 = vmatpush3.msra.mxu1 %v3439_v34  ;;  %2803 = vmatprep.mubr.msk.f32.mxu0 %vm3308_vm5, %v3307_v3  ;;  %v1017_v34 = vsub.f32 %v3685_v35, %v1016_v31 }
  0xb8   :  { %2891 = vmatprep.subr.mxu1 %v3307_v3  ;;  %2852 = vmatprep.subr.mxu0 %v3307_v3  ;;  %v3765_v22 = vsub.f32 %v94_v10, %v3735_v45 }
  0xb9   :  { %2892 = vmatpush3.msra.mxu1 %v3485_v55  ;;  %2893 = vmatprep.mubr.msk.f32.mxu1 %vm3308_vm5, %v3307_v3  ;;  %v3743_v55 = vsub.f32 %v95_v32, %v3715_v39  ;;  %v89_v32 = vld [vmem:[#allocation2 + $0x18] sm:$0xff] }
  0xba   :  { %2804 = vmatmul.mubr.f32.gmra.mxu0 %v3569_v60  ;;  %2894 = vmatmul.mubr.f32.vlgmr.msra.gmra.mxu1 %v3524_v14  ;;  %v1044_v44 = vand.u32 4294901760, %v3765_v22  ;;  %v86_v60 = vld [vmem:[#allocation2] sm:$0xff] }
  0xbb   :  { %2853 = vmatpush3.msra.mxu0 %v307_v51  ;;  %2941 = vmatprep.subr.mxu1 %v3307_v3  ;;  %v1018_v51 = vand.u32 4294901760, %v1017_v34  ;;  %v1037_v25 = vand.u32 4294901760, %v3743_v55  ;;  %v863_v34 = vsel %vm115_vm7, %v89_v32, 0  ;;  %v2446_v32 = vld [vmem:[%s4507_s1 + $0x90] sm:$0xff] }
  0xbc   :  { %2854 = vmatprep.subr.mxu0 %v3307_v3  ;;  %2806 = vmatprep.mubr.msk.f32.mxu0 %vm3308_vm5, %v3307_v3 }
  0xbd   :  { %2855 = vmatpush3.msra.mxu0 %v314_v54  ;;  %2896 = vmatprep.mubr.msk.f32.mxu1 %vm3308_vm5, %v3307_v3  ;;  %v3777_v54 = vand.u32 4294901760, %v92_v40  ;;  %v1038_v46 = vsub.f32 %v3743_v55, %v1037_v25 }
  0xbe   :  { %2856 = vmatprep.subr.mxu0 %v3307_v3  ;;  %2942 = vmatpush3.msra.mxu1 %v1011_v13  ;;  %v90_v13 = vld [vmem:[#allocation2 + $0x20] sm:$0x3] }
  0xbf   :  { %2807 = vmatmul.mubr.f32.gmra.mxu0 %v3588_v1  ;;  %2897 = vmatmul.mubr.f32.gmra.mxu1 %v3536_v23  ;;  %v3800_v48 = vsub.f32 %v92_v40, %v3777_v54  ;;  %v1039_v52 = vand.u32 4294901760, %v1038_v46  ;;  %v854_v1 = vsel %vm115_vm7, %v86_v60, 0  ;;  %v3908_v40 = vand.u32 4294901760, %v863_v34 }
  0xc0   :  { %2857 = vmatpush3.msra.mxu0 %v321_v58  ;;  %2943 = vmatprep.subr.mxu1 %v3307_v3  ;;  %v1032_v58 = vand.u32 4294901760, %v1031_v41  ;;  %v3845_v5 = vand.u32 4294901760, %v854_v1  ;;  %v866_v26 = vsel %vm115_vm7, %v90_v13, 0 }
  0xc1   :  { %2858 = vmatprep.subr.mxu0 %v3307_v3  ;;  %2944 = vmatpush3.msra.mxu1 %v1018_v51  ;;  %v1058_v53 = vand.u32 4294901760, %v3800_v48  ;;  %v3926_v46 = vand.u32 4294901760, %v866_v26 }
  0xc2   :  { %2859 = vmatpush3.msra.mxu0 %v328_v62  ;;  %2945 = vmatprep.subr.mxu1 %v3307_v3  ;;  %v1045_v62 = vsub.f32 %v3765_v22, %v1044_v44  ;;  %v3856_v8 = vsub.f32 %v854_v1, %v3845_v5 }
  0xc3   :  { %2860 = vmatprep.mubr.msk.f32.mxu0 %vm3308_vm5, %v3307_v3  ;;  %2899 = vmatprep.mubr.msk.f32.mxu1 %vm3308_vm5, %v3307_v3  ;;  %v1059_v63 = vsub.f32 %v3800_v48, %v1058_v53 }
  0xc4   :  { %2908 = vmatprep.subr.mxu0 %v3307_v3  ;;  %2946 = vmatpush3.msra.mxu1 %v1025_v42  ;;  %v1046_v56 = vand.u32 4294901760, %v1045_v62  ;;  %v944_v9 = vand.u32 4294901760, %v3856_v8  ;;  %v3921_v42 = vsub.f32 %v863_v34, %v3908_v40 }
  0xc5   :  { %2861 = vmatmul.mubr.f32.vlgmr.msra.gmra.mxu0 %v3524_v14  ;;  %2900 = vmatmul.mubr.f32.gmra.mxu1 %v3530_v20  ;;  %v1052_v14 = vsub.f32 %v3783_v43, %v1051_v59  ;;  %v1060_v4 = vand.u32 4294901760, %v1059_v63 }
  0xc6   :  { %2909 = vmatpush3.msra.mxu0 %v3647_v16  ;;  %2947 = vmatprep.subr.mxu1 %v3307_v3  ;;  %v945_v33 = vsub.f32 %v3856_v8, %v944_v9  ;;  %v974_v62 = vand.u32 4294901760, %v3921_v42 }
  0xc7   :  { %2948 = vmatpush3.msra.mxu1 %v1032_v58  ;;  %2910 = vmatprep.subr.mxu0 %v3307_v3  ;;  %v1053_v0 = vand.u32 4294901760, %v1052_v14 }
  0xc8   :  { %2949 = vmatprep.subr.mxu1 %v3307_v3  ;;  %2863 = vmatprep.mubr.msk.f32.mxu0 %vm3308_vm5, %v3307_v3  ;;  %v946_v12 = vand.u32 4294901760, %v945_v33 }
  0xc9   :  { %2902 = vmatprep.mubr.msk.f32.mxu1 %vm3308_vm5, %v3307_v3  ;;  %2911 = vmatpush3.msra.mxu0 %v3661_v17 }
  0xca   :  { %2950 = vmatpush3.msra.mxu1 %v1039_v52  ;;  %2864 = vmatmul.mubr.f32.gmra.mxu0 %v3536_v23  ;;  %v1066_v23 = vsub.f32 %v3810_v49, %v1065_v57  ;;  %v3940_v52 = vsub.f32 %v866_v26, %v3926_v46 }
  0xcb   :  { %2903 = vmatmul.mubr.f32.gmra.mxu1 %v3556_v50  ;;  %2912 = vmatprep.subr.mxu0 %v3307_v3 }
  0xcc   :  { %2951 = vmatprep.subr.mxu1 %v3307_v3  ;;  %2913 = vmatpush3.msra.mxu0 %v3677_v28  ;;  %v1067_v6 = vand.u32 4294901760, %v1066_v23  ;;  %v984_v60 = vand.u32 4294901760, %v3940_v52  ;;  %v2453_v23 = vld [vmem:[%s4507_s1 + $0xc8] sm:$0xff] }
  0xcd   :  { %2952 = vmatpush3.msra.mxu1 %v1046_v56  ;;  %2914 = vmatprep.subr.mxu0 %v3307_v3  ;;  %v975_v56 = vsub.f32 %v3921_v42, %v974_v62 }
  0xce   :  { %2953 = vmatprep.subr.mxu1 %v3307_v3  ;;  %2866 = vmatprep.mubr.msk.f32.mxu0 %vm3308_vm5, %v3307_v3 }
  0xcf   :  { %2905 = vmatprep.mubr.msk.f32.mxu1 %vm3308_vm5, %v3307_v3  ;;  %2915 = vmatpush3.msra.mxu0 %v3695_v36  ;;  %v976_v63 = vand.u32 4294901760, %v975_v56 }
  0xd0   :  { %2954 = vmatpush3.msra.mxu1 %v1053_v0  ;;  %2867 = vmatmul.mubr.f32.gmra.mxu0 %v3530_v20  ;;  %v3860_v20 = vand.u32 4294901760, %v857_v7  ;;  %v985_v0 = vsub.f32 %v3940_v52, %v984_v60 }
  0xd1   :  { %2906 = vmatmul.mubr.f32.gmra.mxu1 %v3574_v61  ;;  %2916 = vmatprep.subr.mxu0 %v3307_v3 }
  0xd2   :  { %2955 = vmatprep.subr.mxu1 %v3307_v3  ;;  %2917 = vmatpush3.msra.mxu0 %v3715_v39  ;;  %v3874_v30 = vsub.f32 %v857_v7, %v3860_v20  ;;  %v986_v1 = vand.u32 4294901760, %v985_v0 }
  0xd3   :  { %2956 = vmatpush3.msra.mxu1 %v1060_v4  ;;  %2869 = vmatprep.mubr.msk.f32.mxu0 %vm3308_vm5, %v3307_v3 }
  0xd4   :  { %2957 = vmatprep.subr.mxu1 %v3307_v3  ;;  %2918 = vmatprep.subr.mxu0 %v3307_v3  ;;  %v954_v10 = vand.u32 4294901760, %v3874_v30 }
  0xd5   :  { %2958 = vmatpush3.msra.mxu1 %v1067_v6  ;;  %2959 = vmatprep.mubr.msk.f32.mxu1 %vm3308_vm5, %v3307_v3  ;;  %v2448_v6 = vld [vmem:[%s4507_s1 + $0xa0] sm:$0xff] }
  0xd6   :  { %2870 = vmatmul.mubr.f32.gmra.mxu0 %v3556_v50  ;;  %2960 = vmatmul.mubr.f32.vlgmr.msra.gmra.mxu1 %v3845_v5  ;;  %v3881_v50 = vand.u32 4294901760, %v860_v27  ;;  %v955_v19 = vsub.f32 %v3874_v30, %v954_v10 }
  0xd7   :  { %2919 = vmatpush3.msra.mxu0 %v3735_v45  ;;  %3007 = vmatprep.subr.mxu1 %v3307_v3 }
  0xd8   :  { %2920 = vmatprep.subr.mxu0 %v3307_v3  ;;  %2872 = vmatprep.mubr.msk.f32.mxu0 %vm3308_vm5, %v3307_v3  ;;  %v956_v41 = vand.u32 4294901760, %v955_v19 }
  0xd9   :  { %2921 = vmatpush3.msra.mxu0 %v3755_v21  ;;  %2962 = vmatprep.mubr.msk.f32.mxu1 %vm3308_vm5, %v3307_v3 }
  0xda   :  { %2922 = vmatprep.subr.mxu0 %v3307_v3  ;;  %3008 = vmatpush3.msra.mxu1 %v3647_v16 }
  0xdb   :  { %2873 = vmatmul.mubr.f32.gmra.mxu0 %v3574_v61  ;;  %2963 = vmatmul.mubr.f32.gmra.mxu1 %v3860_v20  ;;  %v3897_v61 = vsub.f32 %v860_v27, %v3881_v50 }
  0xdc   :  { %2923 = vmatpush3.msra.mxu0 %v3777_v54  ;;  %3009 = vmatprep.subr.mxu1 %v3307_v3 }
  0xdd   :  { %2924 = vmatprep.subr.mxu0 %v3307_v3  ;;  %3010 = vmatpush3.msra.mxu1 %v3661_v17  ;;  %v964_v51 = vand.u32 4294901760, %v3897_v61 }
  0xde   :  { %2925 = vmatpush3.msra.mxu0 %v3787_v47  ;;  %3011 = vmatprep.subr.mxu1 %v3307_v3 }
  0xdf   :  { %2926 = vmatprep.mubr.msk.f32.mxu0 %vm3308_vm5, %v3307_v3  ;;  %2965 = vmatprep.mubr.msk.f32.mxu1 %vm3308_vm5, %v3307_v3  ;;  %v965_v58 = vsub.f32 %v3897_v61, %v964_v51 }
  0xe0   :  { %2974 = vmatprep.subr.mxu0 %v3307_v3  ;;  %3012 = vmatpush3.msra.mxu1 %v3677_v28 }
  0xe1   :  { %2927 = vmatmul.mubr.f32.vlgmr.msra.gmra.mxu0 %v946_v12  ;;  %2966 = vmatmul.mubr.f32.gmra.mxu1 %v3881_v50  ;;  %v966_v14 = vand.u32 4294901760, %v965_v58 }
  0xe2   :  { %2975 = vmatpush3.msra.mxu0 %v3669_v24  ;;  %3013 = vmatprep.subr.mxu1 %v3307_v3  ;;  %v4017_v24 = vand.u32 4294901760, %v2453_v23 }
  0xe3   :  { %3014 = vmatpush3.msra.mxu1 %v3695_v36  ;;  %2976 = vmatprep.subr.mxu0 %v3307_v3 }
  0xe4   :  { %3015 = vmatprep.subr.mxu1 %v3307_v3  ;;  %2929 = vmatprep.mubr.msk.f32.mxu0 %vm3308_vm5, %v3307_v3 }
  0xe5   :  { %2968 = vmatprep.mubr.msk.f32.mxu1 %vm3308_vm5, %v3307_v3  ;;  %2977 = vmatpush3.msra.mxu0 %v3685_v35 }
  0xe6   :  { %3016 = vmatpush3.msra.mxu1 %v3715_v39  ;;  %2930 = vmatmul.mubr.f32.gmra.mxu0 %v956_v41 }
  0xe7   :  { %2969 = vmatmul.mubr.f32.gmra.mxu1 %v3908_v40  ;;  %2978 = vmatprep.subr.mxu0 %v3307_v3 }
  0xe8   :  { %3017 = vmatprep.subr.mxu1 %v3307_v3  ;;  %2979 = vmatpush3.msra.mxu0 %v3703_v37 }
  0xe9   :  { %3018 = vmatpush3.msra.mxu1 %v3735_v45  ;;  %2980 = vmatprep.subr.mxu0 %v3307_v3 }
  0xea   :  { %3019 = vmatprep.subr.mxu1 %v3307_v3  ;;  %2932 = vmatprep.mubr.msk.f32.mxu0 %vm3308_vm5, %v3307_v3 }
  0xeb   :  { %2971 = vmatprep.mubr.msk.f32.mxu1 %vm3308_vm5, %v3307_v3  ;;  %2981 = vmatpush3.msra.mxu0 %v3724_v11 }
  0xec   :  { %3020 = vmatpush3.msra.mxu1 %v3755_v21  ;;  %2933 = vmatmul.mubr.f32.gmra.mxu0 %v966_v14  ;;  %v1591_v14 = vld [vmem:[#allocation2 + $0xa] sm:$0xff] }
  0xed   :  { %2972 = vmatmul.mubr.f32.gmra.mxu1 %v3926_v46  ;;  %2982 = vmatprep.subr.mxu0 %v3307_v3  ;;  %v1609_v0 = vsel %vm115_vm7, %v1591_v14, 0 }
  0xee   :  { %3021 = vmatprep.subr.mxu1 %v3307_v3  ;;  %2983 = vmatpush3.msra.mxu0 %v3743_v55 }
  0xef   :  { %3022 = vmatpush3.msra.mxu1 %v3777_v54  ;;  %2935 = vmatprep.mubr.msk.f32.mxu0 %vm3308_vm5, %v3307_v3 }
  0xf0   :  { %3023 = vmatprep.subr.mxu1 %v3307_v3  ;;  %2984 = vmatprep.subr.mxu0 %v3307_v3 }
  0xf1   :  { %3024 = vmatpush3.msra.mxu1 %v3787_v47  ;;  %3025 = vmatprep.mubr.msk.f32.mxu1 %vm3308_vm5, %v3307_v3 }
  0xf2   :  { %2936 = vmatmul.mubr.f32.gmra.mxu0 %v976_v63  ;;  %3026 = vmatmul.mubr.f32.vlgmr.msra.gmra.mxu1 %v944_v9  ;;  %v4111_v9 = vand.u32 4294901760, %v2448_v6 }
  0xf3   :  { %2985 = vmatpush3.msra.mxu0 %v3765_v22  ;;  %3073 = vmatprep.subr.mxu1 %v3307_v3  ;;  %v2447_v22 = vld [vmem:[%s4507_s1 + $0x98] sm:$0xff] }
  0xf4   :  { %2986 = vmatprep.subr.mxu0 %v3307_v3  ;;  %2938 = vmatprep.mubr.msk.f32.mxu0 %vm3308_vm5, %v3307_v3 }
  0xf5   :  { %2987 = vmatpush3.msra.mxu0 %v3783_v43  ;;  %3028 = vmatprep.mubr.msk.f32.mxu1 %vm3308_vm5, %v3307_v3 }
  0xf6   :  { %2988 = vmatprep.subr.mxu0 %v3307_v3  ;;  %3074 = vmatpush3.msra.mxu1 %v3647_v16  ;;  %v2454_v16 = vld [vmem:[%s4507_s1 + $0xd0] sm:$0xff] }
  0xf7   :  { %2939 = vmatmul.mubr.f32.gmra.mxu0 %v986_v1  ;;  %3029 = vmatmul.mubr.f32.gmra.mxu1 %v954_v10  ;;  %v4139_v10 = vsub.f32 %v2448_v6, %v4111_v9 }
  0xf8   :  { %2989 = vmatpush3.msra.mxu0 %v3800_v48  ;;  %3075 = vmatprep.subr.mxu1 %v3307_v3 }
  0xf9   :  { %2990 = vmatprep.subr.mxu0 %v3307_v3  ;;  %3076 = vmatpush3.msra.mxu1 %v3661_v17  ;;  %v4003_v17 = vand.u32 4294901760, %v2454_v16 }
  0xfa   :  { %2991 = vmatpush3.msra.mxu0 %v3810_v49  ;;  %3077 = vmatprep.subr.mxu1 %v3307_v3  ;;  %v1803_v49 = vand.u32 4294901760, %v4139_v10 }
  0xfb   :  { %2992 = vmatprep.mubr.msk.f32.mxu0 %vm3308_vm5, %v3307_v3  ;;  %3031 = vmatprep.mubr.msk.f32.mxu1 %vm3308_vm5, %v3307_v3 }
  0xfc   :  { %3040 = vmatprep.subr.mxu0 %v3307_v3  ;;  %3078 = vmatpush3.msra.mxu1 %v3677_v28  ;;  %v2452_v28 = vld [vmem:[%s4507_s1 + $0xc0] sm:$0xff] }
  0xfd   :  { %2993 = vmatmul.mubr.f32.vlgmr.msra.gmra.mxu0 %v3856_v8  ;;  %3032 = vmatmul.mubr.f32.gmra.mxu1 %v964_v51  ;;  %v4033_v35 = vand.u32 4294901760, %v2452_v28 }
  0xfe   :  { %3041 = vmatpush3.msra.mxu0 %v1009_v29  ;;  %3079 = vmatprep.subr.mxu1 %v3307_v3  ;;  %v4025_v29 = vsub.f32 %v2454_v16, %v4003_v17  ;;  %v1592_v16 = vld [vmem:[#allocation2 + $0x12] sm:$0xff] }
  0xff   :  { %3080 = vmatpush3.msra.mxu1 %v3695_v36  ;;  %3042 = vmatprep.subr.mxu0 %v3307_v3  ;;  %v2451_v36 = vld [vmem:[%s4507_s1 + $0xb8] sm:$0xff] }
 0x100   :  { %3081 = vmatprep.subr.mxu1 %v3307_v3  ;;  %2995 = vmatprep.mubr.msk.f32.mxu0 %vm3308_vm5, %v3307_v3  ;;  %v1761_v37 = vand.u32 4294901760, %v4025_v29 }
 0x101   :  { %3034 = vmatprep.mubr.msk.f32.mxu1 %vm3308_vm5, %v3307_v3  ;;  %3043 = vmatpush3.msra.mxu0 %v1016_v31  ;;  %v4041_v31 = vsub.f32 %v2453_v23, %v4017_v24 }
 0x102   :  { %3082 = vmatpush3.msra.mxu1 %v3715_v39  ;;  %2996 = vmatmul.mubr.f32.gmra.mxu0 %v3874_v30  ;;  %v4051_v39 = vand.u32 4294901760, %v2451_v36 }
 0x103   :  { %3035 = vmatmul.mubr.f32.gmra.mxu1 %v974_v62  ;;  %3044 = vmatprep.subr.mxu0 %v3307_v3  ;;  %v1768_v11 = vand.u32 4294901760, %v4041_v31 }
 0x104   :  { %3083 = vmatprep.subr.mxu1 %v3307_v3  ;;  %3045 = vmatpush3.msra.mxu0 %v1023_v38  ;;  %v2450_v38 = vld [vmem:[%s4507_s1 + $0xb0] sm:$0xff]  ;;  %v4080_v4 = vsub.f32 %v2451_v36, %v4051_v39 }
 0x105   :  { %3084 = vmatpush3.msra.mxu1 %v3735_v45  ;;  %3046 = vmatprep.subr.mxu0 %v3307_v3  ;;  %v4059_v45 = vsub.f32 %v2452_v28, %v4033_v35  ;;  %v1612_v28 = vsel %vm115_vm7, %v1592_v16, 0 }
 0x106   :  { %3085 = vmatprep.subr.mxu1 %v3307_v3  ;;  %2998 = vmatprep.mubr.msk.f32.mxu0 %vm3308_vm5, %v3307_v3  ;;  %v1782_v8 = vand.u32 4294901760, %v4080_v4 }
 0x107   :  { %3037 = vmatprep.mubr.msk.f32.mxu1 %vm3308_vm5, %v3307_v3  ;;  %3047 = vmatpush3.msra.mxu0 %v1030_v18  ;;  %v1762_v18 = vsub.f32 %v4025_v29, %v1761_v37  ;;  %v1775_v55 = vand.u32 4294901760, %v4059_v45 }
 0x108   :  { %3086 = vmatpush3.msra.mxu1 %v3755_v21  ;;  %2999 = vmatmul.mubr.f32.gmra.mxu0 %v3897_v61  ;;  %v4071_v21 = vand.u32 4294901760, %v2450_v38  ;;  %v1783_v43 = vsub.f32 %v4080_v4, %v1782_v8  ;;  %v4143_v61 = vand.u32 4294901760, %v2446_v32 }
 0x109   :  { %3038 = vmatmul.mubr.f32.gmra.mxu1 %v984_v60  ;;  %3048 = vmatprep.subr.mxu0 %v3307_v3  ;;  %v1763_v7 = vand.u32 4294901760, %v1762_v18  ;;  %v1776_v15 = vsub.f32 %v4059_v45, %v1775_v55 }
 0x10a   :  { %3087 = vmatprep.subr.mxu1 %v3307_v3  ;;  %3049 = vmatpush3.msra.mxu0 %v1037_v25  ;;  %v1769_v25 = vsub.f32 %v4041_v31, %v1768_v11  ;;  %v4166_v13 = vsub.f32 %v2446_v32, %v4143_v61 }
 0x10b   :  { %3088 = vmatpush3.msra.mxu1 %v3777_v54  ;;  %3001 = vmatprep.mubr.msk.f32.mxu0 %vm3308_vm5, %v3307_v3  ;;  %v4091_v54 = vand.u32 4294901760, %v2449_v2  ;;  %v1777_v33 = vand.u32 4294901760, %v1776_v15 }
 0x10c   :  { %3089 = vmatprep.subr.mxu1 %v3307_v3  ;;  %3050 = vmatprep.subr.mxu0 %v3307_v3  ;;  %v1817_v41 = vand.u32 4294901760, %v4166_v13 }
 0x10d   :  { %3090 = vmatpush3.msra.mxu1 %v3787_v47  ;;  %3091 = vmatprep.mubr.msk.f32.mxu1 %vm3308_vm5, %v3307_v3  ;;  %v4099_v47 = vsub.f32 %v2450_v38, %v4071_v21  ;;  %v4121_v27 = vsub.f32 %v2449_v2, %v4091_v54  ;;  %v1593_v38 = vld [vmem:[#allocation2 + $0x1a] sm:$0xff] }
 0x10e   :  { %3002 = vmatmul.mubr.f32.gmra.mxu0 %v3921_v42  ;;  %3092 = vmatmul.mubr.f32.vlgmr.msra.gmra.mxu1 %v3845_v5  ;;  %v1590_v42 = vld [vmem:[#allocation2 + $0x2] sm:$0xff] }
 0x10f   :  { %3051 = vmatpush3.msra.mxu0 %v1044_v44  ;;  %3139 = vmatprep.subr.mxu1 %v3307_v3  ;;  %v1770_v44 = vand.u32 4294901760, %v1769_v25  ;;  %v1789_v30 = vand.u32 4294901760, %v4099_v47  ;;  %v1796_v34 = vand.u32 4294901760, %v4121_v27  ;;  %v1615_v25 = vsel %vm115_vm7, %v1593_v38, 0 }
 0x110   :  { %3052 = vmatprep.subr.mxu0 %v3307_v3  ;;  %3004 = vmatprep.mubr.msk.f32.mxu0 %vm3308_vm5, %v3307_v3 }
 0x111   :  { %3053 = vmatpush3.msra.mxu0 %v1051_v59  ;;  %3094 = vmatprep.mubr.msk.f32.mxu1 %vm3308_vm5, %v3307_v3  ;;  %v4133_v59 = vand.u32 4294901760, %v2447_v22  ;;  %v1790_v48 = vsub.f32 %v4099_v47, %v1789_v30 }
 0x112   :  { %3054 = vmatprep.subr.mxu0 %v3307_v3  ;;  %3140 = vmatpush3.msra.mxu1 %v1763_v7  ;;  %v1594_v7 = vld [vmem:[#allocation2 + $0x22] sm:$0x3] }
 0x113   :  { %3005 = vmatmul.mubr.f32.gmra.mxu0 %v3940_v52  ;;  %3095 = vmatmul.mubr.f32.gmra.mxu1 %v3860_v20  ;;  %v4156_v12 = vsub.f32 %v2447_v22, %v4133_v59  ;;  %v1791_v19 = vand.u32 4294901760, %v1790_v48  ;;  %v1606_v52 = vsel %vm115_vm7, %v1590_v42, 0  ;;  %v4264_v22 = vand.u32 4294901760, %v1615_v25 }
 0x114   :  { %3055 = vmatpush3.msra.mxu0 %v1058_v53  ;;  %3141 = vmatprep.subr.mxu1 %v3307_v3  ;;  %v1784_v53 = vand.u32 4294901760, %v1783_v43  ;;  %v4201_v60 = vand.u32 4294901760, %v1606_v52  ;;  %v1618_v32 = vsel %vm115_vm7, %v1594_v7, 0 }
 0x115   :  { %3056 = vmatprep.subr.mxu0 %v3307_v3  ;;  %3142 = vmatpush3.msra.mxu1 %v1770_v44  ;;  %v1810_v51 = vand.u32 4294901760, %v4156_v12  ;;  %v4282_v48 = vand.u32 4294901760, %v1618_v32 }
 0x116   :  { %3057 = vmatpush3.msra.mxu0 %v1065_v57  ;;  %3143 = vmatprep.subr.mxu1 %v3307_v3  ;;  %v1797_v57 = vsub.f32 %v4121_v27, %v1796_v34  ;;  %v4212_v1 = vsub.f32 %v1606_v52, %v4201_v60 }
 0x117   :  { %3058 = vmatprep.mubr.msk.f32.mxu0 %vm3308_vm5, %v3307_v3  ;;  %3097 = vmatprep.mubr.msk.f32.mxu1 %vm3308_vm5, %v3307_v3  ;;  %v1811_v58 = vsub.f32 %v4156_v12, %v1810_v51 }
 0x118   :  { %3106 = vmatprep.subr.mxu0 %v3307_v3  ;;  %3144 = vmatpush3.msra.mxu1 %v1777_v33  ;;  %v1798_v26 = vand.u32 4294901760, %v1797_v57  ;;  %v1696_v23 = vand.u32 4294901760, %v4212_v1  ;;  %v4277_v33 = vsub.f32 %v1615_v25, %v4264_v22 }
 0x119   :  { %3059 = vmatmul.mubr.f32.vlgmr.msra.gmra.mxu0 %v3845_v5  ;;  %3098 = vmatmul.mubr.f32.gmra.mxu1 %v3881_v50  ;;  %v1804_v5 = vsub.f32 %v4139_v10, %v1803_v49  ;;  %v1812_v56 = vand.u32 4294901760, %v1811_v58 }
 0x11a   :  { %3107 = vmatpush3.msra.mxu0 %v4003_v17  ;;  %3145 = vmatprep.subr.mxu1 %v3307_v3  ;;  %v1697_v18 = vsub.f32 %v4212_v1, %v1696_v23  ;;  %v1726_v57 = vand.u32 4294901760, %v4277_v33 }
 0x11b   :  { %3146 = vmatpush3.msra.mxu1 %v1784_v53  ;;  %3108 = vmatprep.subr.mxu0 %v3307_v3  ;;  %v1805_v62 = vand.u32 4294901760, %v1804_v5 }
 0x11c   :  { %3147 = vmatprep.subr.mxu1 %v3307_v3  ;;  %3061 = vmatprep.mubr.msk.f32.mxu0 %vm3308_vm5, %v3307_v3  ;;  %v1698_v6 = vand.u32 4294901760, %v1697_v18 }
 0x11d   :  { %3100 = vmatprep.mubr.msk.f32.mxu1 %vm3308_vm5, %v3307_v3  ;;  %3109 = vmatpush3.msra.mxu0 %v4017_v24 }
 0x11e   :  { %3148 = vmatpush3.msra.mxu1 %v1791_v19  ;;  %3062 = vmatmul.mubr.f32.gmra.mxu0 %v3860_v20  ;;  %v1818_v20 = vsub.f32 %v4166_v13, %v1817_v41  ;;  %v4296_v19 = vsub.f32 %v1618_v32, %v4282_v48 }
 0x11f   :  { %3101 = vmatmul.mubr.f32.gmra.mxu1 %v3908_v40  ;;  %3110 = vmatprep.subr.mxu0 %v3307_v3 }
 0x120   :  { %3149 = vmatprep.subr.mxu1 %v3307_v3  ;;  %3111 = vmatpush3.msra.mxu0 %v4033_v35  ;;  %v1819_v63 = vand.u32 4294901760, %v1818_v20  ;;  %v1736_v42 = vand.u32 4294901760, %v4296_v19 }
 0x121   :  { %3150 = vmatpush3.msra.mxu1 %v1798_v26  ;;  %3112 = vmatprep.subr.mxu0 %v3307_v3  ;;  %v1727_v26 = vsub.f32 %v4277_v33, %v1726_v57 }
 0x122   :  { %3151 = vmatprep.subr.mxu1 %v3307_v3  ;;  %3064 = vmatprep.mubr.msk.f32.mxu0 %vm3308_vm5, %v3307_v3 }
 0x123   :  { %3103 = vmatprep.mubr.msk.f32.mxu1 %vm3308_vm5, %v3307_v3  ;;  %3113 = vmatpush3.msra.mxu0 %v4051_v39  ;;  %v1728_v58 = vand.u32 4294901760, %v1727_v26 }
 0x124   :  { %3152 = vmatpush3.msra.mxu1 %v1805_v62  ;;  %3065 = vmatmul.mubr.f32.gmra.mxu0 %v3881_v50  ;;  %v4216_v50 = vand.u32 4294901760, %v1609_v0  ;;  %v1737_v62 = vsub.f32 %v4296_v19, %v1736_v42 }
 0x125   :  { %3104 = vmatmul.mubr.f32.gmra.mxu1 %v3926_v46  ;;  %3114 = vmatprep.subr.mxu0 %v3307_v3 }
 0x126   :  { %3153 = vmatprep.subr.mxu1 %v3307_v3  ;;  %3115 = vmatpush3.msra.mxu0 %v4071_v21  ;;  %v4230_v36 = vsub.f32 %v1609_v0, %v4216_v50  ;;  %v1738_v14 = vand.u32 4294901760, %v1737_v62 }
 0x127   :  { %3154 = vmatpush3.msra.mxu1 %v1812_v56  ;;  %3067 = vmatprep.mubr.msk.f32.mxu0 %vm3308_vm5, %v3307_v3 }
 0x128   :  { %3155 = vmatprep.subr.mxu1 %v3307_v3  ;;  %3116 = vmatprep.subr.mxu0 %v3307_v3  ;;  %v1706_v2 = vand.u32 4294901760, %v4230_v36 }
 0x129   :  { %3156 = vmatpush3.msra.mxu1 %v1819_v63  ;;  %3157 = vmatprep.mubr.msk.f32.mxu1 %vm3308_vm5, %v3307_v3 }
 0x12a   :  { %3068 = vmatmul.mubr.f32.gmra.mxu0 %v3908_v40  ;;  %3158 = vmatmul.mubr.f32.vlgmr.msra.gmra.mxu1 %v4201_v60  ;;  %v4237_v40 = vand.u32 4294901760, %v1612_v28  ;;  %v1707_v15 = vsub.f32 %v4230_v36, %v1706_v2 }
 0x12b   :  { %3117 = vmatpush3.msra.mxu0 %v4091_v54  ;;  %3205 = vmatprep.subr.mxu1 %v3307_v3 }
 0x12c   :  { %3118 = vmatprep.subr.mxu0 %v3307_v3  ;;  %3070 = vmatprep.mubr.msk.f32.mxu0 %vm3308_vm5, %v3307_v3  ;;  %v1708_v43 = vand.u32 4294901760, %v1707_v15 }
 0x12d   :  { %3119 = vmatpush3.msra.mxu0 %v4111_v9  ;;  %3160 = vmatprep.mubr.msk.f32.mxu1 %vm3308_vm5, %v3307_v3 }
 0x12e   :  { %3120 = vmatprep.subr.mxu0 %v3307_v3  ;;  %3206 = vmatpush3.msra.mxu1 %v4003_v17 }
 0x12f   :  { %3071 = vmatmul.mubr.f32.gmra.mxu0 %v3926_v46  ;;  %3161 = vmatmul.mubr.f32.gmra.mxu1 %v4216_v50  ;;  %v4253_v46 = vsub.f32 %v1612_v28, %v4237_v40 }
 0x130   :  { %3121 = vmatpush3.msra.mxu0 %v4133_v59  ;;  %3207 = vmatprep.subr.mxu1 %v3307_v3 }
 0x131   :  { %3122 = vmatprep.subr.mxu0 %v3307_v3  ;;  %3208 = vmatpush3.msra.mxu1 %v4017_v24  ;;  %v1716_v44 = vand.u32 4294901760, %v4253_v46 }
 0x132   :  { %3123 = vmatpush3.msra.mxu0 %v4143_v61  ;;  %3209 = vmatprep.subr.mxu1 %v3307_v3 }
 0x133   :  { %3124 = vmatprep.mubr.msk.f32.mxu0 %vm3308_vm5, %v3307_v3  ;;  %3163 = vmatprep.mubr.msk.f32.mxu1 %vm3308_vm5, %v3307_v3  ;;  %v1717_v53 = vsub.f32 %v4253_v46, %v1716_v44 }
 0x134   :  { %3172 = vmatprep.subr.mxu0 %v3307_v3  ;;  %3210 = vmatpush3.msra.mxu1 %v4033_v35 }
 0x135   :  { %3125 = vmatmul.mubr.f32.vlgmr.msra.gmra.mxu0 %v1698_v6  ;;  %3164 = vmatmul.mubr.f32.gmra.mxu1 %v4237_v40  ;;  %v1718_v5 = vand.u32 4294901760, %v1717_v53 }
 0x136   :  { %3173 = vmatpush3.msra.mxu0 %v4025_v29  ;;  %3211 = vmatprep.subr.mxu1 %v3307_v3 }
 0x137   :  { %3212 = vmatpush3.msra.mxu1 %v4051_v39  ;;  %3174 = vmatprep.subr.mxu0 %v3307_v3 }
 0x138   :  { %3213 = vmatprep.subr.mxu1 %v3307_v3  ;;  %3127 = vmatprep.mubr.msk.f32.mxu0 %vm3308_vm5, %v3307_v3 }
 0x139   :  { %3166 = vmatprep.mubr.msk.f32.mxu1 %vm3308_vm5, %v3307_v3  ;;  %3175 = vmatpush3.msra.mxu0 %v4041_v31 }
 0x13a   :  { %3214 = vmatpush3.msra.mxu1 %v4071_v21  ;;  %3128 = vmatmul.mubr.f32.gmra.mxu0 %v1708_v43 }
 0x13b   :  { %3167 = vmatmul.mubr.f32.gmra.mxu1 %v4264_v22  ;;  %3176 = vmatprep.subr.mxu0 %v3307_v3 }
 0x13c   :  { %3215 = vmatprep.subr.mxu1 %v3307_v3  ;;  %3177 = vmatpush3.msra.mxu0 %v4059_v45 }
 0x13d   :  { %3216 = vmatpush3.msra.mxu1 %v4091_v54  ;;  %3178 = vmatprep.subr.mxu0 %v3307_v3 }
 0x13e   :  { %3217 = vmatprep.subr.mxu1 %v3307_v3  ;;  %3130 = vmatprep.mubr.msk.f32.mxu0 %vm3308_vm5, %v3307_v3 }
 0x13f   :  { %3169 = vmatprep.mubr.msk.f32.mxu1 %vm3308_vm5, %v3307_v3  ;;  %3179 = vmatpush3.msra.mxu0 %v4080_v4 }
 0x140   :  { %3218 = vmatpush3.msra.mxu1 %v4111_v9  ;;  %3131 = vmatmul.mubr.f32.gmra.mxu0 %v1718_v5 }
 0x141   :  { %3170 = vmatmul.mubr.f32.gmra.mxu1 %v4282_v48  ;;  %3180 = vmatprep.subr.mxu0 %v3307_v3 }
 0x142   :  { %3219 = vmatprep.subr.mxu1 %v3307_v3  ;;  %3181 = vmatpush3.msra.mxu0 %v4099_v47 }
 0x143   :  { %3220 = vmatpush3.msra.mxu1 %v4133_v59  ;;  %3133 = vmatprep.mubr.msk.f32.mxu0 %vm3308_vm5, %v3307_v3 }
 0x144   :  { %3221 = vmatprep.subr.mxu1 %v3307_v3  ;;  %3182 = vmatprep.subr.mxu0 %v3307_v3 }
 0x145   :  { %3222 = vmatpush3.msra.mxu1 %v4143_v61  ;;  %3223 = vmatprep.mubr.msk.f32.mxu1 %vm3308_vm5, %v3307_v3 }
 0x146   :  { %3134 = vmatmul.mubr.f32.gmra.mxu0 %v1728_v58  ;;  %3224 = vmatmul.mubr.f32.vlgmr.msra.gmra.mxu1 %v1696_v23  ;;  %v367_v52 = vpop.f32.mrf.mxu1 }
 0x147   :  { %3183 = vmatpush3.msra.mxu0 %v4121_v27  ;;  %3271 = vmatprep.subr.mxu1 %v3307_v3 }
 0x148   :  { %3184 = vmatprep.subr.mxu0 %v3307_v3  ;;  %3136 = vmatprep.mubr.msk.f32.mxu0 %vm3308_vm5, %v3307_v3  ;;  %v2763_v20 = vpop.f32.mrf.mxu1 }
 0x149   :  { %3185 = vmatpush3.msra.mxu0 %v4139_v10  ;;  %3226 = vmatprep.mubr.msk.f32.mxu1 %vm3308_vm5, %v3307_v3 }
 0x14a   :  { %3186 = vmatprep.subr.mxu0 %v3307_v3  ;;  %3272 = vmatpush3.msra.mxu1 %v4003_v17  ;;  %v373_v56 = vpop.f32.mrf.mxu1 }
 0x14b   :  { %3137 = vmatmul.mubr.f32.gmra.mxu0 %v1738_v14  ;;  %3227 = vmatmul.mubr.f32.gmra.mxu1 %v1706_v2 }
 0x14c   :  { %3187 = vmatpush3.msra.mxu0 %v4156_v12  ;;  %3273 = vmatprep.subr.mxu1 %v3307_v3  ;;  %v2766_v63 = vpop.f32.mrf.mxu1 }
 0x14d   :  { %3188 = vmatprep.subr.mxu0 %v3307_v3  ;;  %3274 = vmatpush3.msra.mxu1 %v4017_v24 }
 0x14e   :  { %3189 = vmatpush3.msra.mxu0 %v4166_v13  ;;  %3275 = vmatprep.subr.mxu1 %v3307_v3  ;;  %v211_v0 = vpop.f32.mrf.mxu0  ;;  %v379_v17 = vpop.f32.mrf.mxu1 }
 0x14f   :  { %3190 = vmatprep.mubr.msk.f32.mxu0 %vm3308_vm5, %v3307_v3  ;;  %3229 = vmatprep.mubr.msk.f32.mxu1 %vm3308_vm5, %v3307_v3  ;;  %v4348_v16 = vadd.f32 %v367_v52, %v211_v0 }
 0x150   :  { %3238 = vmatprep.subr.mxu0 %v3307_v3  ;;  %3276 = vmatpush3.msra.mxu1 %v4033_v35  ;;  %v2730_v23 = vpop.f32.mrf.mxu0  ;;  %v2769_v24 = vpop.f32.mrf.mxu1 }
 0x151   :  { %3191 = vmatmul.mubr.f32.vlgmr.msra.gmra.mxu0 %v4212_v1  ;;  %3230 = vmatmul.mubr.f32.gmra.mxu1 %v1716_v44 }
 0x152   :  { %3239 = vmatpush3.msra.mxu0 %v1761_v37  ;;  %3277 = vmatprep.subr.mxu1 %v3307_v3  ;;  %v221_v28 = vpop.f32.mrf.mxu0 }
 0x153   :  { %3278 = vmatpush3.msra.mxu1 %v4051_v39  ;;  %3240 = vmatprep.subr.mxu0 %v3307_v3  ;;  %v4360_v38 = vadd.f32 %v373_v56, %v221_v28  ;;  %v385_v35 = vpop.f32.mrf.mxu1 }
 0x154   :  { %3279 = vmatprep.subr.mxu1 %v3307_v3  ;;  %3193 = vmatprep.mubr.msk.f32.mxu0 %vm3308_vm5, %v3307_v3  ;;  %v2733_v1 = vpop.f32.mrf.mxu0 }
 0x155   :  { %3232 = vmatprep.mubr.msk.f32.mxu1 %vm3308_vm5, %v3307_v3  ;;  %3241 = vmatpush3.msra.mxu0 %v1768_v11  ;;  %v2772_v29 = vpop.f32.mrf.mxu1 }
 0x156   :  { %3280 = vmatpush3.msra.mxu1 %v4071_v21  ;;  %3194 = vmatmul.mubr.f32.gmra.mxu0 %v4230_v36 }
 0x157   :  { %3233 = vmatmul.mubr.f32.gmra.mxu1 %v1726_v57  ;;  %3242 = vmatprep.subr.mxu0 %v3307_v3 }
 0x158   :  { %3281 = vmatprep.subr.mxu1 %v3307_v3  ;;  %3243 = vmatpush3.msra.mxu0 %v1775_v55  ;;  %v231_v37 = vpop.f32.mrf.mxu0 }
 0x159   :  { %3282 = vmatpush3.msra.mxu1 %v4091_v54  ;;  %3244 = vmatprep.subr.mxu0 %v3307_v3  ;;  %v4379_v31 = vadd.f32 %v379_v17, %v231_v37  ;;  %v391_v39 = vpop.f32.mrf.mxu1 }
 0x15a   :  { %3283 = vmatprep.subr.mxu1 %v3307_v3  ;;  %3196 = vmatprep.mubr.msk.f32.mxu0 %vm3308_vm5, %v3307_v3  ;;  %v2736_v11 = vpop.f32.mrf.mxu0 }
 0x15b   :  { %3235 = vmatprep.mubr.msk.f32.mxu1 %vm3308_vm5, %v3307_v3  ;;  %3245 = vmatpush3.msra.mxu0 %v1782_v8  ;;  %v2775_v45 = vpop.f32.mrf.mxu1 }
 0x15c   :  { %3284 = vmatpush3.msra.mxu1 %v4111_v9  ;;  %3197 = vmatmul.mubr.f32.gmra.mxu0 %v4253_v46 }
 0x15d   :  { %3236 = vmatmul.mubr.f32.gmra.mxu1 %v1736_v42  ;;  %3246 = vmatprep.subr.mxu0 %v3307_v3 }
 0x15e   :  { %3285 = vmatprep.subr.mxu1 %v3307_v3  ;;  %3247 = vmatpush3.msra.mxu0 %v1789_v30  ;;  %v241_v21 = vpop.f32.mrf.mxu0  ;;  %v591_v55 = vpop.f32.mrf.mxu1 }
 0x15f   :  { %3286 = vmatpush3.msra.mxu1 %v4133_v59  ;;  %3199 = vmatprep.mubr.msk.f32.mxu0 %vm3308_vm5, %v3307_v3  ;;  %v386_v4 = vadd.f32 %v385_v35, %v241_v21 }
 0x160   :  { %3287 = vmatprep.subr.mxu1 %v3307_v3  ;;  %3248 = vmatprep.subr.mxu0 %v3307_v3  ;;  %v2739_v54 = vpop.f32.mrf.mxu0  ;;  %v2829_v8 = vpop.f32.mrf.mxu1 }
 0x161   :  { %3288 = vmatpush3.msra.mxu1 %v4143_v61  ;;  %3289 = vmatprep.mubr.msk.f32.mxu1 %vm3308_vm5, %v3307_v3 }
 0x162   :  { %3200 = vmatmul.mubr.f32.gmra.mxu0 %v4277_v33  ;;  %3290 = vmatmul.mubr.f32.vlgmr.msra.gmra.mxu1 %v4201_v60 }
 0x163   :  { %3249 = vmatpush3.msra.mxu0 %v1796_v34  ;;  %3202 = vmatprep.mubr.msk.f32.mxu0 %vm3308_vm5, %v3307_v3  ;;  %v251_v47 = vpop.f32.mrf.mxu0  ;;  %v599_v9 = vpop.f32.mrf.mxu1 }
 0x164   :  { %3250 = vmatprep.subr.mxu0 %v3307_v3  ;;  %3292 = vmatprep.mubr.msk.f32.mxu1 %vm3308_vm5, %v3307_v3  ;;  %v392_v30 = vadd.f32 %v391_v39, %v251_v47 }
 0x165   :  { %3251 = vmatpush3.msra.mxu0 %v1803_v49  ;;  %v2742_v59 = vpop.f32.mrf.mxu0  ;;  %v2832_v61 = vpop.f32.mrf.mxu1 }
 0x166   :  { %3252 = vmatprep.subr.mxu0 %v3307_v3  ;;  %3203 = vmatmul.mubr.f32.gmra.mxu0 %v4296_v19 }
 0x167   :  { %3253 = vmatpush3.msra.mxu0 %v1810_v51  ;;  %3293 = vmatmul.mubr.f32.gmra.mxu1 %v4216_v50 }
 0x168   :  { %3254 = vmatprep.subr.mxu0 %v3307_v3  ;;  %3256 = vmatprep.mubr.msk.f32.mxu0 %vm3308_vm5, %v3307_v3 }
 0x169   :  { %3255 = vmatpush3.msra.mxu0 %v1817_v41  ;;  %3295 = vmatprep.mubr.msk.f32.mxu1 %vm3308_vm5, %v3307_v3  ;;  %v481_v27 = vpop.f32.mrf.mxu0  ;;  %v607_v10 = vpop.f32.mrf.mxu1 }
 0x16a   :  { %3257 = vmatmul.mubr.f32.vlgmr.msra.gmra.mxu0 %v4201_v60  ;;  %v482_v34 = vadd.f32 %v481_v27, %v4348_v16 }
 0x16b   :  { %3296 = vmatmul.mubr.f32.gmra.mxu1 %v4237_v40  ;;  %3259 = vmatprep.mubr.msk.f32.mxu0 %vm3308_vm5, %v3307_v3  ;;  %v2796_v12 = vpop.f32.mrf.mxu0  ;;  %v2835_v49 = vpop.f32.mrf.mxu1 }
 0x16c   :  { %3298 = vmatprep.mubr.msk.f32.mxu1 %vm3308_vm5, %v3307_v3  ;;  %v592_v13 = vadd.f32 %v591_v55, %v482_v34 }
 0x16e   :  { %3260 = vmatmul.mubr.f32.gmra.mxu0 %v4216_v50  ;;  %v488_v51 = vpop.f32.mrf.mxu0 }
 0x16f   :  { %3299 = vmatmul.mubr.f32.gmra.mxu1 %v4264_v22  ;;  %3262 = vmatprep.mubr.msk.f32.mxu0 %vm3308_vm5, %v3307_v3  ;;  %v489_v41 = vadd.f32 %v488_v51, %v4360_v38  ;;  %v615_v60 = vpop.f32.mrf.mxu1 }
 0x170   :  { %3301 = vmatprep.mubr.msk.f32.mxu1 %vm3308_vm5, %v3307_v3  ;;  %v2799_v36 = vpop.f32.mrf.mxu0 }
 0x171   :  { %v2838_v18 = vpop.f32.mrf.mxu1  ;;  %v600_v2 = vadd.f32 %v599_v9, %v489_v41 }
 0x172   :  { %3263 = vmatmul.mubr.f32.gmra.mxu0 %v4237_v40 }
 0x173   :  { %3302 = vmatmul.mubr.f32.gmra.mxu1 %v4282_v48  ;;  %3265 = vmatprep.mubr.msk.f32.mxu0 %vm3308_vm5, %v3307_v3 }
 0x174   :  { %v495_v50 = vpop.f32.mrf.mxu0 }
 0x175   :  { %v496_v25 = vadd.f32 %v495_v50, %v4379_v31  ;;  %v623_v46 = vpop.f32.mrf.mxu1 }
 0x176   :  { %3266 = vmatmul.mubr.f32.gmra.mxu0 %v4264_v22  ;;  %v2802_v6 = vpop.f32.mrf.mxu0 }
 0x177   :  { %3268 = vmatprep.mubr.msk.f32.mxu0 %vm3308_vm5, %v3307_v3  ;;  %v2841_v7 = vpop.f32.mrf.mxu1  ;;  %v608_v15 = vadd.f32 %v607_v10, %v496_v25 }
 0x17a   :  { %3269 = vmatmul.mubr.f32.gmra.mxu0 %v4282_v48  ;;  %v502_v40 = vpop.f32.mrf.mxu0  ;;  %v825_v44 = vpop.f32.mrf.mxu1 }
 0x17b   :  { %v503_v32 = vadd.f32 %v502_v40, %v386_v4 }
 0x17c   :  { %v2805_v43 = vpop.f32.mrf.mxu0  ;;  %v2895_v33 = vpop.f32.mrf.mxu1 }
 0x17d   :  { %v616_v53 = vadd.f32 %v615_v60, %v503_v32 }
 0x17f   :  { %v509_v57 = vpop.f32.mrf.mxu0  ;;  %v831_v19 = vpop.f32.mrf.mxu1 }
 0x180   :  { %v510_v5 = vadd.f32 %v509_v57, %v392_v30 }
 0x181   :  { %v2808_v26 = vpop.f32.mrf.mxu0  ;;  %v2898_v42 = vpop.f32.mrf.mxu1 }
 0x182   :  { %v624_v22 = vadd.f32 %v623_v46, %v510_v5 }
 0x185   :  { %v721_v58 = vpop.f32.mrf.mxu0  ;;  %v837_v62 = vpop.f32.mrf.mxu1 }
 0x186   :  { %v722_v52 = vadd.f32 %v721_v58, %v592_v13 }
 0x187   :  { %v2862_v3 = vpop.f32.mrf.mxu0  ;;  %v2901_v20 = vpop.f32.mrf.mxu1 }
 0x188   :  { %v826_v14 = vadd.f32 %v825_v44, %v722_v52 }
 0x18a   :  { %v727_v56 = vpop.f32.mrf.mxu0 }
 0x18b   :  { %v728_v48 = vadd.f32 %v727_v56, %v600_v2  ;;  %v843_v63 = vpop.f32.mrf.mxu1 }
 0x18c   :  { %v2865_v0 = vpop.f32.mrf.mxu0 }
 0x18d   :  { %v2904_v17 = vpop.f32.mrf.mxu1  ;;  %v832_v16 = vadd.f32 %v831_v19, %v728_v48 }
 0x190   :  { %v733_v23 = vpop.f32.mrf.mxu0 }
 0x191   :  { %v734_v24 = vadd.f32 %v733_v23, %v608_v15  ;;  %v849_v28 = vpop.f32.mrf.mxu1 }
 0x192   :  { %v2868_v38 = vpop.f32.mrf.mxu0 }
 0x193   :  { %v2907_v35 = vpop.f32.mrf.mxu1  ;;  %v838_v1 = vadd.f32 %v837_v62, %v734_v24 }
 0x196   :  { %v739_v29 = vpop.f32.mrf.mxu0  ;;  %v1104_v37 = vpop.f32.mrf.mxu1 }
 0x197   :  { %v740_v31 = vadd.f32 %v739_v29, %v616_v53 }
 0x198   :  { %v2871_v39 = vpop.f32.mrf.mxu0  ;;  %v2961_v11 = vpop.f32.mrf.mxu1 }
 0x199   :  { %v844_v45 = vadd.f32 %v843_v63, %v740_v31 }
 0x19b   :  { %v745_v21 = vpop.f32.mrf.mxu0  ;;  %v1110_v55 = vpop.f32.mrf.mxu1 }
 0x19c   :  { %v746_v4 = vadd.f32 %v745_v21, %v624_v22 }
 0x19d   :  { %v2874_v54 = vpop.f32.mrf.mxu0  ;;  %v2964_v8 = vpop.f32.mrf.mxu1 }
 0x19e   :  { %v850_v47 = vadd.f32 %v849_v28, %v746_v4 }
 0x1a1   :  { %v948_v9 = vpop.f32.mrf.mxu0  ;;  %v1116_v30 = vpop.f32.mrf.mxu1 }
 0x1a2   :  { %v949_v59 = vadd.f32 %v948_v9, %v826_v14 }
 0x1a3   :  { %v2928_v61 = vpop.f32.mrf.mxu0  ;;  %v2967_v27 = vpop.f32.mrf.mxu1 }
 0x1a4   :  { %v1105_v10 = vadd.f32 %v1104_v37, %v949_v59 }
 0x1a6   :  { %v958_v34 = vpop.f32.mrf.mxu0 }
 0x1a7   :  { %v959_v12 = vadd.f32 %v958_v34, %v832_v16  ;;  %v1122_v49 = vpop.f32.mrf.mxu1 }
 0x1a8   :  { %v2931_v13 = vpop.f32.mrf.mxu0 }
 0x1a9   :  { %v2970_v51 = vpop.f32.mrf.mxu1  ;;  %v1111_v41 = vadd.f32 %v1110_v55, %v959_v12 }
 0x1ac   :  { %v968_v60 = vpop.f32.mrf.mxu0 }
 0x1ad   :  { %v969_v36 = vadd.f32 %v968_v60, %v838_v1  ;;  %v1128_v18 = vpop.f32.mrf.mxu1 }
 0x1ae   :  { %v2934_v2 = vpop.f32.mrf.mxu0 }
 0x1af   :  { %v2973_v50 = vpop.f32.mrf.mxu1  ;;  %v1117_v25 = vadd.f32 %v1116_v30, %v969_v36 }
 0x1b2   :  { %v978_v46 = vpop.f32.mrf.mxu0  ;;  %v1328_v6 = vpop.f32.mrf.mxu1 }
 0x1b3   :  { %v979_v7 = vadd.f32 %v978_v46, %v844_v45 }
 0x1b4   :  { %v2937_v15 = vpop.f32.mrf.mxu0  ;;  %v3027_v40 = vpop.f32.mrf.mxu1 }
 0x1b5   :  { %v1123_v44 = vadd.f32 %v1122_v49, %v979_v7 }
 0x1b7   :  { %v988_v32 = vpop.f32.mrf.mxu0  ;;  %v1336_v43 = vpop.f32.mrf.mxu1 }
 0x1b8   :  { %v989_v33 = vadd.f32 %v988_v32, %v850_v47 }
 0x1b9   :  { %v2940_v53 = vpop.f32.mrf.mxu0  ;;  %v3030_v57 = vpop.f32.mrf.mxu1 }
 0x1ba   :  { %v1129_v19 = vadd.f32 %v1128_v18, %v989_v33 }
 0x1bd   :  { %v1218_v5 = vpop.f32.mrf.mxu0  ;;  %v1344_v26 = vpop.f32.mrf.mxu1 }
 0x1be   :  { %v1219_v42 = vadd.f32 %v1218_v5, %v1105_v10 }
 0x1bf   :  { %v2994_v22 = vpop.f32.mrf.mxu0  ;;  %v3033_v58 = vpop.f32.mrf.mxu1 }
 0x1c0   :  { %v1329_v62 = vadd.f32 %v1328_v6, %v1219_v42 }
 0x1c2   :  { %v1225_v52 = vpop.f32.mrf.mxu0 }
 0x1c3   :  { %v1226_v3 = vadd.f32 %v1225_v52, %v1111_v41  ;;  %v1352_v20 = vpop.f32.mrf.mxu1 }
 0x1c4   :  { %v2997_v14 = vpop.f32.mrf.mxu0 }
 0x1c5   :  { %v3036_v56 = vpop.f32.mrf.mxu1  ;;  %v1337_v48 = vadd.f32 %v1336_v43, %v1226_v3 }
 0x1c8   :  { %v1232_v63 = vpop.f32.mrf.mxu0 }
 0x1c9   :  { %v1233_v0 = vadd.f32 %v1232_v63, %v1117_v25  ;;  %v1360_v17 = vpop.f32.mrf.mxu1 }
 0x1ca   :  { %v3000_v16 = vpop.f32.mrf.mxu0 }
 0x1cb   :  { %v3039_v23 = vpop.f32.mrf.mxu1  ;;  %v1345_v24 = vadd.f32 %v1344_v26, %v1233_v0 }
 0x1ce   :  { %v1239_v28 = vpop.f32.mrf.mxu0  ;;  %v1562_v38 = vpop.f32.mrf.mxu1 }
 0x1cf   :  { %v1240_v35 = vadd.f32 %v1239_v28, %v1123_v44 }
 0x1d0   :  { %v3003_v1 = vpop.f32.mrf.mxu0  ;;  %v3093_v29 = vpop.f32.mrf.mxu1 }
 0x1d1   :  { %v1353_v37 = vadd.f32 %v1352_v20, %v1240_v35 }
 0x1d3   :  { %v1246_v31 = vpop.f32.mrf.mxu0  ;;  %v1568_v39 = vpop.f32.mrf.mxu1 }
 0x1d4   :  { %v1247_v11 = vadd.f32 %v1246_v31, %v1129_v19 }
 0x1d5   :  { %v3006_v45 = vpop.f32.mrf.mxu0  ;;  %v3096_v21 = vpop.f32.mrf.mxu1 }
 0x1d6   :  { %v1361_v55 = vadd.f32 %v1360_v17, %v1247_v11 }
 0x1d9   :  { %v1458_v4 = vpop.f32.mrf.mxu0  ;;  %v1574_v54 = vpop.f32.mrf.mxu1 }
 0x1da   :  { %v1459_v8 = vadd.f32 %v1458_v4, %v1329_v62 }
 0x1db   :  { %v3060_v47 = vpop.f32.mrf.mxu0  ;;  %v3099_v9 = vpop.f32.mrf.mxu1 }
 0x1dc   :  { %v4450_v30 = vadd.f32 %v1562_v38, %v1459_v8 }
 0x1de   :  { %v1464_v59 = vpop.f32.mrf.mxu0 }
 0x1df   :  { %v1465_v61 = vadd.f32 %v1464_v59, %v1337_v48  ;;  %v1580_v27 = vpop.f32.mrf.mxu1 }
 0x1e0   :  { %v3063_v10 = vpop.f32.mrf.mxu0 }
 0x1e1   :  { %v4452_v34 = vadd.f32 %v1568_v39, %v1465_v61  ;;  %v3102_v12 = vpop.f32.mrf.mxu1 }
 0x1e4   :  { %v1470_v49 = vpop.f32.mrf.mxu0 }
 0x1e5   :  { %v1471_v13 = vadd.f32 %v1470_v49, %v1345_v24  ;;  %v1586_v51 = vpop.f32.mrf.mxu1 }
 0x1e6   :  { %v3066_v41 = vpop.f32.mrf.mxu0 }
 0x1e7   :  { %v4454_v60 = vadd.f32 %v1574_v54, %v1471_v13  ;;  %v3105_v36 = vpop.f32.mrf.mxu1 }
 0x1ea   :  { %v1476_v18 = vpop.f32.mrf.mxu0  ;;  %v1856_v2 = vpop.f32.mrf.mxu1 }
 0x1eb   :  { %v1477_v50 = vadd.f32 %v1476_v18, %v1353_v37 }
 0x1ec   :  { %v3069_v25 = vpop.f32.mrf.mxu0  ;;  %v3159_v46 = vpop.f32.mrf.mxu1 }
 0x1ed   :  { %v4456_v6 = vadd.f32 %v1580_v27, %v1477_v50 }
 0x1ef   :  { %v1482_v7 = vpop.f32.mrf.mxu0  ;;  %v1862_v15 = vpop.f32.mrf.mxu1 }
 0x1f0   :  { %v1483_v40 = vadd.f32 %v1482_v7, %v1361_v55 }
 0x1f1   :  { %v3072_v44 = vpop.f32.mrf.mxu0  ;;  %v3162_v32 = vpop.f32.mrf.mxu1 }
 0x1f2   :  { %v4458_v43 = vadd.f32 %v1586_v51, %v1483_v40 }
 0x1f5   :  { %v1700_v33 = vpop.f32.mrf.mxu0  ;;  %v1868_v53 = vpop.f32.mrf.mxu1 }
 0x1f6   :  { %v1857_v4 = vadd.f32 %v1856_v2, %v1700_v33 }
 0x1f7   :  { %v3126_v57 = vpop.f32.mrf.mxu0  ;;  %v3165_v19 = vpop.f32.mrf.mxu1 }
 0x1fa   :  { %v1710_v5 = vpop.f32.mrf.mxu0 }
 0x1fb   :  { %v1874_v26 = vpop.f32.mrf.mxu1  ;;  %v1863_v59 = vadd.f32 %v1862_v15, %v1710_v5 }
 0x1fc   :  { %v3129_v42 = vpop.f32.mrf.mxu0 }
 0x1fd   :  { %v3168_v22 = vpop.f32.mrf.mxu1 }
 0x200   :  { %v1720_v58 = vpop.f32.mrf.mxu0 }
 0x201   :  { %v1880_v62 = vpop.f32.mrf.mxu1  ;;  %v1869_v51 = vadd.f32 %v1868_v53, %v1720_v58 }
 0x202   :  { %v3132_v52 = vpop.f32.mrf.mxu0 }
 0x203   :  { %v3171_v3 = vpop.f32.mrf.mxu1 }
 0x206   :  { %v1730_v20 = vpop.f32.mrf.mxu0  ;;  %v2080_v14 = vpop.f32.mrf.mxu1 }
 0x207   :  { %v1875_v2 = vadd.f32 %v1874_v26, %v1730_v20 }
 0x208   :  { %v3135_v56 = vpop.f32.mrf.mxu0  ;;  %v3225_v48 = vpop.f32.mrf.mxu1 }
 0x20b   :  { %v1740_v63 = vpop.f32.mrf.mxu0  ;;  %v2088_v0 = vpop.f32.mrf.mxu1 }
 0x20c   :  { %v1881_v42 = vadd.f32 %v1880_v62, %v1740_v63 }
 0x20d   :  { %v3138_v17 = vpop.f32.mrf.mxu0  ;;  %v3228_v16 = vpop.f32.mrf.mxu1 }
 0x211   :  { %v1970_v23 = vpop.f32.mrf.mxu0  ;;  %v2096_v24 = vpop.f32.mrf.mxu1 }
 0x212   :  { %v1971_v47 = vadd.f32 %v1970_v23, %v1857_v4 }
 0x213   :  { %v3192_v28 = vpop.f32.mrf.mxu0  ;;  %v3231_v38 = vpop.f32.mrf.mxu1 }
 0x214   :  { %v2081_v49 = vadd.f32 %v2080_v14, %v1971_v47 }
 0x216   :  { %v1977_v35 = vpop.f32.mrf.mxu0 }
 0x217   :  { %v2104_v1 = vpop.f32.mrf.mxu1  ;;  %v1978_v10 = vadd.f32 %v1977_v35, %v1863_v59 }
 0x218   :  { %v3195_v29 = vpop.f32.mrf.mxu0 }
 0x219   :  { %v3234_v37 = vpop.f32.mrf.mxu1  ;;  %v2089_v7 = vadd.f32 %v2088_v0, %v1978_v10 }
 0x21c   :  { %v1984_v31 = vpop.f32.mrf.mxu0 }
 0x21d   :  { %v4460_v39 = vpop.f32.mrf.mxu1  ;;  %v1985_v50 = vadd.f32 %v1984_v31, %v1869_v51 }
 0x21e   :  { %v3198_v11 = vpop.f32.mrf.mxu0 }
 0x21f   :  { %v3237_v45 = vpop.f32.mrf.mxu1  ;;  %v2097_v5 = vadd.f32 %v2096_v24, %v1985_v50 }
 0x222   :  { %v1991_v21 = vpop.f32.mrf.mxu0  ;;  %v2314_v55 = vpop.f32.mrf.mxu1 }
 0x223   :  { %v1992_v33 = vadd.f32 %v1991_v21, %v1875_v2 }
 0x224   :  { %v3201_v54 = vpop.f32.mrf.mxu0  ;;  %v3291_v8 = vpop.f32.mrf.mxu1 }
 0x225   :  { %v2105_v14 = vadd.f32 %v2104_v1, %v1992_v33 }
 0x226   :  { %v1998_v9 = vpop.f32.mrf.mxu0 }
 0x227   :  { %v2320_v61 = vpop.f32.mrf.mxu1 }
 0x228   :  { %v3204_v27 = vpop.f32.mrf.mxu0 }
 0x229   :  { %v3294_v12 = vpop.f32.mrf.mxu1 }
 0x22a   :  { %v2210_v13 = vpop.f32.mrf.mxu0 }
 0x22b   :  { %v2211_v41 = vadd.f32 %v2210_v13, %v2081_v49  ;;  %v2326_v36 = vpop.f32.mrf.mxu1 }
 0x22c   :  { %v3258_v18 = vpop.f32.mrf.mxu0 }
 0x22d   :  { %v2315_v25 = vadd.f32 %v2314_v55, %v2211_v41  ;;  %v3297_v46 = vpop.f32.mrf.mxu1 }
 0x22e   :  { %v2216_v40 = vpop.f32.mrf.mxu0 }
 0x22f   :  { %v2342_v44 = vadd.f32 %v2315_v25, %v4450_v30  ;;  %v2217_v15 = vadd.f32 %v2216_v40, %v2089_v7  ;;  %v2332_v32 = vpop.f32.mrf.mxu1  ;;  %v1999_v30 = vadd.f32 %v1998_v9, %v1881_v42 }
 0x230   :  { %v3261_v57 = vpop.f32.mrf.mxu0 }
 0x231   :  { %2348 = vst.msk [vmem:[%s4508_s4] sm:$0xff] %vm2347_vm8, %v2342_v44  ;;  %v2321_v53 = vadd.f32 %v2320_v61, %v2217_v15  ;;  %v3300_v19 = vpop.f32.mrf.mxu1  ;;  %v2360_v58 = vmul.f32 %v2342_v44, %v2342_v44  ;;  %v2350_v56 = vsel %vm2347_vm8, %v2342_v44, 0.0  ;;  %v2113_v29 = vadd.f32 %v4460_v39, %v1999_v30 }
 0x232   :  { %v2222_v22 = vpop.f32.mrf.mxu0 }
 0x233   :  { %v2343_v26 = vadd.f32 %v2321_v53, %v4452_v34  ;;  %v2223_v52 = vadd.f32 %v2222_v22, %v2097_v5  ;;  %v2338_v3 = vpop.f32.mrf.mxu1  ;;  %v2362_v16 = vsel %vm2347_vm8, %v2360_v58, 0.0 }
 0x234   :  { %v3264_v20 = vpop.f32.mrf.mxu0 }
 0x235   :  { %2349 = vst.msk [vmem:[%s4508_s4 + $0x8] sm:$0xff] %vm2347_vm8, %v2343_v26  ;;  %v2351_v48 = vsel %vm2347_vm8, %v2343_v26, 0.0  ;;  %v2361_v0 = vmul.f32 %v2343_v26, %v2343_v26  ;;  %v2327_v62 = vadd.f32 %v2326_v36, %v2223_v52  ;;  %v3303_v63 = vpop.f32.mrf.mxu1 }
 0x236   :  { %v2352_v17 = vadd.f32 %v2351_v48, %v2350_v56  ;;  %v2228_v34 = vpop.f32.mrf.mxu0 }
 0x237   :  { %v2363_v23 = vsel %vm2347_vm8, %v2361_v0, 0.0  ;;  %v2344_v24 = vadd.f32 %v2327_v62, %v4454_v60  ;;  %v2229_v28 = vadd.f32 %v2228_v34, %v2105_v14 }
 0x238   :  { %v2364_v38 = vadd.f32 %v2363_v23, %v2362_v16  ;;  %v3267_v35 = vpop.f32.mrf.mxu0  ;;  %v2353_v21 = vrot.slane %v2352_v17, 4 }
 0x239   :  { %2455 = vst.msk [vmem:[%s4508_s4 + $0xe] sm:$0xfc] %vm2373_vm9, %v2344_v24  ;;  %v2333_v1 = vadd.f32 %v2332_v32, %v2229_v28  ;;  %v2399_v31 = vmul.f32 %v2344_v24, %v2344_v24  ;;  %v2382_v4 = vrot.slane %v2344_v24, 2 }
 0x23a   :  { %v2234_v37 = vpop.f32.mrf.mxu0  ;;  %v2365_v47 = vrot.slane %v2364_v38, 4  ;;  %v2354_v61 = vadd.f32 %v2353_v21, %v2352_v17 }
 0x23b   :  { %v2345_v11 = vadd.f32 %v2333_v1, %v4456_v6  ;;  %v2235_v45 = vadd.f32 %v2234_v37, %v2113_v29  ;;  %v2405_v39 = vrot.slane %v2399_v31, 2 }
 0x23c   :  { %v3270_v55 = vpop.f32.mrf.mxu0  ;;  %v2366_v49 = vadd.f32 %v2365_v47, %v2364_v38  ;;  %v2355_v18 = vrot.slane %v2354_v61, 2 }
 0x23d   :  { %2456 = vst.msk [vmem:[%s4508_s4 + $0x16] sm:$0xff] %vm2347_vm8, %v2345_v11  ;;  %v2383_v60 = vrot.slane %v2345_v11, 2  ;;  %v2400_v54 = vmul.f32 %v2345_v11, %v2345_v11  ;;  %v2339_v8 = vadd.f32 %v2338_v3, %v2235_v45 }
 0x23e   :  { %v2367_v7 = vrot.slane %v2366_v49, 2  ;;  %v2356_v44 = vadd.f32 %v2355_v18, %v2354_v61 }
 0x23f   :  { %v2384_v9 = vsel %vm2381_vm10, %v2382_v4, %v2383_v60  ;;  %v2406_v59 = vrot.slane %v2400_v54, 2  ;;  %v2346_v6 = vadd.f32 %v2339_v8, %v4458_v43 }
 0x240   :  { %v2389_v41 = vsel %vm2347_vm8, %v2384_v9, 0.0  ;;  %v2368_v33 = vadd.f32 %v2367_v7, %v2366_v49  ;;  %v2357_v19 = vrot.slane %v2356_v44, 1 }
 0x241   :  { %v2407_v27 = vsel %vm2381_vm10, %v2405_v39, %v2406_v59  ;;  %2457 = vst.msk [vmem:[%s4508_s4 + $0x1e] sm:$0x3] %vm2376_vm11, %v2346_v6  ;;  %v2385_v10 = vrot.slane %v2346_v6, 2  ;;  %v2401_v12 = vmul.f32 %v2346_v6, %v2346_v6 }
 0x242   :  { %v2412_v25 = vsel %vm2347_vm8, %v2407_v27, 0.0  ;;  %v2369_v22 = vrot.slane %v2368_v33, 1  ;;  %v2358_v52 = vadd.f32 %v2357_v19, %v2356_v44 }
 0x243   :  { %v2386_v13 = vsel %vm2381_vm10, %v2383_v60, %v2385_v10  ;;  %v2408_v51 = vrot.slane %v2401_v12, 2 }
 0x244   :  { %v2390_v36 = vsel %vm2347_vm8, %v2386_v13, 0.0  ;;  %v2370_v20 = vadd.f32 %v2369_v22, %v2368_v33 }
 0x245   :  { %v2391_v50 = vadd.f32 %v2390_v36, %v2389_v41  ;;  %v2409_v43 = vsel %vm2381_vm10, %v2406_v59, %v2408_v51 }
 0x246   :  { %v2413_v46 = vsel %vm2347_vm8, %v2409_v43, 0.0 }
 0x247   :  { %v2392_v2 = vrot.slane %v2391_v50, 4  ;;  %v2414_v40 = vadd.f32 %v2413_v46, %v2412_v25 }
 0x249   :  { %v2393_v15 = vadd.f32 %v2392_v2, %v2391_v50  ;;  %v2415_v32 = vrot.slane %v2414_v40, 4 }
 0x24b   :  { %v2394_v57 = vrot.slane %v2393_v15, 2  ;;  %v2416_v53 = vadd.f32 %v2415_v32, %v2414_v40 }
 0x24d   :  { %v2395_v5 = vadd.f32 %v2394_v57, %v2393_v15  ;;  %v2417_v42 = vrot.slane %v2416_v53, 2 }
 0x24f   :  { %v2396_v58 = vrot.slane %v2395_v5, 1  ;;  %v2418_v26 = vadd.f32 %v2417_v42, %v2416_v53 }
 0x251   :  { %v2397_v3 = vadd.f32 %v2396_v58, %v2395_v5  ;;  %v2419_v30 = vrot.slane %v2418_v26, 1 }
 0x253   :  { %v2398_v14 = vadd.f32 %v2397_v3, %v2358_v52  ;;  %v2420_v56 = vadd.f32 %v2419_v30, %v2418_v26 }
 0x255   :  { %v2421_v48 = vadd.f32 %v2420_v56, %v2370_v20  ;;  %2423 = vst.msk [vmem:[%s4509_s5] sm:$0x1] %vm2422_vm12, %v2398_v14 }
 0x257   :  { %2424 = vst.msk [vmem:[%s4509_s5 + $0x1] sm:$0x1] %vm2422_vm12, %v2421_v48 }

// kernel: residual_block_forward.3
= control target key start
LH: loop header
LB: loop body
LE: loop exit
PB: predicated region body
PF: predicated region fallthrough
CT: control target
= control target key end

     0   :  { %vm16_vm0 = vcmask 581632   ;;  %vm21_vm1 = vcmask 31744   ;;  %vm28_vm2 = vcmask 589344   ;;  %v3303_v3 = vmov 0.0   ;;  %s3304_s21 = smov 4   ;;  %s4506_s0 = inlined_call_operand.vmem [shape: f32[2,16,64], index: 0, kind: input, shape index: {}]   ;;  %s4507_s1 = inlined_call_operand.vmem [shape: f32[3,72,64], index: 1, kind: input, shape index: {}]   ;;  %s4508_s2 = inlined_call_operand.vmem [shape: f32[1,64], index: 2, kind: input, shape index: {}]   ;;  %s4509_s3 = inlined_call_operand.vmem [shape: f32[2,16,64], index: 3, kind: output, shape index: {0}]   ;;  %s4510_s4 = inlined_call_operand.vmem [shape: f32[1,2,64], index: 4, kind: output, shape index: {1}]  }
   0x1   :  { %v2430_v0 = vld [vmem:[%s4506_s0 + $0x10] sm:$0xff]  ;;  %v35_v1 = vld [vmem:[%s4506_s0] sm:$0xff]  ;;  %v2431_v2 = vld [vmem:[%s4506_s0 + $0x18] sm:$0xff]  ;;  %2739 = vmatprep.subr.mxu1 %v3303_v3  ;;  %18 = vst.msk [vmem:[#allocation2 + $0x11] sm:$0x1] %vm16_vm0, %v3303_v3  ;;  %2706 = vmatprep.subr.mxu0 %v3303_v3  ;;  %vm26_vm3 = vcmask 27648  }
   0x2   :  { %19 = vst.msk [vmem:[#allocation2 + $0x12] sm:$0x1] %vm16_vm0, %v3303_v3  ;;  %17 = vst.msk [vmem:[#allocation2] sm:$0x1] %vm16_vm0, %v3303_v3  ;;  %vm33_vm4 = vcmask 585248   ;;  %53 = vrot.lane.b32.xlu1 %v2430_v0, %s3304_s21  ;;  %39 = vrot.lane.b32.xlu0 %v35_v1, %s3304_s21  ;;  %v36_v4 = vld [vmem:[%s4506_s0 + $0x8] sm:$0xff] }
   0x3   :  { %25 = vst.msk [vmem:[#allocation2 + $0x18] sm:$0xff] %vm21_vm1, %v3303_v3  ;;  %23 = vst.msk [vmem:[#allocation2 + $0x8] sm:$0xff] %vm21_vm1, %v3303_v3  ;;  %v2440_v5 = vld [vmem:[%s4507_s1 + $0x88] sm:$0xff]  ;;  %v2439_v7 = vld [vmem:[%s4507_s1 + $0x80] sm:$0xff]  ;;  %vm3305_vm5 = vmmov 0   ;;  %vm45_vm6 = vcmask 556064  }
   0x4   :  { %20 = vst.msk [vmem:[#allocation2 + $0x23] sm:$0x1] %vm16_vm0, %v3303_v3  ;;  %v3367_v6 = vand.u32 4294901760, %v2440_v5  ;;  %v2438_v8 = vld [vmem:[%s4507_s1 + $0x78] sm:$0xff]  ;;  %v2437_v9 = vld [vmem:[%s4507_s1 + $0x70] sm:$0xff]  ;;  %2757 = vmatprep.mubr.msk.f32.mxu1 %vm3305_vm5, %v3303_v3  ;;  %2724 = vmatprep.mubr.msk.f32.mxu0 %vm3305_vm5, %v3303_v3  ;;  %v3388_v10 = vand.u32 4294901760, %v2439_v7 }
   0x5   :  { %24 = vst.msk [vmem:[#allocation2 + $0x10] sm:$0xff] %vm21_vm1, %v3303_v3  ;;  %22 = vst.msk [vmem:[#allocation2] sm:$0xff] %vm21_vm1, %v3303_v3  ;;  %v3390_v11 = vand.u32 4294901760, %v2438_v8  ;;  %v3392_v12 = vand.u32 4294901760, %v2437_v9  ;;  %v2436_v13 = vld [vmem:[%s4507_s1 + $0x68] sm:$0xff]  ;;  %v2435_v14 = vld [vmem:[%s4507_s1 + $0x60] sm:$0xff] }
   0x6   :  { %32 = vst.msk [vmem:[#allocation2 + $0x18] sm:$0xff] %vm28_vm2, %v3303_v3  ;;  %30 = vst.msk [vmem:[#allocation2 + $0x8] sm:$0xff] %vm28_vm2, %v3303_v3  ;;  %v2434_v15 = vld [vmem:[%s4507_s1 + $0x58] sm:$0xff]  ;;  %v3404_v16 = vsub.f32 %v2440_v5, %v3367_v6  ;;  %2707 = vmatpush3.msra.mxu0 %v3367_v6  ;;  %v3407_v17 = vand.u32 4294901760, %v2436_v13  ;;  %v3409_v18 = vand.u32 4294901760, %v2435_v14  ;;  %v2433_v20 = vld [vmem:[%s4507_s1 + $0x50] sm:$0xff]  ;;  %55 = vrot.lane.b32.xlu1 %v2431_v2, %s3304_s21 }
   0x7   :  { %27 = vst.msk [vmem:[#allocation2 + $0x20] sm:$0xf] %vm26_vm3, %v3303_v3  ;;  %v3411_v19 = vand.u32 4294901760, %v2434_v15  ;;  %41 = vrot.lane.b32.xlu0 %v36_v4, %s3304_s21  ;;  %v3419_v21 = vsub.f32 %v2439_v7, %v3388_v10  ;;  %v3422_v22 = vsub.f32 %v2438_v8, %v3390_v11  ;;  %v3425_v23 = vsub.f32 %v2437_v9, %v3392_v12  ;;  %v2432_v36 = vld [vmem:[%s4507_s1 + $0x48] sm:$0xff] }
   0x8   :  { %31 = vst.msk [vmem:[#allocation2 + $0x10] sm:$0xff] %vm28_vm2, %v3303_v3  ;;  %29 = vst.msk [vmem:[#allocation2] sm:$0xff] %vm28_vm2, %v3303_v3  ;;  %v247_v24 = vand.u32 4294901760, %v3404_v16  ;;  %2708 = vmatprep.subr.mxu0 %v3303_v3  ;;  %v3430_v25 = vsub.f32 %v2436_v13, %v3407_v17  ;;  %v3433_v26 = vsub.f32 %v2435_v14, %v3409_v18  ;;  %v3435_v27 = vand.u32 4294901760, %v2433_v20 }
   0x9   :  { %34 = vst.msk [vmem:[#allocation2 + $0x20] sm:$0xf] %vm33_vm4, %v3303_v3  ;;  %v254_v28 = vand.u32 4294901760, %v3419_v21  ;;  %v261_v29 = vand.u32 4294901760, %v3422_v22  ;;  %v268_v30 = vand.u32 4294901760, %v3425_v23  ;;  %2709 = vmatpush3.msra.mxu0 %v3388_v10  ;;  %v3447_v33 = vsub.f32 %v2434_v15, %v3411_v19 }
   0xa   :  { %v248_v31 = vsub.f32 %v3404_v16, %v247_v24  ;;  %v275_v32 = vand.u32 4294901760, %v3430_v25  ;;  %2710 = vmatprep.subr.mxu0 %v3303_v3  ;;  %v282_v39 = vand.u32 4294901760, %v3433_v26  ;;  %v3465_v40 = vsub.f32 %v2433_v20, %v3435_v27 }
   0xb   :  { %v255_v34 = vsub.f32 %v3419_v21, %v254_v28  ;;  %v262_v35 = vsub.f32 %v3422_v22, %v261_v29  ;;  %2711 = vmatpush3.msra.mxu0 %v3390_v11  ;;  %v269_v38 = vsub.f32 %v3425_v23, %v268_v30  ;;  %v289_v44 = vand.u32 4294901760, %v3447_v33 }
   0xc   :  { %v249_v37 = vand.u32 4294901760, %v248_v31  ;;  %2712 = vmatprep.subr.mxu0 %v3303_v3  ;;  %v276_v43 = vsub.f32 %v3430_v25, %v275_v32  ;;  %v3473_v45 = vand.u32 4294901760, %v2432_v36  ;;  %v283_v47 = vsub.f32 %v3433_v26, %v282_v39 }
   0xd   :  { %v256_v41 = vand.u32 4294901760, %v255_v34  ;;  %2713 = vmatpush3.msra.mxu0 %v3392_v12  ;;  %v263_v42 = vand.u32 4294901760, %v262_v35  ;;  %v270_v46 = vand.u32 4294901760, %v269_v38  ;;  %v296_v48 = vand.u32 4294901760, %v3465_v40 }
   0xe   :  { %2740 = vmatpush3.msra.mxu1 %v249_v37  ;;  %2714 = vmatprep.subr.mxu0 %v3303_v3  ;;  %v3483_v49 = vsub.f32 %v2432_v36, %v3473_v45  ;;  %v277_v50 = vand.u32 4294901760, %v276_v43  ;;  %v290_v51 = vsub.f32 %v3447_v33, %v289_v44  ;;  %v284_v53 = vand.u32 4294901760, %v283_v47 }
   0xf   :  { %2741 = vmatprep.subr.mxu1 %v3303_v3  ;;  %2715 = vmatpush3.msra.mxu0 %v3407_v17  ;;  %v297_v54 = vsub.f32 %v3465_v40, %v296_v48  ;;  %vm90_vm7 = vcmask 588800   ;;  %vm2344_vm8 = vcmask 523264   ;;  %vm2370_vm11 = vcmask 523266  }
  0x10   :  { %2742 = vmatpush3.msra.mxu1 %v256_v41  ;;  %2716 = vmatprep.subr.mxu0 %v3303_v3  ;;  %v303_v52 = vand.u32 4294901760, %v3483_v49  ;;  %v291_v55 = vand.u32 4294901760, %v290_v51  ;;  %vm2378_vm14 = vcmask 1045504   ;;  %vm2373_vm15 = vcmask 517120  }
  0x11   :  { %2743 = vmatprep.subr.mxu1 %v3303_v3  ;;  %2717 = vmatpush3.msra.mxu0 %v3409_v18  ;;  %v298_v57 = vand.u32 4294901760, %v297_v54  ;;  %vm2419_vm1 = vcmask 516096  }
  0x12   :  { %2744 = vmatpush3.msra.mxu1 %v263_v42  ;;  %2718 = vmatprep.subr.mxu0 %v3303_v3  ;;  %v304_v56 = vsub.f32 %v3483_v49, %v303_v52 }
  0x13   :  { %2745 = vmatprep.subr.mxu1 %v3303_v3  ;;  %2719 = vmatpush3.msra.mxu0 %v3411_v19 }
  0x14   :  { %2746 = vmatpush3.msra.mxu1 %v270_v46  ;;  %2720 = vmatprep.subr.mxu0 %v3303_v3  ;;  %v305_v58 = vand.u32 4294901760, %v304_v56 }
  0x15   :  { %2747 = vmatprep.subr.mxu1 %v3303_v3  ;;  %2721 = vmatpush3.msra.mxu0 %v3435_v27 }
  0x16   :  { %2748 = vmatpush3.msra.mxu1 %v277_v50  ;;  %2722 = vmatprep.subr.mxu0 %v3303_v3 }
  0x17   :  { %2749 = vmatprep.subr.mxu1 %v3303_v3  ;;  %2723 = vmatpush3.msra.mxu0 %v3473_v45 }
  0x18   :  { %2750 = vmatpush3.msra.mxu1 %v284_v53  ;;  %2772 = vmatprep.subr.mxu0 %v3303_v3 }
  0x19   :  { %2751 = vmatprep.subr.mxu1 %v3303_v3 }
  0x1a   :  { %2752 = vmatpush3.msra.mxu1 %v291_v55 }
  0x1b   :  { %2753 = vmatprep.subr.mxu1 %v3303_v3 }
  0x1c   :  { %2754 = vmatpush3.msra.mxu1 %v298_v57 }
  0x1d   :  { %2755 = vmatprep.subr.mxu1 %v3303_v3 }
  0x1e   :  { %2756 = vmatpush3.msra.mxu1 %v305_v58 }
  0x1f   :  { %2805 = vmatprep.subr.mxu1 %v3303_v3 }
  0x74   :  { %v54_v59 = vpop.permute.xlu1 %53  ;;  %v40_v60 = vpop.permute.xlu0 %39 }
  0x75   :  { %59 = vst.msk [vmem:[#allocation2 + $0x13] sm:$0xff] %vm45_vm6, %v54_v59  ;;  %46 = vst.msk [vmem:[#allocation2 + $0x1] sm:$0xff] %vm45_vm6, %v40_v60 }
  0x78   :  { %v56_v61 = vpop.permute.xlu1 %55 }
  0x79   :  { %v42_v62 = vpop.permute.xlu0 %41  ;;  %60 = vst.msk [vmem:[#allocation2 + $0x1b] sm:$0xff] %vm45_vm6, %v56_v61 }
  0x7a   :  { %47 = vst.msk [vmem:[#allocation2 + $0x9] sm:$0xff] %vm45_vm6, %v42_v62  ;;  %v73_v62 = vld [vmem:[%s4507_s1 + $0x38] sm:$0xff] }
  0x7c   :  { %v75_v63 = vld [vmem:[#allocation2 + $0x1] sm:$0xff]  ;;  %v77_v0 = vld [vmem:[#allocation2 + $0x11] sm:$0xff] }
  0x7d   :  { %v92_v1 = vsel %vm90_vm7, %v75_v63, 0  ;;  %v98_v2 = vsel %vm90_vm7, %v77_v0, 0  ;;  %v69_v63 = vld [vmem:[%s4507_s1 + $0x18] sm:$0xff] }
  0x7e   :  { %v3513_v4 = vand.u32 4294901760, %v92_v1  ;;  %v3519_v8 = vand.u32 4294901760, %v98_v2 }
  0x80   :  { %2758 = vmatmul.mubr.f32.vlgmr.msra.gmra.mxu1 %v3513_v4  ;;  %v3517_v7 = vsub.f32 %v92_v1, %v3513_v4  ;;  %v78_v9 = vld [vmem:[#allocation2 + $0x19] sm:$0xff]  ;;  %v3538_v35 = vsub.f32 %v98_v2, %v3519_v8  ;;  %v79_v36 = vld [vmem:[#allocation2 + $0x21] sm:$0x3]  ;;  %v68_v1 = vld [vmem:[%s4507_s1 + $0x10] sm:$0xff] }
  0x81   :  { %v76_v5 = vld [vmem:[#allocation2 + $0x9] sm:$0xff]  ;;  %2760 = vmatprep.mubr.msk.f32.mxu1 %vm3305_vm5, %v3303_v3  ;;  %2806 = vmatpush3.msra.mxu1 %v3367_v6  ;;  %v101_v20 = vsel %vm90_vm7, %v78_v9, 0  ;;  %v104_v46 = vsel %vm90_vm7, %v79_v36, 0  ;;  %v3744_v9 = vand.u32 4294901760, %v68_v1 }
  0x82   :  { %v95_v13 = vsel %vm90_vm7, %v76_v5, 0  ;;  %2807 = vmatprep.subr.mxu1 %v3303_v3  ;;  %v182_v15 = vand.u32 4294901760, %v3517_v7  ;;  %v3545_v41 = vand.u32 4294901760, %v101_v20  ;;  %v202_v43 = vand.u32 4294901760, %v3538_v35 }
  0x83   :  { %v3525_v14 = vand.u32 4294901760, %v95_v13  ;;  %2808 = vmatpush3.msra.mxu1 %v3388_v10  ;;  %v3563_v51 = vand.u32 4294901760, %v104_v46 }
  0x84   :  { %2809 = vmatprep.subr.mxu1 %v3303_v3  ;;  %v183_v31 = vsub.f32 %v3517_v7, %v182_v15  ;;  %v3558_v50 = vsub.f32 %v101_v20, %v3545_v41  ;;  %v203_v53 = vsub.f32 %v3538_v35, %v202_v43  ;;  %v66_v20 = vld [vmem:[%s4507_s1] sm:$0xff] }
  0x85   :  { %2761 = vmatmul.mubr.f32.gmra.mxu1 %v3525_v14  ;;  %v3535_v34 = vsub.f32 %v95_v13, %v3525_v14  ;;  %v3577_v55 = vsub.f32 %v104_v46, %v3563_v51  ;;  %v3776_v36 = vand.u32 4294901760, %v66_v20 }
  0x86   :  { %2763 = vmatprep.mubr.msk.f32.mxu1 %vm3305_vm5, %v3303_v3  ;;  %2810 = vmatpush3.msra.mxu1 %v3390_v11  ;;  %v184_v37 = vand.u32 4294901760, %v183_v31  ;;  %v212_v54 = vand.u32 4294901760, %v3558_v50  ;;  %v204_v56 = vand.u32 4294901760, %v203_v53 }
  0x87   :  { %2811 = vmatprep.subr.mxu1 %v3303_v3  ;;  %v192_v38 = vand.u32 4294901760, %v3535_v34  ;;  %v222_v58 = vand.u32 4294901760, %v3577_v55 }
  0x88   :  { %2812 = vmatpush3.msra.mxu1 %v3392_v12  ;;  %2725 = vmatmul.mubr.f32.vlgmr.msra.gmra.mxu0 %v184_v37  ;;  %v213_v57 = vsub.f32 %v3558_v50, %v212_v54 }
  0x89   :  { %2764 = vmatmul.mubr.f32.gmra.mxu1 %v3519_v8  ;;  %v193_v42 = vsub.f32 %v3535_v34, %v192_v38  ;;  %2773 = vmatpush3.msra.mxu0 %v3404_v16  ;;  %v223_v60 = vsub.f32 %v3577_v55, %v222_v58  ;;  %v72_v16 = vld [vmem:[%s4507_s1 + $0x30] sm:$0xff] }
  0x8a   :  { %2813 = vmatprep.subr.mxu1 %v3303_v3  ;;  %2774 = vmatprep.subr.mxu0 %v3303_v3  ;;  %v214_v59 = vand.u32 4294901760, %v213_v57 }
  0x8b   :  { %2727 = vmatprep.mubr.msk.f32.mxu0 %vm3305_vm5, %v3303_v3  ;;  %v194_v47 = vand.u32 4294901760, %v193_v42  ;;  %2766 = vmatprep.mubr.msk.f32.mxu1 %vm3305_vm5, %v3303_v3  ;;  %v224_v61 = vand.u32 4294901760, %v223_v60 }
  0x8c   :  { %2775 = vmatpush3.msra.mxu0 %v3419_v21  ;;  %2814 = vmatpush3.msra.mxu1 %v3407_v17  ;;  %v3666_v21 = vand.u32 4294901760, %v72_v16 }
  0x8d   :  { %2728 = vmatmul.mubr.f32.gmra.mxu0 %v194_v47  ;;  %2767 = vmatmul.mubr.f32.gmra.mxu1 %v3545_v41 }
  0x8e   :  { %2776 = vmatprep.subr.mxu0 %v3303_v3  ;;  %2815 = vmatprep.subr.mxu1 %v3303_v3 }
  0x8f   :  { %2777 = vmatpush3.msra.mxu0 %v3422_v22  ;;  %2816 = vmatpush3.msra.mxu1 %v3409_v18 }
  0x90   :  { %2778 = vmatprep.subr.mxu0 %v3303_v3  ;;  %2817 = vmatprep.subr.mxu1 %v3303_v3 }
  0x91   :  { %2730 = vmatprep.mubr.msk.f32.mxu0 %vm3305_vm5, %v3303_v3  ;;  %2769 = vmatprep.mubr.msk.f32.mxu1 %vm3305_vm5, %v3303_v3 }
  0x92   :  { %2779 = vmatpush3.msra.mxu0 %v3425_v23  ;;  %2818 = vmatpush3.msra.mxu1 %v3411_v19 }
  0x93   :  { %2731 = vmatmul.mubr.f32.gmra.mxu0 %v204_v56  ;;  %2770 = vmatmul.mubr.f32.gmra.mxu1 %v3563_v51  ;;  %v62_v56 = vld [vmem:[#allocation2 + $0x8] sm:$0xff] }
  0x94   :  { %2780 = vmatprep.subr.mxu0 %v3303_v3  ;;  %2819 = vmatprep.subr.mxu1 %v3303_v3  ;;  %v832_v60 = vsel %vm90_vm7, %v62_v56, 0  ;;  %v2444_v56 = vld [vmem:[%s4507_s1 + $0xa8] sm:$0xff] }
  0x95   :  { %2781 = vmatpush3.msra.mxu0 %v3430_v25  ;;  %2820 = vmatpush3.msra.mxu1 %v3435_v27 }
  0x96   :  { %2733 = vmatprep.mubr.msk.f32.mxu0 %vm3305_vm5, %v3303_v3  ;;  %2821 = vmatprep.subr.mxu1 %v3303_v3 }
  0x97   :  { %2782 = vmatprep.subr.mxu0 %v3303_v3  ;;  %2822 = vmatpush3.msra.mxu1 %v3473_v45 }
  0x98   :  { %2823 = vmatprep.mubr.msk.f32.mxu1 %vm3305_vm5, %v3303_v3  ;;  %2734 = vmatmul.mubr.f32.gmra.mxu0 %v214_v59 }
  0x99   :  { %2824 = vmatmul.mubr.f32.vlgmr.msra.gmra.mxu1 %v182_v15  ;;  %2783 = vmatpush3.msra.mxu0 %v3433_v26  ;;  %v67_v26 = vld [vmem:[%s4507_s1 + $0x8] sm:$0xff] }
  0x9a   :  { %2871 = vmatprep.subr.mxu1 %v3303_v3  ;;  %2784 = vmatprep.subr.mxu0 %v3303_v3 }
  0x9b   :  { %2736 = vmatprep.mubr.msk.f32.mxu0 %vm3305_vm5, %v3303_v3  ;;  %2785 = vmatpush3.msra.mxu0 %v3447_v33 }
  0x9c   :  { %2826 = vmatprep.mubr.msk.f32.mxu1 %vm3305_vm5, %v3303_v3  ;;  %2786 = vmatprep.subr.mxu0 %v3303_v3 }
  0x9d   :  { %2872 = vmatpush3.msra.mxu1 %v3367_v6  ;;  %2737 = vmatmul.mubr.f32.gmra.mxu0 %v224_v61  ;;  %v74_v6 = vld [vmem:[%s4507_s1 + $0x40] sm:$0xff] }
  0x9e   :  { %2827 = vmatmul.mubr.f32.gmra.mxu1 %v192_v38  ;;  %2787 = vmatpush3.msra.mxu0 %v3465_v40  ;;  %v3799_v38 = vsub.f32 %v66_v20, %v3776_v36 }
  0x9f   :  { %2873 = vmatprep.subr.mxu1 %v3303_v3  ;;  %2788 = vmatprep.subr.mxu0 %v3303_v3 }
  0xa0   :  { %2874 = vmatpush3.msra.mxu1 %v3388_v10  ;;  %2789 = vmatpush3.msra.mxu0 %v3483_v49  ;;  %v3636_v10 = vand.u32 4294901760, %v74_v6  ;;  %v1040_v47 = vand.u32 4294901760, %v3799_v38 }
  0xa1   :  { %2875 = vmatprep.subr.mxu1 %v3303_v3  ;;  %2790 = vmatprep.mubr.msk.f32.mxu0 %vm3305_vm5, %v3303_v3 }
  0xa2   :  { %2829 = vmatprep.mubr.msk.f32.mxu1 %vm3305_vm5, %v3303_v3  ;;  %2838 = vmatprep.subr.mxu0 %v3303_v3 }
  0xa3   :  { %2876 = vmatpush3.msra.mxu1 %v3390_v11  ;;  %2791 = vmatmul.mubr.f32.vlgmr.msra.gmra.mxu0 %v3517_v7  ;;  %v3650_v11 = vand.u32 4294901760, %v73_v62 }
  0xa4   :  { %2830 = vmatmul.mubr.f32.gmra.mxu1 %v202_v43  ;;  %2839 = vmatpush3.msra.mxu0 %v247_v24 }
  0xa5   :  { %2877 = vmatprep.subr.mxu1 %v3303_v3  ;;  %2840 = vmatprep.subr.mxu0 %v3303_v3  ;;  %v3674_v24 = vsub.f32 %v73_v62, %v3650_v11 }
  0xa6   :  { %2878 = vmatpush3.msra.mxu1 %v3392_v12  ;;  %2793 = vmatprep.mubr.msk.f32.mxu0 %vm3305_vm5, %v3303_v3  ;;  %v3658_v12 = vsub.f32 %v74_v6, %v3636_v10  ;;  %v63_v6 = vld [vmem:[#allocation2 + $0x10] sm:$0xff] }
  0xa7   :  { %2879 = vmatprep.subr.mxu1 %v3303_v3  ;;  %2832 = vmatprep.mubr.msk.f32.mxu1 %vm3305_vm5, %v3303_v3  ;;  %v991_v23 = vand.u32 4294901760, %v3674_v24 }
  0xa8   :  { %2841 = vmatpush3.msra.mxu0 %v254_v28  ;;  %2880 = vmatpush3.msra.mxu1 %v3407_v17  ;;  %v71_v17 = vld [vmem:[%s4507_s1 + $0x28] sm:$0xff]  ;;  %v984_v22 = vand.u32 4294901760, %v3658_v12 }
  0xa9   :  { %2794 = vmatmul.mubr.f32.gmra.mxu0 %v3535_v34  ;;  %2833 = vmatmul.mubr.f32.gmra.mxu1 %v212_v54  ;;  %v3684_v28 = vand.u32 4294901760, %v71_v17  ;;  %v3772_v34 = vsub.f32 %v68_v1, %v3744_v9 }
  0xaa   :  { %2842 = vmatprep.subr.mxu0 %v3303_v3  ;;  %2881 = vmatprep.subr.mxu1 %v3303_v3 }
  0xab   :  { %2843 = vmatpush3.msra.mxu0 %v261_v29  ;;  %2882 = vmatpush3.msra.mxu1 %v3409_v18  ;;  %v70_v18 = vld [vmem:[%s4507_s1 + $0x20] sm:$0xff]  ;;  %v3692_v29 = vsub.f32 %v72_v16, %v3666_v21  ;;  %v3713_v0 = vsub.f32 %v71_v17, %v3684_v28  ;;  %v1026_v49 = vand.u32 4294901760, %v3772_v34  ;;  %v835_v16 = vsel %vm90_vm7, %v63_v6, 0 }
  0xac   :  { %2844 = vmatprep.subr.mxu0 %v3303_v3  ;;  %2883 = vmatprep.subr.mxu1 %v3303_v3 }
  0xad   :  { %2796 = vmatprep.mubr.msk.f32.mxu0 %vm3305_vm5, %v3303_v3  ;;  %2835 = vmatprep.mubr.msk.f32.mxu1 %vm3305_vm5, %v3303_v3  ;;  %v998_v25 = vand.u32 4294901760, %v3692_v29  ;;  %v1005_v5 = vand.u32 4294901760, %v3713_v0 }
  0xae   :  { %2845 = vmatpush3.msra.mxu0 %v268_v30  ;;  %2884 = vmatpush3.msra.mxu1 %v3411_v19  ;;  %v985_v19 = vsub.f32 %v3658_v12, %v984_v22  ;;  %v3704_v30 = vand.u32 4294901760, %v70_v18 }
  0xaf   :  { %2797 = vmatmul.mubr.f32.gmra.mxu0 %v3538_v35  ;;  %2836 = vmatmul.mubr.f32.gmra.mxu1 %v222_v58  ;;  %v999_v7 = vsub.f32 %v3692_v29, %v998_v25  ;;  %v1006_v33 = vsub.f32 %v3713_v0, %v1005_v5 }
  0xb0   :  { %2846 = vmatprep.subr.mxu0 %v3303_v3  ;;  %2885 = vmatprep.subr.mxu1 %v3303_v3  ;;  %v986_v2 = vand.u32 4294901760, %v985_v19 }
  0xb1   :  { %2847 = vmatpush3.msra.mxu0 %v275_v32  ;;  %2886 = vmatpush3.msra.mxu1 %v3435_v27  ;;  %v992_v27 = vsub.f32 %v3674_v24, %v991_v23  ;;  %v3724_v32 = vand.u32 4294901760, %v69_v63  ;;  %v1000_v31 = vand.u32 4294901760, %v999_v7 }
  0xb2   :  { %2799 = vmatprep.mubr.msk.f32.mxu0 %vm3305_vm5, %v3303_v3  ;;  %2887 = vmatprep.subr.mxu1 %v3303_v3 }
  0xb3   :  { %2848 = vmatprep.subr.mxu0 %v3303_v3  ;;  %2888 = vmatpush3.msra.mxu1 %v3473_v45  ;;  %v3732_v45 = vsub.f32 %v70_v18, %v3704_v30  ;;  %v3754_v13 = vsub.f32 %v69_v63, %v3724_v32  ;;  %v64_v18 = vld [vmem:[#allocation2 + $0x18] sm:$0xff] }
  0xb4   :  { %2889 = vmatprep.mubr.msk.f32.mxu1 %vm3305_vm5, %v3303_v3  ;;  %2800 = vmatmul.mubr.f32.gmra.mxu0 %v3558_v50  ;;  %v61_v50 = vld [vmem:[#allocation2] sm:$0xff] }
  0xb5   :  { %2890 = vmatmul.mubr.f32.vlgmr.msra.gmra.mxu1 %v3513_v4  ;;  %2849 = vmatpush3.msra.mxu0 %v282_v39  ;;  %v993_v39 = vand.u32 4294901760, %v992_v27  ;;  %v1012_v15 = vand.u32 4294901760, %v3732_v45  ;;  %v1019_v35 = vand.u32 4294901760, %v3754_v13  ;;  %v838_v27 = vsel %vm90_vm7, %v64_v18, 0  ;;  %v2441_v18 = vld [vmem:[%s4507_s1 + $0x90] sm:$0xff] }
  0xb6   :  { %2937 = vmatprep.subr.mxu1 %v3303_v3  ;;  %2850 = vmatprep.subr.mxu0 %v3303_v3 }
  0xb7   :  { %2802 = vmatprep.mubr.msk.f32.mxu0 %vm3305_vm5, %v3303_v3  ;;  %2851 = vmatpush3.msra.mxu0 %v289_v44  ;;  %v3766_v44 = vand.u32 4294901760, %v67_v26  ;;  %v1013_v40 = vsub.f32 %v3732_v45, %v1012_v15 }
  0xb8   :  { %2892 = vmatprep.mubr.msk.f32.mxu1 %vm3305_vm5, %v3303_v3  ;;  %2852 = vmatprep.subr.mxu0 %v3303_v3 }
  0xb9   :  { %2938 = vmatpush3.msra.mxu1 %v986_v2  ;;  %2803 = vmatmul.mubr.f32.gmra.mxu0 %v3577_v55  ;;  %v3789_v37 = vsub.f32 %v67_v26, %v3766_v44  ;;  %v1014_v42 = vand.u32 4294901760, %v1013_v40  ;;  %v829_v55 = vsel %vm90_vm7, %v61_v50, 0  ;;  %v65_v2 = vld [vmem:[#allocation2 + $0x20] sm:$0x3]  ;;  %v3897_v26 = vand.u32 4294901760, %v838_v27 }
  0xba   :  { %2893 = vmatmul.mubr.f32.gmra.mxu1 %v3525_v14  ;;  %2853 = vmatpush3.msra.mxu0 %v296_v48  ;;  %v1007_v48 = vand.u32 4294901760, %v1006_v33  ;;  %v3834_v58 = vand.u32 4294901760, %v829_v55  ;;  %v841_v20 = vsel %vm90_vm7, %v65_v2, 0 }
  0xbb   :  { %2939 = vmatprep.subr.mxu1 %v3303_v3  ;;  %2854 = vmatprep.subr.mxu0 %v3303_v3  ;;  %v1033_v43 = vand.u32 4294901760, %v3789_v37  ;;  %v3915_v40 = vand.u32 4294901760, %v841_v20 }
  0xbc   :  { %2940 = vmatpush3.msra.mxu1 %v993_v39  ;;  %2855 = vmatpush3.msra.mxu0 %v303_v52  ;;  %v1020_v52 = vsub.f32 %v3754_v13, %v1019_v35  ;;  %v3845_v61 = vsub.f32 %v829_v55, %v3834_v58 }
  0xbd   :  { %2941 = vmatprep.subr.mxu1 %v3303_v3  ;;  %2856 = vmatprep.mubr.msk.f32.mxu0 %vm3305_vm5, %v3303_v3  ;;  %v1034_v53 = vsub.f32 %v3789_v37, %v1033_v43 }
  0xbe   :  { %2895 = vmatprep.mubr.msk.f32.mxu1 %vm3305_vm5, %v3303_v3  ;;  %2904 = vmatprep.subr.mxu0 %v3303_v3  ;;  %v1021_v46 = vand.u32 4294901760, %v1020_v52  ;;  %v919_v62 = vand.u32 4294901760, %v3845_v61 }
  0xbf   :  { %2942 = vmatpush3.msra.mxu1 %v1000_v31  ;;  %2857 = vmatmul.mubr.f32.vlgmr.msra.gmra.mxu0 %v3513_v4  ;;  %v1027_v4 = vsub.f32 %v3772_v34, %v1026_v49  ;;  %v1035_v57 = vand.u32 4294901760, %v1034_v53  ;;  %v3910_v31 = vsub.f32 %v838_v27, %v3897_v26 }
  0xc0   :  { %2896 = vmatmul.mubr.f32.gmra.mxu1 %v3519_v8  ;;  %2905 = vmatpush3.msra.mxu0 %v3636_v10  ;;  %v920_v19 = vsub.f32 %v3845_v61, %v919_v62 }
  0xc1   :  { %2943 = vmatprep.subr.mxu1 %v3303_v3  ;;  %2906 = vmatprep.subr.mxu0 %v3303_v3  ;;  %v1028_v54 = vand.u32 4294901760, %v1027_v4  ;;  %v949_v52 = vand.u32 4294901760, %v3910_v31 }
  0xc2   :  { %2944 = vmatpush3.msra.mxu1 %v1007_v48  ;;  %2859 = vmatprep.mubr.msk.f32.mxu0 %vm3305_vm5, %v3303_v3  ;;  %v921_v1 = vand.u32 4294901760, %v920_v19 }
  0xc3   :  { %2945 = vmatprep.subr.mxu1 %v3303_v3  ;;  %2898 = vmatprep.mubr.msk.f32.mxu1 %vm3305_vm5, %v3303_v3 }
  0xc4   :  { %2907 = vmatpush3.msra.mxu0 %v3650_v11  ;;  %2946 = vmatpush3.msra.mxu1 %v1014_v42  ;;  %v3929_v42 = vsub.f32 %v841_v20, %v3915_v40 }
  0xc5   :  { %2860 = vmatmul.mubr.f32.gmra.mxu0 %v3525_v14  ;;  %2899 = vmatmul.mubr.f32.gmra.mxu1 %v3545_v41  ;;  %v1041_v14 = vsub.f32 %v3799_v38, %v1040_v47 }
  0xc6   :  { %2908 = vmatprep.subr.mxu0 %v3303_v3  ;;  %2947 = vmatprep.subr.mxu1 %v3303_v3  ;;  %v959_v50 = vand.u32 4294901760, %v3929_v42 }
  0xc7   :  { %2909 = vmatpush3.msra.mxu0 %v3666_v21  ;;  %2948 = vmatpush3.msra.mxu1 %v1021_v46  ;;  %v1042_v59 = vand.u32 4294901760, %v1041_v14  ;;  %v950_v46 = vsub.f32 %v3910_v31, %v949_v52  ;;  %v2448_v14 = vld [vmem:[%s4507_s1 + $0xc8] sm:$0xff] }
  0xc8   :  { %2910 = vmatprep.subr.mxu0 %v3303_v3  ;;  %2949 = vmatprep.subr.mxu1 %v3303_v3 }
  0xc9   :  { %2862 = vmatprep.mubr.msk.f32.mxu0 %vm3305_vm5, %v3303_v3  ;;  %2901 = vmatprep.mubr.msk.f32.mxu1 %vm3305_vm5, %v3303_v3  ;;  %v951_v53 = vand.u32 4294901760, %v950_v46 }
  0xca   :  { %2911 = vmatpush3.msra.mxu0 %v3684_v28  ;;  %2950 = vmatpush3.msra.mxu1 %v1028_v54  ;;  %v960_v54 = vsub.f32 %v3929_v42, %v959_v50 }
  0xcb   :  { %2863 = vmatmul.mubr.f32.gmra.mxu0 %v3519_v8  ;;  %2902 = vmatmul.mubr.f32.gmra.mxu1 %v3563_v51  ;;  %v3849_v8 = vand.u32 4294901760, %v832_v60 }
  0xcc   :  { %2912 = vmatprep.subr.mxu0 %v3303_v3  ;;  %2951 = vmatprep.subr.mxu1 %v3303_v3  ;;  %v961_v55 = vand.u32 4294901760, %v960_v54 }
  0xcd   :  { %2913 = vmatpush3.msra.mxu0 %v3704_v30  ;;  %2952 = vmatpush3.msra.mxu1 %v1035_v57  ;;  %v3863_v17 = vsub.f32 %v832_v60, %v3849_v8 }
  0xce   :  { %2865 = vmatprep.mubr.msk.f32.mxu0 %vm3305_vm5, %v3303_v3  ;;  %2953 = vmatprep.subr.mxu1 %v3303_v3 }
  0xcf   :  { %2914 = vmatprep.subr.mxu0 %v3303_v3  ;;  %2954 = vmatpush3.msra.mxu1 %v1042_v59  ;;  %v929_v63 = vand.u32 4294901760, %v3863_v17  ;;  %v2443_v59 = vld [vmem:[%s4507_s1 + $0xa0] sm:$0xff] }
  0xd0   :  { %2955 = vmatprep.mubr.msk.f32.mxu1 %vm3305_vm5, %v3303_v3  ;;  %2866 = vmatmul.mubr.f32.gmra.mxu0 %v3545_v41  ;;  %v3870_v41 = vand.u32 4294901760, %v835_v16 }
  0xd1   :  { %2956 = vmatmul.mubr.f32.vlgmr.msra.gmra.mxu1 %v3834_v58  ;;  %2915 = vmatpush3.msra.mxu0 %v3724_v32  ;;  %v930_v7 = vsub.f32 %v3863_v17, %v929_v63 }
  0xd2   :  { %3003 = vmatprep.subr.mxu1 %v3303_v3  ;;  %2916 = vmatprep.subr.mxu0 %v3303_v3 }
  0xd3   :  { %2868 = vmatprep.mubr.msk.f32.mxu0 %vm3305_vm5, %v3303_v3  ;;  %2917 = vmatpush3.msra.mxu0 %v3744_v9  ;;  %v931_v33 = vand.u32 4294901760, %v930_v7 }
  0xd4   :  { %2958 = vmatprep.mubr.msk.f32.mxu1 %vm3305_vm5, %v3303_v3  ;;  %2918 = vmatprep.subr.mxu0 %v3303_v3 }
  0xd5   :  { %3004 = vmatpush3.msra.mxu1 %v3636_v10  ;;  %2869 = vmatmul.mubr.f32.gmra.mxu0 %v3563_v51  ;;  %v3886_v51 = vsub.f32 %v835_v16, %v3870_v41 }
  0xd6   :  { %2959 = vmatmul.mubr.f32.gmra.mxu1 %v3849_v8  ;;  %2919 = vmatpush3.msra.mxu0 %v3766_v44 }
  0xd7   :  { %3005 = vmatprep.subr.mxu1 %v3303_v3  ;;  %2920 = vmatprep.subr.mxu0 %v3303_v3  ;;  %v939_v39 = vand.u32 4294901760, %v3886_v51 }
  0xd8   :  { %3006 = vmatpush3.msra.mxu1 %v3650_v11  ;;  %2921 = vmatpush3.msra.mxu0 %v3776_v36 }
  0xd9   :  { %3007 = vmatprep.subr.mxu1 %v3303_v3  ;;  %2922 = vmatprep.mubr.msk.f32.mxu0 %vm3305_vm5, %v3303_v3  ;;  %v940_v48 = vsub.f32 %v3886_v51, %v939_v39 }
  0xda   :  { %2961 = vmatprep.mubr.msk.f32.mxu1 %vm3305_vm5, %v3303_v3  ;;  %2970 = vmatprep.subr.mxu0 %v3303_v3 }
  0xdb   :  { %3008 = vmatpush3.msra.mxu1 %v3666_v21  ;;  %2923 = vmatmul.mubr.f32.vlgmr.msra.gmra.mxu0 %v921_v1  ;;  %v941_v4 = vand.u32 4294901760, %v940_v48 }
  0xdc   :  { %2962 = vmatmul.mubr.f32.gmra.mxu1 %v3870_v41  ;;  %2971 = vmatpush3.msra.mxu0 %v3658_v12  ;;  %v4006_v12 = vand.u32 4294901760, %v2448_v14 }
  0xdd   :  { %3009 = vmatprep.subr.mxu1 %v3303_v3  ;;  %2972 = vmatprep.subr.mxu0 %v3303_v3 }
  0xde   :  { %3010 = vmatpush3.msra.mxu1 %v3684_v28  ;;  %2925 = vmatprep.mubr.msk.f32.mxu0 %vm3305_vm5, %v3303_v3 }
  0xdf   :  { %3011 = vmatprep.subr.mxu1 %v3303_v3  ;;  %2964 = vmatprep.mubr.msk.f32.mxu1 %vm3305_vm5, %v3303_v3 }
  0xe0   :  { %2973 = vmatpush3.msra.mxu0 %v3674_v24  ;;  %3012 = vmatpush3.msra.mxu1 %v3704_v30 }
  0xe1   :  { %2926 = vmatmul.mubr.f32.gmra.mxu0 %v931_v33  ;;  %2965 = vmatmul.mubr.f32.gmra.mxu1 %v3897_v26 }
  0xe2   :  { %2974 = vmatprep.subr.mxu0 %v3303_v3  ;;  %3013 = vmatprep.subr.mxu1 %v3303_v3 }
  0xe3   :  { %2975 = vmatpush3.msra.mxu0 %v3692_v29  ;;  %3014 = vmatpush3.msra.mxu1 %v3724_v32 }
  0xe4   :  { %2976 = vmatprep.subr.mxu0 %v3303_v3  ;;  %3015 = vmatprep.subr.mxu1 %v3303_v3 }
  0xe5   :  { %2928 = vmatprep.mubr.msk.f32.mxu0 %vm3305_vm5, %v3303_v3  ;;  %2967 = vmatprep.mubr.msk.f32.mxu1 %vm3305_vm5, %v3303_v3 }
  0xe6   :  { %2977 = vmatpush3.msra.mxu0 %v3713_v0  ;;  %3016 = vmatpush3.msra.mxu1 %v3744_v9 }
  0xe7   :  { %2929 = vmatmul.mubr.f32.gmra.mxu0 %v941_v4  ;;  %2968 = vmatmul.mubr.f32.gmra.mxu1 %v3915_v40  ;;  %v1566_v4 = vld [vmem:[#allocation2 + $0xa] sm:$0xff] }
  0xe8   :  { %2978 = vmatprep.subr.mxu0 %v3303_v3  ;;  %3017 = vmatprep.subr.mxu1 %v3303_v3  ;;  %v1584_v54 = vsel %vm90_vm7, %v1566_v4, 0 }
  0xe9   :  { %2979 = vmatpush3.msra.mxu0 %v3732_v45  ;;  %3018 = vmatpush3.msra.mxu1 %v3766_v44 }
  0xea   :  { %2931 = vmatprep.mubr.msk.f32.mxu0 %vm3305_vm5, %v3303_v3  ;;  %3019 = vmatprep.subr.mxu1 %v3303_v3 }
  0xeb   :  { %2980 = vmatprep.subr.mxu0 %v3303_v3  ;;  %3020 = vmatpush3.msra.mxu1 %v3776_v36 }
  0xec   :  { %3021 = vmatprep.mubr.msk.f32.mxu1 %vm3305_vm5, %v3303_v3  ;;  %2932 = vmatmul.mubr.f32.gmra.mxu0 %v951_v53 }
  0xed   :  { %3022 = vmatmul.mubr.f32.vlgmr.msra.gmra.mxu1 %v919_v62  ;;  %2981 = vmatpush3.msra.mxu0 %v3754_v13  ;;  %v4100_v62 = vand.u32 4294901760, %v2443_v59  ;;  %v2442_v13 = vld [vmem:[%s4507_s1 + $0x98] sm:$0xff] }
  0xee   :  { %3069 = vmatprep.subr.mxu1 %v3303_v3  ;;  %2982 = vmatprep.subr.mxu0 %v3303_v3 }
  0xef   :  { %2934 = vmatprep.mubr.msk.f32.mxu0 %vm3305_vm5, %v3303_v3  ;;  %2983 = vmatpush3.msra.mxu0 %v3772_v34 }
  0xf0   :  { %3024 = vmatprep.mubr.msk.f32.mxu1 %vm3305_vm5, %v3303_v3  ;;  %2984 = vmatprep.subr.mxu0 %v3303_v3 }
  0xf1   :  { %3070 = vmatpush3.msra.mxu1 %v3636_v10  ;;  %2935 = vmatmul.mubr.f32.gmra.mxu0 %v961_v55  ;;  %v2449_v10 = vld [vmem:[%s4507_s1 + $0xd0] sm:$0xff] }
  0xf2   :  { %3025 = vmatmul.mubr.f32.gmra.mxu1 %v929_v63  ;;  %2985 = vmatpush3.msra.mxu0 %v3789_v37  ;;  %v4128_v63 = vsub.f32 %v2443_v59, %v4100_v62 }
  0xf3   :  { %3071 = vmatprep.subr.mxu1 %v3303_v3  ;;  %2986 = vmatprep.subr.mxu0 %v3303_v3 }
  0xf4   :  { %3072 = vmatpush3.msra.mxu1 %v3650_v11  ;;  %2987 = vmatpush3.msra.mxu0 %v3799_v38  ;;  %v3992_v11 = vand.u32 4294901760, %v2449_v10  ;;  %v1778_v38 = vand.u32 4294901760, %v4128_v63 }
  0xf5   :  { %3073 = vmatprep.subr.mxu1 %v3303_v3  ;;  %2988 = vmatprep.mubr.msk.f32.mxu0 %vm3305_vm5, %v3303_v3 }
  0xf6   :  { %3027 = vmatprep.mubr.msk.f32.mxu1 %vm3305_vm5, %v3303_v3  ;;  %3036 = vmatprep.subr.mxu0 %v3303_v3 }
  0xf7   :  { %3074 = vmatpush3.msra.mxu1 %v3666_v21  ;;  %2989 = vmatmul.mubr.f32.vlgmr.msra.gmra.mxu0 %v3845_v61  ;;  %v2447_v21 = vld [vmem:[%s4507_s1 + $0xc0] sm:$0xff] }
  0xf8   :  { %3028 = vmatmul.mubr.f32.gmra.mxu1 %v939_v39  ;;  %3037 = vmatpush3.msra.mxu0 %v984_v22  ;;  %v4014_v22 = vsub.f32 %v2449_v10, %v3992_v11  ;;  %v4022_v24 = vand.u32 4294901760, %v2447_v21  ;;  %v1567_v10 = vld [vmem:[#allocation2 + $0x12] sm:$0xff] }
  0xf9   :  { %3075 = vmatprep.subr.mxu1 %v3303_v3  ;;  %3038 = vmatprep.subr.mxu0 %v3303_v3 }
  0xfa   :  { %3076 = vmatpush3.msra.mxu1 %v3684_v28  ;;  %2991 = vmatprep.mubr.msk.f32.mxu0 %vm3305_vm5, %v3303_v3  ;;  %v2446_v28 = vld [vmem:[%s4507_s1 + $0xb8] sm:$0xff]  ;;  %v1736_v29 = vand.u32 4294901760, %v4014_v22 }
  0xfb   :  { %3077 = vmatprep.subr.mxu1 %v3303_v3  ;;  %3030 = vmatprep.mubr.msk.f32.mxu1 %vm3305_vm5, %v3303_v3 }
  0xfc   :  { %3039 = vmatpush3.msra.mxu0 %v991_v23  ;;  %3078 = vmatpush3.msra.mxu1 %v3704_v30  ;;  %v4030_v23 = vsub.f32 %v2448_v14, %v4006_v12  ;;  %v4040_v30 = vand.u32 4294901760, %v2446_v28 }
  0xfd   :  { %2992 = vmatmul.mubr.f32.gmra.mxu0 %v3863_v17  ;;  %3031 = vmatmul.mubr.f32.gmra.mxu1 %v949_v52 }
  0xfe   :  { %3040 = vmatprep.subr.mxu0 %v3303_v3  ;;  %3079 = vmatprep.subr.mxu1 %v3303_v3  ;;  %v1743_v0 = vand.u32 4294901760, %v4030_v23  ;;  %v4069_v57 = vsub.f32 %v2446_v28, %v4040_v30 }
  0xff   :  { %3041 = vmatpush3.msra.mxu0 %v998_v25  ;;  %3080 = vmatpush3.msra.mxu1 %v3724_v32  ;;  %v2445_v25 = vld [vmem:[%s4507_s1 + $0xb0] sm:$0xff]  ;;  %v4048_v32 = vsub.f32 %v2447_v21, %v4022_v24  ;;  %v1587_v21 = vsel %vm90_vm7, %v1567_v10, 0 }
 0x100   :  { %3042 = vmatprep.subr.mxu0 %v3303_v3  ;;  %3081 = vmatprep.subr.mxu1 %v3303_v3  ;;  %v1757_v61 = vand.u32 4294901760, %v4069_v57 }
 0x101   :  { %2994 = vmatprep.mubr.msk.f32.mxu0 %vm3305_vm5, %v3303_v3  ;;  %3033 = vmatprep.mubr.msk.f32.mxu1 %vm3305_vm5, %v3303_v3  ;;  %v1750_v45 = vand.u32 4294901760, %v4048_v32 }
 0x102   :  { %3043 = vmatpush3.msra.mxu0 %v1005_v5  ;;  %3082 = vmatpush3.msra.mxu1 %v3744_v9  ;;  %v1737_v5 = vsub.f32 %v4014_v22, %v1736_v29  ;;  %v4060_v9 = vand.u32 4294901760, %v2445_v25  ;;  %v1758_v34 = vsub.f32 %v4069_v57, %v1757_v61 }
 0x103   :  { %2995 = vmatmul.mubr.f32.gmra.mxu0 %v3886_v51  ;;  %3034 = vmatmul.mubr.f32.gmra.mxu1 %v959_v50  ;;  %v1751_v6 = vsub.f32 %v4048_v32, %v1750_v45  ;;  %v4132_v51 = vand.u32 4294901760, %v2441_v18 }
 0x104   :  { %3044 = vmatprep.subr.mxu0 %v3303_v3  ;;  %3083 = vmatprep.subr.mxu1 %v3303_v3  ;;  %v1738_v60 = vand.u32 4294901760, %v1737_v5 }
 0x105   :  { %3045 = vmatpush3.msra.mxu0 %v1012_v15  ;;  %3084 = vmatpush3.msra.mxu1 %v3766_v44  ;;  %v1744_v15 = vsub.f32 %v4030_v23, %v1743_v0  ;;  %v4080_v44 = vand.u32 4294901760, %v2444_v56  ;;  %v1752_v19 = vand.u32 4294901760, %v1751_v6  ;;  %v4155_v2 = vsub.f32 %v2441_v18, %v4132_v51 }
 0x106   :  { %2997 = vmatprep.mubr.msk.f32.mxu0 %vm3305_vm5, %v3303_v3  ;;  %3085 = vmatprep.subr.mxu1 %v3303_v3 }
 0x107   :  { %3046 = vmatprep.subr.mxu0 %v3303_v3  ;;  %3086 = vmatpush3.msra.mxu1 %v3776_v36  ;;  %v4088_v36 = vsub.f32 %v2445_v25, %v4060_v9  ;;  %v4110_v16 = vsub.f32 %v2444_v56, %v4080_v44  ;;  %v1792_v33 = vand.u32 4294901760, %v4155_v2  ;;  %v1568_v25 = vld [vmem:[#allocation2 + $0x1a] sm:$0xff] }
 0x108   :  { %3087 = vmatprep.mubr.msk.f32.mxu1 %vm3305_vm5, %v3303_v3  ;;  %2998 = vmatmul.mubr.f32.gmra.mxu0 %v3910_v31  ;;  %v1565_v31 = vld [vmem:[#allocation2 + $0x2] sm:$0xff] }
 0x109   :  { %3088 = vmatmul.mubr.f32.vlgmr.msra.gmra.mxu1 %v3834_v58  ;;  %3047 = vmatpush3.msra.mxu0 %v1019_v35  ;;  %v1745_v35 = vand.u32 4294901760, %v1744_v15  ;;  %v1764_v17 = vand.u32 4294901760, %v4088_v36  ;;  %v1771_v27 = vand.u32 4294901760, %v4110_v16  ;;  %v1590_v15 = vsel %vm90_vm7, %v1568_v25, 0 }
 0x10a   :  { %3135 = vmatprep.subr.mxu1 %v3303_v3  ;;  %3048 = vmatprep.subr.mxu0 %v3303_v3 }
 0x10b   :  { %3000 = vmatprep.mubr.msk.f32.mxu0 %vm3305_vm5, %v3303_v3  ;;  %3049 = vmatpush3.msra.mxu0 %v1026_v49  ;;  %v4122_v49 = vand.u32 4294901760, %v2442_v13  ;;  %v1765_v37 = vsub.f32 %v4088_v36, %v1764_v17 }
 0x10c   :  { %3090 = vmatprep.mubr.msk.f32.mxu1 %vm3305_vm5, %v3303_v3  ;;  %3050 = vmatprep.subr.mxu0 %v3303_v3 }
 0x10d   :  { %3136 = vmatpush3.msra.mxu1 %v1738_v60  ;;  %3001 = vmatmul.mubr.f32.gmra.mxu0 %v3929_v42  ;;  %v4145_v1 = vsub.f32 %v2442_v13, %v4122_v49  ;;  %v1766_v7 = vand.u32 4294901760, %v1765_v37  ;;  %v1581_v42 = vsel %vm90_vm7, %v1565_v31, 0  ;;  %v1569_v60 = vld [vmem:[#allocation2 + $0x22] sm:$0x3]  ;;  %v4253_v13 = vand.u32 4294901760, %v1590_v15 }
 0x10e   :  { %3091 = vmatmul.mubr.f32.gmra.mxu1 %v3849_v8  ;;  %3051 = vmatpush3.msra.mxu0 %v1033_v43  ;;  %v1759_v43 = vand.u32 4294901760, %v1758_v34  ;;  %v4190_v50 = vand.u32 4294901760, %v1581_v42  ;;  %v1593_v18 = vsel %vm90_vm7, %v1569_v60, 0 }
 0x10f   :  { %3137 = vmatprep.subr.mxu1 %v3303_v3  ;;  %3052 = vmatprep.subr.mxu0 %v3303_v3  ;;  %v1785_v39 = vand.u32 4294901760, %v4145_v1  ;;  %v4271_v37 = vand.u32 4294901760, %v1593_v18 }
 0x110   :  { %3138 = vmatpush3.msra.mxu1 %v1745_v35  ;;  %3053 = vmatpush3.msra.mxu0 %v1040_v47  ;;  %v1772_v47 = vsub.f32 %v4110_v16, %v1771_v27  ;;  %v4201_v55 = vsub.f32 %v1581_v42, %v4190_v50 }
 0x111   :  { %3139 = vmatprep.subr.mxu1 %v3303_v3  ;;  %3054 = vmatprep.mubr.msk.f32.mxu0 %vm3305_vm5, %v3303_v3  ;;  %v1786_v48 = vsub.f32 %v4145_v1, %v1785_v39 }
 0x112   :  { %3093 = vmatprep.mubr.msk.f32.mxu1 %vm3305_vm5, %v3303_v3  ;;  %3102 = vmatprep.subr.mxu0 %v3303_v3  ;;  %v1773_v20 = vand.u32 4294901760, %v1772_v47  ;;  %v1671_v14 = vand.u32 4294901760, %v4201_v55 }
 0x113   :  { %3140 = vmatpush3.msra.mxu1 %v1752_v19  ;;  %3055 = vmatmul.mubr.f32.vlgmr.msra.gmra.mxu0 %v3834_v58  ;;  %v1779_v58 = vsub.f32 %v4128_v63, %v1778_v38  ;;  %v1787_v46 = vand.u32 4294901760, %v1786_v48  ;;  %v4266_v19 = vsub.f32 %v1590_v15, %v4253_v13 }
 0x114   :  { %3094 = vmatmul.mubr.f32.gmra.mxu1 %v3870_v41  ;;  %3103 = vmatpush3.msra.mxu0 %v3992_v11  ;;  %v1672_v5 = vsub.f32 %v4201_v55, %v1671_v14 }
 0x115   :  { %3141 = vmatprep.subr.mxu1 %v3303_v3  ;;  %3104 = vmatprep.subr.mxu0 %v3303_v3  ;;  %v1780_v52 = vand.u32 4294901760, %v1779_v58  ;;  %v1701_v47 = vand.u32 4294901760, %v4266_v19 }
 0x116   :  { %3142 = vmatpush3.msra.mxu1 %v1759_v43  ;;  %3057 = vmatprep.mubr.msk.f32.mxu0 %vm3305_vm5, %v3303_v3  ;;  %v1673_v59 = vand.u32 4294901760, %v1672_v5 }
 0x117   :  { %3143 = vmatprep.subr.mxu1 %v3303_v3  ;;  %3096 = vmatprep.mubr.msk.f32.mxu1 %vm3305_vm5, %v3303_v3 }
 0x118   :  { %3105 = vmatpush3.msra.mxu0 %v4006_v12  ;;  %3144 = vmatpush3.msra.mxu1 %v1766_v7  ;;  %v4285_v7 = vsub.f32 %v1593_v18, %v4271_v37 }
 0x119   :  { %3058 = vmatmul.mubr.f32.gmra.mxu0 %v3849_v8  ;;  %3097 = vmatmul.mubr.f32.gmra.mxu1 %v3897_v26  ;;  %v1793_v8 = vsub.f32 %v4155_v2, %v1792_v33 }
 0x11a   :  { %3106 = vmatprep.subr.mxu0 %v3303_v3  ;;  %3145 = vmatprep.subr.mxu1 %v3303_v3  ;;  %v1711_v31 = vand.u32 4294901760, %v4285_v7 }
 0x11b   :  { %3107 = vmatpush3.msra.mxu0 %v4022_v24  ;;  %3146 = vmatpush3.msra.mxu1 %v1773_v20  ;;  %v1794_v53 = vand.u32 4294901760, %v1793_v8  ;;  %v1702_v20 = vsub.f32 %v4266_v19, %v1701_v47 }
 0x11c   :  { %3108 = vmatprep.subr.mxu0 %v3303_v3  ;;  %3147 = vmatprep.subr.mxu1 %v3303_v3 }
 0x11d   :  { %3060 = vmatprep.mubr.msk.f32.mxu0 %vm3305_vm5, %v3303_v3  ;;  %3099 = vmatprep.mubr.msk.f32.mxu1 %vm3305_vm5, %v3303_v3  ;;  %v1703_v48 = vand.u32 4294901760, %v1702_v20 }
 0x11e   :  { %3109 = vmatpush3.msra.mxu0 %v4040_v30  ;;  %3148 = vmatpush3.msra.mxu1 %v1780_v52  ;;  %v1712_v52 = vsub.f32 %v4285_v7, %v1711_v31 }
 0x11f   :  { %3061 = vmatmul.mubr.f32.gmra.mxu0 %v3870_v41  ;;  %3100 = vmatmul.mubr.f32.gmra.mxu1 %v3915_v40  ;;  %v4205_v41 = vand.u32 4294901760, %v1584_v54 }
 0x120   :  { %3110 = vmatprep.subr.mxu0 %v3303_v3  ;;  %3149 = vmatprep.subr.mxu1 %v3303_v3  ;;  %v1713_v4 = vand.u32 4294901760, %v1712_v52 }
 0x121   :  { %3111 = vmatpush3.msra.mxu0 %v4060_v9  ;;  %3150 = vmatpush3.msra.mxu1 %v1787_v46  ;;  %v4219_v28 = vsub.f32 %v1584_v54, %v4205_v41 }
 0x122   :  { %3063 = vmatprep.mubr.msk.f32.mxu0 %vm3305_vm5, %v3303_v3  ;;  %3151 = vmatprep.subr.mxu1 %v3303_v3 }
 0x123   :  { %3112 = vmatprep.subr.mxu0 %v3303_v3  ;;  %3152 = vmatpush3.msra.mxu1 %v1794_v53  ;;  %v1681_v56 = vand.u32 4294901760, %v4219_v28 }
 0x124   :  { %3153 = vmatprep.mubr.msk.f32.mxu1 %vm3305_vm5, %v3303_v3  ;;  %3064 = vmatmul.mubr.f32.gmra.mxu0 %v3897_v26  ;;  %v4226_v26 = vand.u32 4294901760, %v1587_v21 }
 0x125   :  { %3154 = vmatmul.mubr.f32.vlgmr.msra.gmra.mxu1 %v4190_v50  ;;  %3113 = vmatpush3.msra.mxu0 %v4080_v44  ;;  %v1682_v6 = vsub.f32 %v4219_v28, %v1681_v56 }
 0x126   :  { %3201 = vmatprep.subr.mxu1 %v3303_v3  ;;  %3114 = vmatprep.subr.mxu0 %v3303_v3 }
 0x127   :  { %3066 = vmatprep.mubr.msk.f32.mxu0 %vm3305_vm5, %v3303_v3  ;;  %3115 = vmatpush3.msra.mxu0 %v4100_v62  ;;  %v1683_v34 = vand.u32 4294901760, %v1682_v6 }
 0x128   :  { %3156 = vmatprep.mubr.msk.f32.mxu1 %vm3305_vm5, %v3303_v3  ;;  %3116 = vmatprep.subr.mxu0 %v3303_v3 }
 0x129   :  { %3202 = vmatpush3.msra.mxu1 %v3992_v11  ;;  %3067 = vmatmul.mubr.f32.gmra.mxu0 %v3915_v40  ;;  %v4242_v40 = vsub.f32 %v1587_v21, %v4226_v26 }
 0x12a   :  { %3157 = vmatmul.mubr.f32.gmra.mxu1 %v4205_v41  ;;  %3117 = vmatpush3.msra.mxu0 %v4122_v49 }
 0x12b   :  { %3203 = vmatprep.subr.mxu1 %v3303_v3  ;;  %3118 = vmatprep.subr.mxu0 %v3303_v3  ;;  %v1691_v35 = vand.u32 4294901760, %v4242_v40 }
 0x12c   :  { %3204 = vmatpush3.msra.mxu1 %v4006_v12  ;;  %3119 = vmatpush3.msra.mxu0 %v4132_v51 }
 0x12d   :  { %3205 = vmatprep.subr.mxu1 %v3303_v3  ;;  %3120 = vmatprep.mubr.msk.f32.mxu0 %vm3305_vm5, %v3303_v3  ;;  %v1692_v43 = vsub.f32 %v4242_v40, %v1691_v35 }
 0x12e   :  { %3159 = vmatprep.mubr.msk.f32.mxu1 %vm3305_vm5, %v3303_v3  ;;  %3168 = vmatprep.subr.mxu0 %v3303_v3 }
 0x12f   :  { %3206 = vmatpush3.msra.mxu1 %v4022_v24  ;;  %3121 = vmatmul.mubr.f32.vlgmr.msra.gmra.mxu0 %v1673_v59  ;;  %v1693_v58 = vand.u32 4294901760, %v1692_v43 }
 0x130   :  { %3160 = vmatmul.mubr.f32.gmra.mxu1 %v4226_v26  ;;  %3169 = vmatpush3.msra.mxu0 %v4014_v22 }
 0x131   :  { %3207 = vmatprep.subr.mxu1 %v3303_v3  ;;  %3170 = vmatprep.subr.mxu0 %v3303_v3 }
 0x132   :  { %3208 = vmatpush3.msra.mxu1 %v4040_v30  ;;  %3123 = vmatprep.mubr.msk.f32.mxu0 %vm3305_vm5, %v3303_v3 }
 0x133   :  { %3209 = vmatprep.subr.mxu1 %v3303_v3  ;;  %3162 = vmatprep.mubr.msk.f32.mxu1 %vm3305_vm5, %v3303_v3 }
 0x134   :  { %3171 = vmatpush3.msra.mxu0 %v4030_v23  ;;  %3210 = vmatpush3.msra.mxu1 %v4060_v9 }
 0x135   :  { %3124 = vmatmul.mubr.f32.gmra.mxu0 %v1683_v34  ;;  %3163 = vmatmul.mubr.f32.gmra.mxu1 %v4253_v13 }
 0x136   :  { %3172 = vmatprep.subr.mxu0 %v3303_v3  ;;  %3211 = vmatprep.subr.mxu1 %v3303_v3 }
 0x137   :  { %3173 = vmatpush3.msra.mxu0 %v4048_v32  ;;  %3212 = vmatpush3.msra.mxu1 %v4080_v44 }
 0x138   :  { %3174 = vmatprep.subr.mxu0 %v3303_v3  ;;  %3213 = vmatprep.subr.mxu1 %v3303_v3 }
 0x139   :  { %3126 = vmatprep.mubr.msk.f32.mxu0 %vm3305_vm5, %v3303_v3  ;;  %3165 = vmatprep.mubr.msk.f32.mxu1 %vm3305_vm5, %v3303_v3 }
 0x13a   :  { %3175 = vmatpush3.msra.mxu0 %v4069_v57  ;;  %3214 = vmatpush3.msra.mxu1 %v4100_v62 }
 0x13b   :  { %3127 = vmatmul.mubr.f32.gmra.mxu0 %v1693_v58  ;;  %3166 = vmatmul.mubr.f32.gmra.mxu1 %v4271_v37 }
 0x13c   :  { %3176 = vmatprep.subr.mxu0 %v3303_v3  ;;  %3215 = vmatprep.subr.mxu1 %v3303_v3 }
 0x13d   :  { %3177 = vmatpush3.msra.mxu0 %v4088_v36  ;;  %3216 = vmatpush3.msra.mxu1 %v4122_v49 }
 0x13e   :  { %3129 = vmatprep.mubr.msk.f32.mxu0 %vm3305_vm5, %v3303_v3  ;;  %3217 = vmatprep.subr.mxu1 %v3303_v3 }
 0x13f   :  { %3178 = vmatprep.subr.mxu0 %v3303_v3  ;;  %3218 = vmatpush3.msra.mxu1 %v4132_v51 }
 0x140   :  { %3219 = vmatprep.mubr.msk.f32.mxu1 %vm3305_vm5, %v3303_v3  ;;  %3130 = vmatmul.mubr.f32.gmra.mxu0 %v1703_v48  ;;  %v342_v42 = vpop.f32.mrf.mxu1 }
 0x141   :  { %3220 = vmatmul.mubr.f32.vlgmr.msra.gmra.mxu1 %v1671_v14  ;;  %3179 = vmatpush3.msra.mxu0 %v4110_v16 }
 0x142   :  { %3267 = vmatprep.subr.mxu1 %v3303_v3  ;;  %3180 = vmatprep.subr.mxu0 %v3303_v3  ;;  %v2759_v8 = vpop.f32.mrf.mxu1 }
 0x143   :  { %3132 = vmatprep.mubr.msk.f32.mxu0 %vm3305_vm5, %v3303_v3  ;;  %3181 = vmatpush3.msra.mxu0 %v4128_v63 }
 0x144   :  { %3222 = vmatprep.mubr.msk.f32.mxu1 %vm3305_vm5, %v3303_v3  ;;  %3182 = vmatprep.subr.mxu0 %v3303_v3 }
 0x145   :  { %3268 = vmatpush3.msra.mxu1 %v3992_v11  ;;  %v348_v46 = vpop.f32.mrf.mxu1  ;;  %3133 = vmatmul.mubr.f32.gmra.mxu0 %v1713_v4 }
 0x146   :  { %3223 = vmatmul.mubr.f32.gmra.mxu1 %v1681_v56  ;;  %3183 = vmatpush3.msra.mxu0 %v4145_v1 }
 0x147   :  { %3269 = vmatprep.subr.mxu1 %v3303_v3  ;;  %v2762_v53 = vpop.f32.mrf.mxu1  ;;  %3184 = vmatprep.subr.mxu0 %v3303_v3 }
 0x148   :  { %3270 = vmatpush3.msra.mxu1 %v4006_v12  ;;  %3185 = vmatpush3.msra.mxu0 %v4155_v2  ;;  %v186_v54 = vpop.f32.mrf.mxu0 }
 0x149   :  { %3271 = vmatprep.subr.mxu1 %v3303_v3  ;;  %v354_v11 = vpop.f32.mrf.mxu1  ;;  %3186 = vmatprep.mubr.msk.f32.mxu0 %vm3305_vm5, %v3303_v3  ;;  %v4337_v10 = vadd.f32 %v342_v42, %v186_v54 }
 0x14a   :  { %3225 = vmatprep.mubr.msk.f32.mxu1 %vm3305_vm5, %v3303_v3  ;;  %3234 = vmatprep.subr.mxu0 %v3303_v3  ;;  %v2726_v14 = vpop.f32.mrf.mxu0 }
 0x14b   :  { %3272 = vmatpush3.msra.mxu1 %v4022_v24  ;;  %v2765_v12 = vpop.f32.mrf.mxu1  ;;  %3187 = vmatmul.mubr.f32.vlgmr.msra.gmra.mxu0 %v4201_v55 }
 0x14c   :  { %3226 = vmatmul.mubr.f32.gmra.mxu1 %v1691_v35  ;;  %3235 = vmatpush3.msra.mxu0 %v1736_v29 }
 0x14d   :  { %3273 = vmatprep.subr.mxu1 %v3303_v3  ;;  %v196_v21 = vpop.f32.mrf.mxu0  ;;  %3236 = vmatprep.subr.mxu0 %v3303_v3  ;;  %v360_v24 = vpop.f32.mrf.mxu1 }
 0x14e   :  { %3274 = vmatpush3.msra.mxu1 %v4040_v30  ;;  %v4349_v25 = vadd.f32 %v348_v46, %v196_v21  ;;  %3189 = vmatprep.mubr.msk.f32.mxu0 %vm3305_vm5, %v3303_v3 }
 0x14f   :  { %3275 = vmatprep.subr.mxu1 %v3303_v3  ;;  %v2729_v55 = vpop.f32.mrf.mxu0  ;;  %3228 = vmatprep.mubr.msk.f32.mxu1 %vm3305_vm5, %v3303_v3  ;;  %v2768_v22 = vpop.f32.mrf.mxu1 }
 0x150   :  { %3237 = vmatpush3.msra.mxu0 %v1743_v0  ;;  %3276 = vmatpush3.msra.mxu1 %v4060_v9 }
 0x151   :  { %3190 = vmatmul.mubr.f32.gmra.mxu0 %v4219_v28  ;;  %3229 = vmatmul.mubr.f32.gmra.mxu1 %v1701_v47 }
 0x152   :  { %3238 = vmatprep.subr.mxu0 %v3303_v3  ;;  %3277 = vmatprep.subr.mxu1 %v3303_v3 }
 0x153   :  { %3239 = vmatpush3.msra.mxu0 %v1750_v45  ;;  %v206_v29 = vpop.f32.mrf.mxu0  ;;  %3278 = vmatpush3.msra.mxu1 %v4080_v44  ;;  %v366_v30 = vpop.f32.mrf.mxu1 }
 0x154   :  { %3240 = vmatprep.subr.mxu0 %v3303_v3  ;;  %v4368_v23 = vadd.f32 %v354_v11, %v206_v29  ;;  %3279 = vmatprep.subr.mxu1 %v3303_v3 }
 0x155   :  { %3192 = vmatprep.mubr.msk.f32.mxu0 %vm3305_vm5, %v3303_v3  ;;  %v2732_v0 = vpop.f32.mrf.mxu0  ;;  %3231 = vmatprep.mubr.msk.f32.mxu1 %vm3305_vm5, %v3303_v3  ;;  %v2771_v32 = vpop.f32.mrf.mxu1 }
 0x156   :  { %3241 = vmatpush3.msra.mxu0 %v1757_v61  ;;  %3280 = vmatpush3.msra.mxu1 %v4100_v62 }
 0x157   :  { %3193 = vmatmul.mubr.f32.gmra.mxu0 %v4242_v40  ;;  %3232 = vmatmul.mubr.f32.gmra.mxu1 %v1711_v31 }
 0x158   :  { %3242 = vmatprep.subr.mxu0 %v3303_v3  ;;  %3281 = vmatprep.subr.mxu1 %v3303_v3  ;;  %v216_v9 = vpop.f32.mrf.mxu0 }
 0x159   :  { %3243 = vmatpush3.msra.mxu0 %v1764_v17  ;;  %v566_v45 = vpop.f32.mrf.mxu1  ;;  %3282 = vmatpush3.msra.mxu1 %v4122_v49  ;;  %v361_v57 = vadd.f32 %v360_v24, %v216_v9 }
 0x15a   :  { %3195 = vmatprep.mubr.msk.f32.mxu0 %vm3305_vm5, %v3303_v3  ;;  %3283 = vmatprep.subr.mxu1 %v3303_v3  ;;  %v2735_v44 = vpop.f32.mrf.mxu0 }
 0x15b   :  { %3244 = vmatprep.subr.mxu0 %v3303_v3  ;;  %v2825_v61 = vpop.f32.mrf.mxu1  ;;  %3284 = vmatpush3.msra.mxu1 %v4132_v51 }
 0x15c   :  { %3285 = vmatprep.mubr.msk.f32.mxu1 %vm3305_vm5, %v3303_v3  ;;  %3196 = vmatmul.mubr.f32.gmra.mxu0 %v4266_v19 }
 0x15d   :  { %3286 = vmatmul.mubr.f32.vlgmr.msra.gmra.mxu1 %v4190_v50  ;;  %3245 = vmatpush3.msra.mxu0 %v1771_v27  ;;  %v226_v36 = vpop.f32.mrf.mxu0 }
 0x15e   :  { %3198 = vmatprep.mubr.msk.f32.mxu0 %vm3305_vm5, %v3303_v3  ;;  %v574_v62 = vpop.f32.mrf.mxu1  ;;  %3246 = vmatprep.subr.mxu0 %v3303_v3  ;;  %v367_v17 = vadd.f32 %v366_v30, %v226_v36 }
 0x15f   :  { %3288 = vmatprep.mubr.msk.f32.mxu1 %vm3305_vm5, %v3303_v3  ;;  %3247 = vmatpush3.msra.mxu0 %v1778_v38  ;;  %v2738_v49 = vpop.f32.mrf.mxu0 }
 0x160   :  { %v2828_v51 = vpop.f32.mrf.mxu1  ;;  %3248 = vmatprep.subr.mxu0 %v3303_v3  ;;  %3199 = vmatmul.mubr.f32.gmra.mxu0 %v4285_v7 }
 0x161   :  { %3249 = vmatpush3.msra.mxu0 %v1785_v39  ;;  %3289 = vmatmul.mubr.f32.gmra.mxu1 %v4205_v41 }
 0x162   :  { %3250 = vmatprep.subr.mxu0 %v3303_v3  ;;  %3252 = vmatprep.mubr.msk.f32.mxu0 %vm3305_vm5, %v3303_v3 }
 0x163   :  { %3251 = vmatpush3.msra.mxu0 %v1792_v33  ;;  %3291 = vmatprep.mubr.msk.f32.mxu1 %vm3305_vm5, %v3303_v3  ;;  %v456_v16 = vpop.f32.mrf.mxu0 }
 0x164   :  { %v582_v63 = vpop.f32.mrf.mxu1  ;;  %3253 = vmatmul.mubr.f32.vlgmr.msra.gmra.mxu0 %v4190_v50  ;;  %v457_v27 = vadd.f32 %v456_v16, %v4337_v10 }
 0x165   :  { %3292 = vmatmul.mubr.f32.gmra.mxu1 %v4226_v26  ;;  %3255 = vmatprep.mubr.msk.f32.mxu0 %vm3305_vm5, %v3303_v3  ;;  %v2792_v1 = vpop.f32.mrf.mxu0 }
 0x166   :  { %v2831_v38 = vpop.f32.mrf.mxu1  ;;  %3294 = vmatprep.mubr.msk.f32.mxu1 %vm3305_vm5, %v3303_v3  ;;  %v567_v2 = vadd.f32 %v566_v45, %v457_v27 }
 0x168   :  { %3256 = vmatmul.mubr.f32.gmra.mxu0 %v4205_v41 }
 0x169   :  { %v463_v39 = vpop.f32.mrf.mxu0  ;;  %3295 = vmatmul.mubr.f32.gmra.mxu1 %v4253_v13  ;;  %3258 = vmatprep.mubr.msk.f32.mxu0 %vm3305_vm5, %v3303_v3  ;;  %v590_v50 = vpop.f32.mrf.mxu1 }
 0x16a   :  { %v464_v33 = vadd.f32 %v463_v39, %v4349_v25  ;;  %3297 = vmatprep.mubr.msk.f32.mxu1 %vm3305_vm5, %v3303_v3 }
 0x16b   :  { %v2795_v28 = vpop.f32.mrf.mxu0  ;;  %v2834_v5 = vpop.f32.mrf.mxu1 }
 0x16c   :  { %v575_v56 = vadd.f32 %v574_v62, %v464_v33  ;;  %3259 = vmatmul.mubr.f32.gmra.mxu0 %v4226_v26 }
 0x16d   :  { %3298 = vmatmul.mubr.f32.gmra.mxu1 %v4271_v37  ;;  %3261 = vmatprep.mubr.msk.f32.mxu0 %vm3305_vm5, %v3303_v3 }
 0x16f   :  { %v470_v41 = vpop.f32.mrf.mxu0  ;;  %v598_v40 = vpop.f32.mrf.mxu1 }
 0x170   :  { %v471_v15 = vadd.f32 %v470_v41, %v4368_v23  ;;  %3262 = vmatmul.mubr.f32.gmra.mxu0 %v4253_v13 }
 0x171   :  { %v2798_v59 = vpop.f32.mrf.mxu0  ;;  %3264 = vmatprep.mubr.msk.f32.mxu0 %vm3305_vm5, %v3303_v3  ;;  %v2837_v60 = vpop.f32.mrf.mxu1 }
 0x172   :  { %v583_v6 = vadd.f32 %v582_v63, %v471_v15 }
 0x174   :  { %3265 = vmatmul.mubr.f32.gmra.mxu0 %v4271_v37  ;;  %v477_v26 = vpop.f32.mrf.mxu0 }
 0x175   :  { %v800_v35 = vpop.f32.mrf.mxu1  ;;  %v478_v18 = vadd.f32 %v477_v26, %v361_v57 }
 0x176   :  { %v2801_v34 = vpop.f32.mrf.mxu0 }
 0x177   :  { %v2891_v19 = vpop.f32.mrf.mxu1  ;;  %v591_v43 = vadd.f32 %v590_v50, %v478_v18 }
 0x179   :  { %v484_v47 = vpop.f32.mrf.mxu0 }
 0x17a   :  { %v806_v7 = vpop.f32.mrf.mxu1  ;;  %v485_v58 = vadd.f32 %v484_v47, %v367_v17 }
 0x17b   :  { %v2804_v20 = vpop.f32.mrf.mxu0 }
 0x17c   :  { %v2894_v31 = vpop.f32.mrf.mxu1  ;;  %v599_v13 = vadd.f32 %v598_v40, %v485_v58 }
 0x17f   :  { %v696_v48 = vpop.f32.mrf.mxu0 }
 0x180   :  { %v812_v52 = vpop.f32.mrf.mxu1  ;;  %v697_v42 = vadd.f32 %v696_v48, %v567_v2 }
 0x181   :  { %v2858_v3 = vpop.f32.mrf.mxu0 }
 0x182   :  { %v2897_v8 = vpop.f32.mrf.mxu1  ;;  %v801_v4 = vadd.f32 %v800_v35, %v697_v42 }
 0x185   :  { %v702_v46 = vpop.f32.mrf.mxu0  ;;  %v818_v53 = vpop.f32.mrf.mxu1 }
 0x186   :  { %v703_v37 = vadd.f32 %v702_v46, %v575_v56 }
 0x187   :  { %v2861_v54 = vpop.f32.mrf.mxu0  ;;  %v2900_v11 = vpop.f32.mrf.mxu1 }
 0x188   :  { %v807_v10 = vadd.f32 %v806_v7, %v703_v37 }
 0x18b   :  { %v708_v14 = vpop.f32.mrf.mxu0  ;;  %v824_v21 = vpop.f32.mrf.mxu1 }
 0x18c   :  { %v709_v12 = vadd.f32 %v708_v14, %v583_v6 }
 0x18d   :  { %v2864_v25 = vpop.f32.mrf.mxu0  ;;  %v2903_v24 = vpop.f32.mrf.mxu1 }
 0x18e   :  { %v813_v55 = vadd.f32 %v812_v52, %v709_v12 }
 0x190   :  { %v714_v22 = vpop.f32.mrf.mxu0 }
 0x191   :  { %v1079_v29 = vpop.f32.mrf.mxu1  ;;  %v715_v23 = vadd.f32 %v714_v22, %v591_v43 }
 0x192   :  { %v2867_v30 = vpop.f32.mrf.mxu0 }
 0x193   :  { %v2957_v0 = vpop.f32.mrf.mxu1  ;;  %v819_v32 = vadd.f32 %v818_v53, %v715_v23 }
 0x195   :  { %v720_v9 = vpop.f32.mrf.mxu0 }
 0x196   :  { %v1085_v45 = vpop.f32.mrf.mxu1  ;;  %v721_v57 = vadd.f32 %v720_v9, %v599_v13 }
 0x197   :  { %v2870_v44 = vpop.f32.mrf.mxu0 }
 0x198   :  { %v2960_v61 = vpop.f32.mrf.mxu1  ;;  %v825_v36 = vadd.f32 %v824_v21, %v721_v57 }
 0x19b   :  { %v923_v62 = vpop.f32.mrf.mxu0 }
 0x19c   :  { %v1091_v17 = vpop.f32.mrf.mxu1  ;;  %v924_v49 = vadd.f32 %v923_v62, %v801_v4 }
 0x19d   :  { %v2924_v51 = vpop.f32.mrf.mxu0 }
 0x19e   :  { %v2963_v16 = vpop.f32.mrf.mxu1  ;;  %v1080_v63 = vadd.f32 %v1079_v29, %v924_v49 }
 0x1a1   :  { %v933_v27 = vpop.f32.mrf.mxu0  ;;  %v1097_v38 = vpop.f32.mrf.mxu1 }
 0x1a2   :  { %v934_v1 = vadd.f32 %v933_v27, %v807_v10 }
 0x1a3   :  { %v2927_v2 = vpop.f32.mrf.mxu0  ;;  %v2966_v39 = vpop.f32.mrf.mxu1 }
 0x1a4   :  { %v1086_v33 = vadd.f32 %v1085_v45, %v934_v1 }
 0x1a7   :  { %v943_v50 = vpop.f32.mrf.mxu0  ;;  %v1103_v5 = vpop.f32.mrf.mxu1 }
 0x1a8   :  { %v944_v28 = vadd.f32 %v943_v50, %v813_v55 }
 0x1a9   :  { %v2930_v56 = vpop.f32.mrf.mxu0  ;;  %v2969_v41 = vpop.f32.mrf.mxu1 }
 0x1aa   :  { %v1092_v15 = vadd.f32 %v1091_v17, %v944_v28 }
 0x1ac   :  { %v953_v40 = vpop.f32.mrf.mxu0 }
 0x1ad   :  { %v1303_v59 = vpop.f32.mrf.mxu1  ;;  %v954_v60 = vadd.f32 %v953_v40, %v819_v32 }
 0x1ae   :  { %v2933_v6 = vpop.f32.mrf.mxu0 }
 0x1af   :  { %v3023_v26 = vpop.f32.mrf.mxu1  ;;  %v1098_v35 = vadd.f32 %v1097_v38, %v954_v60 }
 0x1b1   :  { %v963_v18 = vpop.f32.mrf.mxu0 }
 0x1b2   :  { %v1311_v34 = vpop.f32.mrf.mxu1  ;;  %v964_v19 = vadd.f32 %v963_v18, %v825_v36 }
 0x1b3   :  { %v2936_v43 = vpop.f32.mrf.mxu0 }
 0x1b4   :  { %v3026_v47 = vpop.f32.mrf.mxu1  ;;  %v1104_v7 = vadd.f32 %v1103_v5, %v964_v19 }
 0x1b7   :  { %v1193_v58 = vpop.f32.mrf.mxu0 }
 0x1b8   :  { %v1319_v20 = vpop.f32.mrf.mxu1  ;;  %v1194_v31 = vadd.f32 %v1193_v58, %v1080_v63 }
 0x1b9   :  { %v2990_v13 = vpop.f32.mrf.mxu0 }
 0x1ba   :  { %v3029_v48 = vpop.f32.mrf.mxu1  ;;  %v1304_v52 = vadd.f32 %v1303_v59, %v1194_v31 }
 0x1bd   :  { %v1200_v42 = vpop.f32.mrf.mxu0  ;;  %v1327_v8 = vpop.f32.mrf.mxu1 }
 0x1be   :  { %v1201_v3 = vadd.f32 %v1200_v42, %v1086_v33 }
 0x1bf   :  { %v2993_v4 = vpop.f32.mrf.mxu0  ;;  %v3032_v46 = vpop.f32.mrf.mxu1 }
 0x1c0   :  { %v1312_v37 = vadd.f32 %v1311_v34, %v1201_v3 }
 0x1c3   :  { %v1207_v53 = vpop.f32.mrf.mxu0  ;;  %v1335_v11 = vpop.f32.mrf.mxu1 }
 0x1c4   :  { %v1208_v54 = vadd.f32 %v1207_v53, %v1092_v15 }
 0x1c5   :  { %v2996_v10 = vpop.f32.mrf.mxu0  ;;  %v3035_v14 = vpop.f32.mrf.mxu1 }
 0x1c6   :  { %v1320_v12 = vadd.f32 %v1319_v20, %v1208_v54 }
 0x1c8   :  { %v1214_v21 = vpop.f32.mrf.mxu0 }
 0x1c9   :  { %v1537_v25 = vpop.f32.mrf.mxu1  ;;  %v1215_v24 = vadd.f32 %v1214_v21, %v1098_v35 }
 0x1ca   :  { %v2999_v55 = vpop.f32.mrf.mxu0 }
 0x1cb   :  { %v3089_v22 = vpop.f32.mrf.mxu1  ;;  %v1328_v29 = vadd.f32 %v1327_v8, %v1215_v24 }
 0x1cd   :  { %v1221_v23 = vpop.f32.mrf.mxu0 }
 0x1ce   :  { %v1543_v30 = vpop.f32.mrf.mxu1  ;;  %v1222_v0 = vadd.f32 %v1221_v23, %v1104_v7 }
 0x1cf   :  { %v3002_v32 = vpop.f32.mrf.mxu0 }
 0x1d0   :  { %v3092_v9 = vpop.f32.mrf.mxu1  ;;  %v1336_v45 = vadd.f32 %v1335_v11, %v1222_v0 }
 0x1d3   :  { %v1433_v57 = vpop.f32.mrf.mxu0 }
 0x1d4   :  { %v1549_v44 = vpop.f32.mrf.mxu1  ;;  %v1434_v61 = vadd.f32 %v1433_v57, %v1304_v52 }
 0x1d5   :  { %v3056_v36 = vpop.f32.mrf.mxu0 }
 0x1d6   :  { %v3095_v62 = vpop.f32.mrf.mxu1  ;;  %v4439_v17 = vadd.f32 %v1537_v25, %v1434_v61 }
 0x1d9   :  { %v1439_v49 = vpop.f32.mrf.mxu0  ;;  %v1555_v16 = vpop.f32.mrf.mxu1 }
 0x1da   :  { %v1440_v51 = vadd.f32 %v1439_v49, %v1312_v37 }
 0x1db   :  { %v3059_v63 = vpop.f32.mrf.mxu0  ;;  %v3098_v1 = vpop.f32.mrf.mxu1 }
 0x1dc   :  { %v4441_v27 = vadd.f32 %v1543_v30, %v1440_v51 }
 0x1df   :  { %v1445_v38 = vpop.f32.mrf.mxu0  ;;  %v1561_v39 = vpop.f32.mrf.mxu1 }
 0x1e0   :  { %v1446_v2 = vadd.f32 %v1445_v38, %v1320_v12 }
 0x1e1   :  { %v3062_v33 = vpop.f32.mrf.mxu0  ;;  %v3101_v28 = vpop.f32.mrf.mxu1 }
 0x1e2   :  { %v4443_v50 = vadd.f32 %v1549_v44, %v1446_v2 }
 0x1e4   :  { %v1451_v5 = vpop.f32.mrf.mxu0 }
 0x1e5   :  { %v1831_v56 = vpop.f32.mrf.mxu1  ;;  %v1452_v41 = vadd.f32 %v1451_v5, %v1328_v29 }
 0x1e6   :  { %v3065_v15 = vpop.f32.mrf.mxu0 }
 0x1e7   :  { %v3155_v40 = vpop.f32.mrf.mxu1  ;;  %v4445_v59 = vadd.f32 %v1555_v16, %v1452_v41 }
 0x1e9   :  { %v1457_v60 = vpop.f32.mrf.mxu0 }
 0x1ea   :  { %v1837_v6 = vpop.f32.mrf.mxu1  ;;  %v1458_v26 = vadd.f32 %v1457_v60, %v1336_v45 }
 0x1eb   :  { %v3068_v35 = vpop.f32.mrf.mxu0 }
 0x1ec   :  { %v3158_v18 = vpop.f32.mrf.mxu1  ;;  %v4447_v34 = vadd.f32 %v1561_v39, %v1458_v26 }
 0x1ef   :  { %v1675_v19 = vpop.f32.mrf.mxu0 }
 0x1f0   :  { %v1843_v43 = vpop.f32.mrf.mxu1  ;;  %v1832_v57 = vadd.f32 %v1831_v56, %v1675_v19  ;;  %v4456_v56 = vld [vmem:[%s4508_s2] ss:$0 sm:$0xff] }
 0x1f1   :  { %v3122_v47 = vpop.f32.mrf.mxu0 }
 0x1f2   :  { %v3161_v7 = vpop.f32.mrf.mxu1 }
 0x1f5   :  { %v1685_v58 = vpop.f32.mrf.mxu0  ;;  %v1849_v20 = vpop.f32.mrf.mxu1 }
 0x1f6   :  { %v1838_v49 = vadd.f32 %v1837_v6, %v1685_v58 }
 0x1f7   :  { %v3125_v31 = vpop.f32.mrf.mxu0  ;;  %v3164_v13 = vpop.f32.mrf.mxu1 }
 0x1fb   :  { %v1695_v48 = vpop.f32.mrf.mxu0  ;;  %v4449_v52 = vpop.f32.mrf.mxu1 }
 0x1fc   :  { %v1844_v2 = vadd.f32 %v1843_v43, %v1695_v48 }
 0x1fd   :  { %v3128_v42 = vpop.f32.mrf.mxu0  ;;  %v3167_v3 = vpop.f32.mrf.mxu1 }
 0x200   :  { %v1705_v8 = vpop.f32.mrf.mxu0 }
 0x201   :  { %v2055_v4 = vpop.f32.mrf.mxu1  ;;  %v1850_v26 = vadd.f32 %v1849_v20, %v1705_v8 }
 0x202   :  { %v3131_v46 = vpop.f32.mrf.mxu0 }
 0x203   :  { %v3221_v37 = vpop.f32.mrf.mxu1 }
 0x205   :  { %v1715_v53 = vpop.f32.mrf.mxu0 }
 0x206   :  { %v2063_v54 = vpop.f32.mrf.mxu1  ;;  %v1856_v20 = vadd.f32 %v4449_v52, %v1715_v53 }
 0x207   :  { %v3134_v11 = vpop.f32.mrf.mxu0 }
 0x208   :  { %v3224_v10 = vpop.f32.mrf.mxu1 }
 0x20b   :  { %v1945_v14 = vpop.f32.mrf.mxu0 }
 0x20c   :  { %v2071_v12 = vpop.f32.mrf.mxu1  ;;  %v1946_v36 = vadd.f32 %v1945_v14, %v1832_v57 }
 0x20d   :  { %v3188_v21 = vpop.f32.mrf.mxu0 }
 0x20e   :  { %v3227_v25 = vpop.f32.mrf.mxu1  ;;  %v2056_v38 = vadd.f32 %v2055_v4, %v1946_v36 }
 0x211   :  { %v1952_v24 = vpop.f32.mrf.mxu0  ;;  %v2079_v55 = vpop.f32.mrf.mxu1 }
 0x212   :  { %v1953_v63 = vadd.f32 %v1952_v24, %v1838_v49 }
 0x213   :  { %v3191_v22 = vpop.f32.mrf.mxu0  ;;  %v3230_v29 = vpop.f32.mrf.mxu1 }
 0x214   :  { %v2064_v60 = vadd.f32 %v2063_v54, %v1953_v63 }
 0x217   :  { %v1959_v23 = vpop.f32.mrf.mxu0  ;;  %v4451_v30 = vpop.f32.mrf.mxu1 }
 0x218   :  { %v1960_v5 = vadd.f32 %v1959_v23, %v1844_v2 }
 0x219   :  { %v3194_v0 = vpop.f32.mrf.mxu0  ;;  %v3233_v32 = vpop.f32.mrf.mxu1 }
 0x21a   :  { %v2072_v47 = vadd.f32 %v2071_v12, %v1960_v5 }
 0x21c   :  { %v1966_v9 = vpop.f32.mrf.mxu0 }
 0x21d   :  { %v2289_v45 = vpop.f32.mrf.mxu1  ;;  %v1967_v7 = vadd.f32 %v1966_v9, %v1850_v26 }
 0x21e   :  { %v3197_v44 = vpop.f32.mrf.mxu0 }
 0x21f   :  { %v3287_v61 = vpop.f32.mrf.mxu1  ;;  %v2080_v11 = vadd.f32 %v2079_v55, %v1967_v7 }
 0x220   :  { %v1973_v62 = vpop.f32.mrf.mxu0 }
 0x221   :  { %v2295_v51 = vpop.f32.mrf.mxu1  ;;  %v1974_v10 = vadd.f32 %v1973_v62, %v1856_v20 }
 0x222   :  { %v3200_v16 = vpop.f32.mrf.mxu0 }
 0x223   :  { %v3290_v1 = vpop.f32.mrf.mxu1  ;;  %v2088_v32 = vadd.f32 %v4451_v30, %v1974_v10 }
 0x224   :  { %v2185_v39 = vpop.f32.mrf.mxu0 }
 0x225   :  { %v2186_v33 = vadd.f32 %v2185_v39, %v2056_v38  ;;  %v2301_v28 = vpop.f32.mrf.mxu1 }
 0x226   :  { %v3254_v41 = vpop.f32.mrf.mxu0 }
 0x227   :  { %v2290_v15 = vadd.f32 %v2289_v45, %v2186_v33  ;;  %v3293_v40 = vpop.f32.mrf.mxu1 }
 0x228   :  { %v2191_v6 = vpop.f32.mrf.mxu0 }
 0x229   :  { %v2317_v35 = vadd.f32 %v2290_v15, %v4439_v17  ;;  %v2192_v18 = vadd.f32 %v2191_v6, %v2064_v60  ;;  %v2307_v19 = vpop.f32.mrf.mxu1 }
 0x22a   :  { %v3257_v43 = vpop.f32.mrf.mxu0 }
 0x22b   :  { %vm2323_vm9 = vcmp.ge.f32.partialorder %v2317_v35, 0.0  ;;  %v2334_v58 = vmul.f32 %v4456_v56, %v2317_v35  ;;  %v2296_v31 = vadd.f32 %v2295_v51, %v2192_v18  ;;  %v3296_v13 = vpop.f32.mrf.mxu1 }
 0x22c   :  { %v2197_v48 = vpop.f32.mrf.mxu0 }
 0x22d   :  { %v2339_v42 = vsel %vm2323_vm9, %v2317_v35, %v2334_v58  ;;  %v2318_v3 = vadd.f32 %v2296_v31, %v4441_v27  ;;  %v2198_v4 = vadd.f32 %v2197_v48, %v2072_v47  ;;  %v2313_v46 = vpop.f32.mrf.mxu1 }
 0x22e   :  { %2345 = vst.msk [vmem:[%s4509_s3] sm:$0xff] %vm2344_vm8, %v2339_v42  ;;  %v3260_v17 = vpop.f32.mrf.mxu0  ;;  %v2357_v14 = vmul.f32 %v2339_v42, %v2339_v42  ;;  %v2347_v52 = vsel %vm2344_vm8, %v2339_v42, 0.0 }
 0x22f   :  { %vm2324_vm10 = vcmp.ge.f32.partialorder %v2318_v3, 0.0  ;;  %v2335_v8 = vmul.f32 %v4456_v56, %v2318_v3  ;;  %v2302_v37 = vadd.f32 %v2301_v28, %v2198_v4  ;;  %v3299_v54 = vpop.f32.mrf.mxu1 }
 0x230   :  { %v2203_v12 = vpop.f32.mrf.mxu0 }
 0x231   :  { %v2340_v27 = vsel %vm2324_vm10, %v2318_v3, %v2335_v8  ;;  %v2319_v21 = vadd.f32 %v2302_v37, %v4443_v50  ;;  %v2204_v25 = vadd.f32 %v2203_v12, %v2080_v11  ;;  %v2359_v50 = vsel %vm2344_vm8, %v2357_v14, 0.0 }
 0x232   :  { %2346 = vst.msk [vmem:[%s4509_s3 + $0x8] sm:$0xff] %vm2344_vm8, %v2340_v27  ;;  %v2348_v53 = vsel %vm2344_vm8, %v2340_v27, 0.0  ;;  %v2358_v24 = vmul.f32 %v2340_v27, %v2340_v27  ;;  %v3263_v22 = vpop.f32.mrf.mxu0 }
 0x233   :  { %v2349_v55 = vadd.f32 %v2348_v53, %v2347_v52  ;;  %vm2325_vm12 = vcmp.ge.f32.partialorder %v2319_v21, 0.0  ;;  %v2336_v29 = vmul.f32 %v4456_v56, %v2319_v21  ;;  %v2308_v23 = vadd.f32 %v2307_v19, %v2204_v25 }
 0x234   :  { %v2360_v0 = vsel %vm2344_vm8, %v2358_v24, 0.0  ;;  %v2209_v9 = vpop.f32.mrf.mxu0 }
 0x235   :  { %v2361_v45 = vadd.f32 %v2360_v0, %v2359_v50  ;;  %v2341_v57 = vsel %vm2325_vm12, %v2319_v21, %v2336_v29  ;;  %v2320_v44 = vadd.f32 %v2308_v23, %v4445_v59  ;;  %v2210_v61 = vadd.f32 %v2209_v9, %v2088_v32 }
 0x236   :  { %2451 = vst.msk [vmem:[%s4509_s3 + $0xe] sm:$0xfc] %vm2370_vm11, %v2341_v57  ;;  %v3266_v36 = vpop.f32.mrf.mxu0  ;;  %v2396_v62 = vmul.f32 %v2341_v57, %v2341_v57  ;;  %v2379_v63 = vrot.slane %v2341_v57, 2  ;;  %v2350_v38 = vrot.slane %v2349_v55, 4 }
 0x237   :  { %vm2326_vm13 = vcmp.ge.f32.partialorder %v2320_v44, 0.0  ;;  %v2337_v49 = vmul.f32 %v4456_v56, %v2320_v44  ;;  %v2314_v51 = vadd.f32 %v2313_v46, %v2210_v61  ;;  %v2362_v5 = vrot.slane %v2361_v45, 4 }
 0x238   :  { %v2402_v2 = vrot.slane %v2396_v62, 2  ;;  %v2351_v40 = vadd.f32 %v2350_v38, %v2349_v55 }
 0x239   :  { %v2342_v16 = vsel %vm2326_vm13, %v2320_v44, %v2337_v49  ;;  %v2321_v1 = vadd.f32 %v2314_v51, %v4447_v34  ;;  %v2363_v26 = vadd.f32 %v2362_v5, %v2361_v45 }
 0x23a   :  { %2452 = vst.msk [vmem:[%s4509_s3 + $0x16] sm:$0xff] %vm2344_vm8, %v2342_v16  ;;  %v2380_v59 = vrot.slane %v2342_v16, 2  ;;  %v2397_v30 = vmul.f32 %v2342_v16, %v2342_v16 }
 0x23b   :  { %vm2327_vm0 = vcmp.ge.f32.partialorder %v2321_v1, 0.0  ;;  %v2338_v28 = vmul.f32 %v4456_v56, %v2321_v1  ;;  %v2352_v56 = vrot.slane %v2351_v40, 2  ;;  %v2364_v13 = vrot.slane %v2363_v26, 2 }
 0x23c   :  { %v2381_v39 = vsel %vm2378_vm14, %v2379_v63, %v2380_v59  ;;  %v2403_v33 = vrot.slane %v2397_v30, 2 }
 0x23d   :  { %v2343_v15 = vsel %vm2327_vm0, %v2321_v1, %v2338_v28  ;;  %v2386_v35 = vsel %vm2344_vm8, %v2381_v39, 0.0  ;;  %v2353_v42 = vadd.f32 %v2352_v56, %v2351_v40  ;;  %v2365_v20 = vadd.f32 %v2364_v13, %v2363_v26 }
 0x23e   :  { %v2404_v41 = vsel %vm2378_vm14, %v2402_v2, %v2403_v33  ;;  %2453 = vst.msk [vmem:[%s4509_s3 + $0x1e] sm:$0x3] %vm2373_vm15, %v2343_v15  ;;  %v2382_v60 = vrot.slane %v2343_v15, 2  ;;  %v2398_v34 = vmul.f32 %v2343_v15, %v2343_v15 }
 0x23f   :  { %v2409_v7 = vsel %vm2344_vm8, %v2404_v41, 0.0  ;;  %v2354_v8 = vrot.slane %v2353_v42, 1  ;;  %v2366_v10 = vrot.slane %v2365_v20, 1 }
 0x240   :  { %v2383_v6 = vsel %vm2378_vm14, %v2380_v59, %v2382_v60  ;;  %v2405_v19 = vrot.slane %v2398_v34, 2 }
 0x241   :  { %v2387_v18 = vsel %vm2344_vm8, %v2383_v6, 0.0  ;;  %v2355_v12 = vadd.f32 %v2354_v8, %v2353_v42  ;;  %v2367_v52 = vadd.f32 %v2366_v10, %v2365_v20 }
 0x242   :  { %v2388_v43 = vadd.f32 %v2387_v18, %v2386_v35  ;;  %v2406_v47 = vsel %vm2378_vm14, %v2403_v33, %v2405_v19 }
 0x243   :  { %v2410_v31 = vsel %vm2344_vm8, %v2406_v47, 0.0 }
 0x244   :  { %v2389_v58 = vrot.slane %v2388_v43, 4  ;;  %v2411_v48 = vadd.f32 %v2410_v31, %v2409_v7 }
 0x246   :  { %v2390_v3 = vadd.f32 %v2389_v58, %v2388_v43  ;;  %v2412_v4 = vrot.slane %v2411_v48, 4 }
 0x248   :  { %v2391_v46 = vrot.slane %v2390_v3, 2  ;;  %v2413_v17 = vadd.f32 %v2412_v4, %v2411_v48 }
 0x24a   :  { %v2392_v37 = vadd.f32 %v2391_v46, %v2390_v3  ;;  %v2414_v54 = vrot.slane %v2413_v17, 2 }
 0x24c   :  { %v2393_v11 = vrot.slane %v2392_v37, 1  ;;  %v2415_v14 = vadd.f32 %v2414_v54, %v2413_v17 }
 0x24e   :  { %v2394_v27 = vadd.f32 %v2393_v11, %v2392_v37  ;;  %v2416_v21 = vrot.slane %v2415_v14, 1 }
 0x250   :  { %v2395_v25 = vadd.f32 %v2394_v27, %v2355_v12  ;;  %v2417_v53 = vadd.f32 %v2416_v21, %v2415_v14 }
 0x252   :  { %2420 = vst.msk [vmem:[%s4510_s4] sm:$0x1] %vm2419_vm1, %v2395_v25  ;;  %v2418_v24 = vadd.f32 %v2417_v53, %v2367_v52 }
 0x254   :  { %2421 = vst.msk [vmem:[%s4510_s4 + $0x1] sm:$0x1] %vm2419_vm1, %v2418_v24 }

// kernel: residual_block_forward.5
= control target key start
LH: loop header
LB: loop body
LE: loop exit
PB: predicated region body
PF: predicated region fallthrough
CT: control target
= control target key end

     0   :  { %v24_v0 = vlaneseq  ;;  %s135_s2 = inlined_call_operand.vmem [shape: f32[1,256], index: 2, kind: input, shape index: {}]   ;;  %s136_s3 = inlined_call_operand.vmem [shape: f32[1,256], index: 3, kind: input, shape index: {}]   ;;  %s137_s0 = inlined_call_operand.vmem [shape: f32[8,256], index: 0, kind: input, shape index: {}]   ;;  %s138_s4 = inlined_call_operand.vmem [shape: f32[1,256], index: 4, kind: input, shape index: {}]   ;;  %s139_s1 = inlined_call_operand.vmem [shape: f32[8,256], index: 1, kind: input, shape index: {}]   ;;  %s140_s5 = inlined_call_operand.vmem [shape: f32[8,256], index: 5, kind: output, shape index: {}]  }
   0x1   :  { %v22_v2 = vld [vmem:[%s135_s2] sm:$0x3]  ;;  %v21_v7 = vld [vmem:[%s137_s0 + $0x8] sm:$0xff] }
   0x2   :  { %v25_v1 = vshrl.u32 %v24_v0, 7  ;;  %v36_v3 = vld [vmem:[%s136_s3] sm:$0x3]  ;;  %v51_v16 = vld [vmem:[%s139_s1 + $0x8] sm:$0xff] }
   0x3   :  { %v20_v6 = vld [vmem:[%s137_s0] sm:$0xff] }
   0x4   :  { %v26_v4 = vsub.s32 0, %v25_v1  ;;  %v30_v5 = vsub.s32 1, %v25_v1  ;;  %v56_v11 = vld [vmem:[%s138_s4] sm:$0x3] }
   0x5   :  { %v50_v15 = vld [vmem:[%s139_s1] sm:$0xff] }
   0x6   :  { %v27_v8 = vrot.slane %v22_v2, %v26_v4  ;;  %v41_v9 = vrot.slane %v36_v3, %v26_v4  ;;  %v31_v10 = vrot.slane %v22_v2, %v30_v5  ;;  %v45_v12 = vrot.slane %v36_v3, %v30_v5 }
   0x7   :  { %v61_v18 = vrot.slane %v56_v11, %v26_v4  ;;  %v65_v20 = vrot.slane %v56_v11, %v30_v5 }
   0x8   :  { %v34_v13 = vmul.f32 %v27_v8, %v20_v6  ;;  %v35_v14 = vmul.f32 %v31_v10, %v21_v7 }
   0xa   :  { %v48_v17 = vadd.f32 %v41_v9, %v34_v13  ;;  %v49_v19 = vadd.f32 %v45_v12, %v35_v14 }
   0xc   :  { %v52_v21 = vadd.f32 %v50_v15, %v48_v17  ;;  %v53_v22 = vadd.f32 %v51_v16, %v49_v19 }
   0xe   :  { %vm54_vm0 = vcmp.ge.f32.partialorder %v52_v21, 0.0  ;;  %v68_v23 = vmul.f32 %v61_v18, %v52_v21  ;;  %vm55_vm1 = vcmp.ge.f32.partialorder %v53_v22, 0.0  ;;  %v69_v24 = vmul.f32 %v65_v20, %v53_v22 }
  0x10   :  { %v70_v25 = vsel %vm54_vm0, %v52_v21, %v68_v23  ;;  %v71_v26 = vsel %vm55_vm1, %v53_v22, %v69_v24 }
  0x11   :  { %72 = vst [vmem:[%s140_s5] sm:$0xff] %v70_v25  ;;  %73 = vst [vmem:[%s140_s5 + $0x8] sm:$0xff] %v71_v26 }

</bundles_post_ra>
